<compile_context>
chip_gen: v7x
topology: tpu7x:2x2x1
jax: 0.10.0
libtpu: 0.0.40
codegen_flags: <defaults>
</compile_context>

<pallas_src>
import functools

import jax
import jax.numpy as jnp
from jax.experimental import pallas as pl
from jax.experimental.pallas import tpu as pltpu

EPS = 1e-5                       # PyTorch BatchNorm2d default eps
_VMEM_LIMIT = 32 * 1024 * 1024   # explicit scoped-VMEM cap (tiles are tiny)


# ----------------------------- Pallas kernels ------------------------------

def _bn_full_kernel(x_ref, gamma_ref, beta_ref,
                    scale_ref, shift_ref, scale0_ref, shift0_ref,
                    acc_ref, mean_ref, *, inv_count):
    """Two-phase BN statistics (training mode), lane-dense (C, HW) blocks.

    grid = (2, N): phase 0 accumulates per-channel sums -> mean, phase 1 accumulates
    centered squares -> variance (no E[x^2]-E[x]^2 cancellation).  Emits both the
    affine (gamma/beta) scale/shift and the param-free scale/shift so the x_img SPADE
    BN can reuse the same stats pass (its channels are a prefix of x's channels).
    """
    p = pl.program_id(0)
    i = pl.program_id(1)
    last = pl.num_programs(1) - 1
    x = x_ref[0]                                     # (C, HW) f32

    @pl.when(i == 0)
    def _init():
        acc_ref[...] = jnp.zeros_like(acc_ref)

    @pl.when(p == 0)
    def _accum_sum():
        acc_ref[...] += jnp.sum(x, axis=1, keepdims=True)

    @pl.when(p == 1)
    def _accum_sq():
        d = x - mean_ref[...]
        acc_ref[...] += jnp.sum(d * d, axis=1, keepdims=True)

    @pl.when(jnp.logical_and(p == 0, i == last))
    def _emit_mean():
        mean_ref[...] = acc_ref[...] * inv_count

    @pl.when(jnp.logical_and(p == 1, i == last))
    def _emit_scale_shift():
        var = acc_ref[...] * inv_count
        s0 = jax.lax.rsqrt(var + EPS)
        m = mean_ref[...]
        scale0_ref[...] = s0                          # param-free BN (SPADE on x_img)
        shift0_ref[...] = -m * s0
        s = gamma_ref[...] * s0                       # affine BN (conv_gate1 pre-op)
        scale_ref[...] = s
        shift_ref[...] = beta_ref[...] - m * s


def _bn_var_kernel(x_ref, sum_ref, gamma_ref, beta_ref,
                   scale_ref, shift_ref, acc_ref, *, inv_count):
    """Centered-variance-only BN pass (the sum pass was fused into the producer conv)."""
    i = pl.program_id(0)
    last = pl.num_programs(0) - 1
    mean = sum_ref[...] * inv_count                   # (C, 1)
    x = x_ref[0]                                      # (C, HW)

    @pl.when(i == 0)
    def _init():
        acc_ref[...] = jnp.zeros_like(acc_ref)

    d = x - mean
    acc_ref[...] += jnp.sum(d * d, axis=1, keepdims=True)

    @pl.when(i == last)
    def _emit():
        var = acc_ref[...] * inv_count
        s = gamma_ref[...] * jax.lax.rsqrt(var + EPS)
        scale_ref[...] = s
        shift_ref[...] = beta_ref[...] - mean * s


def _conv3x3_kernel(*args, width, pre, act, combine, stats):
    """Fused 3x3 conv (stride 1, pad 1), one batch image per grid step.

    Layout: channels on sublanes, flattened H*W on lanes.
    Pre-op:  'affine' -> relu(x*scale + shift)                      (BN -> ReLU)
             'spade'  -> relu((x*scale + shift)*(1+gamma) + beta)   (SPADE -> ReLU)
    Conv:    9 shifted bf16 MXU matmuls (K = Cin) with f32 accumulation.  Shifts are
             zero-fill lane slices; only two column masks are needed (no padded scratch).
    Post:    bias + {none, relu, sigmoid}; optional per-channel sum output (fused BN
             phase-0); optional TIRG combine y = w_gate*(gate*x_img) + w_res*res.
    """
    idx = 0
    if pre in ('affine', 'spade'):
        scale_ref, shift_ref = args[idx], args[idx + 1]
        idx += 2
    if pre == 'spade':
        gb_ref = args[idx]
        idx += 1
    x_ref, w_ref, b_ref = args[idx], args[idx + 1], args[idx + 2]
    idx += 3
    if combine:
        wgr_ref, gate_ref, ximg_ref = args[idx], args[idx + 1], args[idx + 2]
        idx += 3
    out_ref = args[idx]
    idx += 1
    if stats:
        sum_ref = args[idx]
        sum_acc = args[idx + 1]

    cin = x_ref.shape[1]
    hw = x_ref.shape[2]
    W = width

    x = x_ref[0].astype(jnp.float32)                  # (Cin, HW), lane-dense
    if pre in ('affine', 'spade'):
        x = x * scale_ref[...] + shift_ref[...]       # per-channel BN scale/shift
    if pre == 'spade':
        gb = gb_ref[0]                                # (2*Cin, HW): [gamma ; beta]
        x = x * (1.0 + gb[:cin]) + gb[cin:]
    if pre in ('affine', 'spade'):
        x = jnp.maximum(x, 0.0)                       # ReLU before the conv

    # Column masks (f32 VPU); cast to bf16 only for the MXU operands.
    col = jax.lax.broadcasted_iota(jnp.int32, (1, hw), 1) % W
    zero = jnp.zeros_like(x)
    x_m1 = jnp.where(col != W - 1, x, zero).astype(jnp.bfloat16)   # taps with ox = -1
    x_00 = x.astype(jnp.bfloat16)                                   # taps with ox =  0
    x_p1 = jnp.where(col != 0, x, zero).astype(jnp.bfloat16)        # taps with ox = +1
    variants = {-1: x_m1, 0: x_00, 1: x_p1}

    acc = None
    t = 0
    for oy in (-1, 0, 1):
        for ox in (-1, 0, 1):
            xv = variants[ox]
            d = oy * W + ox                           # flat shift; zero-fill == zero pad
            if d > 0:
                xs = jnp.concatenate(
                    [xv[:, d:], jnp.zeros((cin, d), jnp.bfloat16)], axis=1)
            elif d < 0:
                xs = jnp.concatenate(
                    [jnp.zeros((cin, -d), jnp.bfloat16), xv[:, :hw + d]], axis=1)
            else:
                xs = xv
            part = jnp.dot(w_ref[t], xs, preferred_element_type=jnp.float32)
            acc = part if acc is None else acc + part
            t += 1

    acc = acc + b_ref[...]                            # (Cout, HW) + (Cout, 1)

    if stats:                                         # fused BN phase-0 (per-channel sums)
        @pl.when(pl.program_id(0) == 0)
        def _zero():
            sum_acc[...] = jnp.zeros_like(sum_acc)
        sum_acc[...] += jnp.sum(acc, axis=1, keepdims=True)

        @pl.when(pl.program_id(0) == pl.num_programs(0) - 1)
        def _emit():
            sum_ref[...] = sum_acc[...]

    if act == 'relu':
        acc = jnp.maximum(acc, 0.0)
    elif act == 'sigmoid':
        acc = jax.nn.sigmoid(acc)

    if combine:
        # y = w_gate * (gate * x_img) + w_res * res   (res_mask_post=False)
        acc = wgr_ref[0] * (gate_ref[0] * ximg_ref[0]) + wgr_ref[1] * acc

    out_ref[0] = acc.astype(out_ref.dtype)


# ----------------------------- wrappers -------------------------------------

def bn_scale_shift_full(x, gamma, beta):
    """Two-pass BN stats of x (N,C,HW) -> (scale, shift, scale_param_free, shift_param_free)."""
    N, C, HW = x.shape
    kern = functools.partial(_bn_full_kernel, inv_count=1.0 / (N * HW))
    shp = jax.ShapeDtypeStruct((C, 1), jnp.float32)
    return pl.pallas_call(
        kern,
        out_shape=(shp, shp, shp, shp),
        grid=(2, N),
        in_specs=[pl.BlockSpec((1, C, HW), lambda p, i: (i, 0, 0)),
                  pl.BlockSpec((C, 1), lambda p, i: (0, 0)),
                  pl.BlockSpec((C, 1), lambda p, i: (0, 0))],
        out_specs=(pl.BlockSpec((C, 1), lambda p, i: (0, 0)),) * 4,
        scratch_shapes=[pltpu.VMEM((C, 1), jnp.float32),   # sum / centered-sq accumulator
                        pltpu.VMEM((C, 1), jnp.float32)],  # mean carried across phases
        compiler_params=pltpu.CompilerParams(
            dimension_semantics=("arbitrary", "arbitrary"),
            vmem_limit_bytes=_VMEM_LIMIT),
    )(x, gamma, beta)


def bn_scale_shift_from_sum(x, ch_sum, gamma, beta):
    """Variance-only BN pass: mean comes from the per-channel sums fused into the producer conv."""
    N, C, HW = x.shape
    kern = functools.partial(_bn_var_kernel, inv_count=1.0 / (N * HW))
    shp = jax.ShapeDtypeStruct((C, 1), jnp.float32)
    return pl.pallas_call(
        kern,
        out_shape=(shp, shp),
        grid=(N,),
        in_specs=[pl.BlockSpec((1, C, HW), lambda i: (i, 0, 0)),
                  pl.BlockSpec((C, 1), lambda i: (0, 0)),
                  pl.BlockSpec((C, 1), lambda i: (0, 0)),
                  pl.BlockSpec((C, 1), lambda i: (0, 0))],
        out_specs=(pl.BlockSpec((C, 1), lambda i: (0, 0)),) * 2,
        scratch_shapes=[pltpu.VMEM((C, 1), jnp.float32)],
        compiler_params=pltpu.CompilerParams(
            dimension_semantics=("arbitrary",),
            vmem_limit_bytes=_VMEM_LIMIT),
    )(x, ch_sum, gamma, beta)


def conv3x3_fused(x, w, b, *, width, pre='none', scale=None, shift=None, gb=None,
                  act='none', combine=None, stats=False):
    """3x3 conv (stride 1, pad 1) on (N, Cin, HW) with fused pre-op / epilogue.

    Grid over batch.  Weights are passed as bf16 (9, Cout, Cin); accumulation is f32.
    stats=True additionally emits per-channel sums of the (pre-activation) output.
    """
    N, Cin, HW = x.shape
    Cout = w.shape[-1]
    # (3,3,Cin,Cout) -> (9, Cout, Cin), bf16 MXU operand (halves the per-step weight DMA).
    wk = jnp.transpose(w, (0, 1, 3, 2)).reshape(9, Cout, Cin).astype(jnp.bfloat16)

    inputs, in_specs = [], []
    if pre in ('affine', 'spade'):
        inputs += [scale, shift]
        in_specs += [pl.BlockSpec((Cin, 1), lambda n: (0, 0)),
                     pl.BlockSpec((Cin, 1), lambda n: (0, 0))]
    if pre == 'spade':
        inputs += [gb]
        in_specs += [pl.BlockSpec((1, 2 * Cin, HW), lambda n: (n, 0, 0))]
    inputs += [x, wk, b]
    in_specs += [pl.BlockSpec((1, Cin, HW), lambda n: (n, 0, 0)),
                 pl.BlockSpec((9, Cout, Cin), lambda n: (0, 0, 0)),
                 pl.BlockSpec((Cout, 1), lambda n: (0, 0))]
    if combine is not None:
        wgr, gate, ximg = combine
        inputs += [wgr, gate, ximg]
        in_specs += [pl.BlockSpec(memory_space=pltpu.MemorySpace.SMEM),   # (2,) scalars
                     pl.BlockSpec((1, gate.shape[1], HW), lambda n: (n, 0, 0)),
                     pl.BlockSpec((1, ximg.shape[1], HW), lambda n: (n, 0, 0))]

    out_shape = [jax.ShapeDtypeStruct((N, Cout, HW), jnp.float32)]
    out_specs = [pl.BlockSpec((1, Cout, HW), lambda n: (n, 0, 0))]
    scratch = []
    if stats:
        out_shape.append(jax.ShapeDtypeStruct((Cout, 1), jnp.float32))
        out_specs.append(pl.BlockSpec((Cout, 1), lambda n: (0, 0)))
        scratch.append(pltpu.VMEM((Cout, 1), jnp.float32))

    kern = functools.partial(_conv3x3_kernel, width=width, pre=pre, act=act,
                             combine=combine is not None, stats=stats)
    return pl.pallas_call(
        kern,
        out_shape=tuple(out_shape) if stats else out_shape[0],
        grid=(N,),
        in_specs=in_specs,
        out_specs=tuple(out_specs) if stats else out_specs[0],
        scratch_shapes=scratch,
        compiler_params=pltpu.CompilerParams(
            # stats carries a VMEM accumulator across the batch grid -> keep sequential;
            # otherwise batch images are fully independent -> allow megacore split.
            dimension_semantics=("arbitrary",) if stats else ("parallel",),
            vmem_limit_bytes=_VMEM_LIMIT),
    )(*inputs)


# ----------------------------- forward ---------------------------------------

def tirg_spade_forward(params, x_img_nchw, x_txt_nchw):
    N, Ci, H, Wd = x_img_nchw.shape
    Ct = x_txt_nchw.shape[1]
    HW = H * Wd
    # NCHW -> (N, C, H*W) is a pure reshape (no transpose); spatial goes on lanes.
    x_img = x_img_nchw.reshape(N, Ci, HW).astype(jnp.float32)
    x_txt = x_txt_nchw.reshape(N, Ct, HW).astype(jnp.float32)
    x = jnp.concatenate([x_img, x_txt], axis=1)                    # (N, in_ch, HW)

    # BN stats of x: affine scale/shift for conv_gate1, plus param-free scale/shift whose
    # first Ci channels are exactly x_img's stats (reused by SPADE1 -> one BN launch saved).
    s1, sh1, s0, sh0 = bn_scale_shift_full(x, params['g1_gamma'], params['g1_beta'])
    si, shi = s0[:Ci], sh0[:Ci]

    # conv_gate1 = BN -> ReLU -> conv3x3, emitting per-channel sums of pre_gate (fused BN phase-0)
    pre_gate, pg_sum = conv3x3_fused(
        x, params['g1_w'], params['g1_b'], width=Wd,
        pre='affine', scale=s1, shift=sh1, stats=True)

    # conv_gate2 = BN -> ReLU -> conv3x3 -> Sigmoid (variance-only BN pass)
    s2, sh2 = bn_scale_shift_from_sum(pre_gate, pg_sum,
                                      params['g2_gamma'], params['g2_beta'])
    gate = conv3x3_fused(pre_gate, params['g2_w'], params['g2_b'], width=Wd,
                         pre='affine', scale=s2, shift=sh2, act='sigmoid')

    def spade_maps(p):
        # mlp_shared = conv3x3 -> ReLU ; gamma & beta heads fused into ONE conv (Cout=2*Ci)
        actv = conv3x3_fused(pre_gate, p['w_shared'], p['b_shared'], width=Wd, act='relu')
        return conv3x3_fused(actv, p['w_gb'], p['b_gb'], width=Wd)

    # res = conv_res1(ReLU(SPADE1(x_img, pre_gate))); SPADE+ReLU fused as conv pre-op,
    # per-channel sums of res fused as epilogue for the next BN.
    gb1 = spade_maps(params['spade1'])
    res, res_sum = conv3x3_fused(
        x_img, params['r1_w'], params['r1_b'], width=Wd,
        pre='spade', scale=si, shift=shi, gb=gb1, stats=True)

    # res = conv_res2(ReLU(SPADE2(res, pre_gate))) with the TIRG combine
    # y = w_gate*(gate*x_img) + w_res*res fused as the conv epilogue (res_mask_post=False).
    sr, shr = bn_scale_shift_from_sum(res, res_sum,
                                      jnp.ones((Ci, 1), jnp.float32),
                                      jnp.zeros((Ci, 1), jnp.float32))
    gb2 = spade_maps(params['spade2'])
    wgr = jnp.concatenate([params['w_gate'], params['w_res']]).astype(jnp.float32)
    y = conv3x3_fused(res, params['r2_w'], params['r2_b'], width=Wd,
                      pre='spade', scale=sr, shift=shr, gb=gb2,
                      combine=(wgr, gate, x_img))

    return y.reshape(N, Ci, H, Wd), gate.reshape(N, 1, H, Wd)


# ----------------------------- params -----------------------------------------

def init_params(key, image_dim, text_dim, hidden_dim, nhidden):
    in_ch = image_dim + text_dim
    ks = jax.random.split(key, 10)

    def cw(k, cin, cout):
        return jax.random.normal(k, (3, 3, cin, cout), jnp.float32) * 0.1

    def cb(cout):
        return jnp.zeros((cout, 1), jnp.float32)

    def spade_params(k0, k1, k2):
        w_gamma = cw(k1, nhidden, image_dim)
        w_beta = cw(k2, nhidden, image_dim)
        return {
            'w_shared': cw(k0, hidden_dim, nhidden), 'b_shared': cb(nhidden),
            # gamma head = output channels [0:image_dim], beta head = [image_dim:2*image_dim]
            'w_gb': jnp.concatenate([w_gamma, w_beta], axis=-1),
            'b_gb': jnp.zeros((2 * image_dim, 1), jnp.float32),
        }

    return {
        'w_gate': jnp.ones((1,), jnp.float32),     # nn.Parameter(torch.ones(1))
        'w_res': jnp.zeros((1,), jnp.float32),     # nn.Parameter(torch.zeros(1))
        'g1_gamma': jnp.ones((in_ch, 1), jnp.float32),
        'g1_beta': jnp.zeros((in_ch, 1), jnp.float32),
        'g1_w': cw(ks[0], in_ch, hidden_dim), 'g1_b': cb(hidden_dim),
        'g2_gamma': jnp.ones((hidden_dim, 1), jnp.float32),
        'g2_beta': jnp.zeros((hidden_dim, 1), jnp.float32),
        'g2_w': cw(ks[1], hidden_dim, 1), 'g2_b': cb(1),
        'r1_w': cw(ks[2], image_dim, image_dim), 'r1_b': cb(image_dim),
        'r2_w': cw(ks[3], image_dim, image_dim), 'r2_b': cb(image_dim),
        'spade1': spade_params(ks[4], ks[5], ks[6]),
        'spade2': spade_params(ks[7], ks[8], ks[9]),
    }


if __name__ == "__main__":
    key = jax.random.PRNGKey(0)
    B, image_dim, text_dim, H, W = 2, 4, 4, 16, 16
    hidden_dim = 32

    k_img, k_txt, k_p = jax.random.split(key, 3)
    x_img = jax.random.normal(k_img, (B, image_dim, H, W), jnp.float32)   # NCHW
    x_txt = jax.random.normal(k_txt, (B, text_dim, H, W), jnp.float32)    # NCHW
    params = init_params(k_p, image_dim, text_dim, hidden_dim, nhidden=hidden_dim)

    fwd = jax.jit(functools.partial(tirg_spade_forward, params))
    y, gate = fwd(x_img, x_txt)
    jax.block_until_ready((y, gate))

    assert y.shape == (B, image_dim, H, W)
    assert gate.shape == (B, 1, H, W)
    assert bool(jnp.all(jnp.isfinite(y))) and bool(jnp.all(jnp.isfinite(gate)))
    assert bool(jnp.all(gate >= 0.0)) and bool(jnp.all(gate <= 1.0))
    print("KERNEL_OK")
</pallas_src>

<mosaic_0001>
module attributes {stable_mosaic.version = 11 : i64} {
  func.func @_bn_full_kernel(%arg0: i32, %arg1: i32, %arg2: memref<1x8x256xf32, #tpu.memory_space<vmem>>, %arg3: memref<8x1xf32, #tpu.memory_space<vmem>>, %arg4: memref<8x1xf32, #tpu.memory_space<vmem>>, %arg5: memref<8x1xf32, #tpu.memory_space<vmem>>, %arg6: memref<8x1xf32, #tpu.memory_space<vmem>>, %arg7: memref<8x1xf32, #tpu.memory_space<vmem>>, %arg8: memref<8x1xf32, #tpu.memory_space<vmem>>, %arg9: memref<8x1xf32, #tpu.memory_space<vmem>>, %arg10: memref<8x1xf32, #tpu.memory_space<vmem>>) attributes {dimension_semantics = [#tpu.dimension_semantics<arbitrary>, #tpu.dimension_semantics<arbitrary>], iteration_bounds = array<i64: 2, 2>, scalar_prefetch = 0 : i64, scratch_operands = 2 : i64, tpu.core_type = #tpu.core_type<tc>, window_params = [{transform_indices = @transform_0, window_bounds = array<i64: 1, 8, 256>}, {pipeline_mode = #tpu.pipeline_mode<synchronous>, transform_indices = @transform_1, window_bounds = array<i64: 8, 1>}, {pipeline_mode = #tpu.pipeline_mode<synchronous>, transform_indices = @transform_2, window_bounds = array<i64: 8, 1>}, {pipeline_mode = #tpu.pipeline_mode<synchronous>, transform_indices = @transform_3, window_bounds = array<i64: 8, 1>}, {pipeline_mode = #tpu.pipeline_mode<synchronous>, transform_indices = @transform_4, window_bounds = array<i64: 8, 1>}, {pipeline_mode = #tpu.pipeline_mode<synchronous>, transform_indices = @transform_5, window_bounds = array<i64: 8, 1>}, {pipeline_mode = #tpu.pipeline_mode<synchronous>, transform_indices = @transform_6, window_bounds = array<i64: 8, 1>}]} {
    %c0 = arith.constant 0 : index
    %c0_0 = arith.constant 0 : index
    %c0_1 = arith.constant 0 : index
    %0 = vector.load %arg2[%c0, %c0_0, %c0_1] : memref<1x8x256xf32, #tpu.memory_space<vmem>>, vector<1x8x256xf32>
    %1 = vector.shape_cast %0 : vector<1x8x256xf32> to vector<8x256xf32>
    %c0_i32 = arith.constant 0 : i32
    %2 = arith.cmpi eq, %arg1, %c0_i32 : i32
    %3 = arith.extui %2 : i1 to i32
    %c0_i32_2 = arith.constant 0 : i32
    %4 = arith.cmpi ne, %3, %c0_i32_2 : i32
    scf.if %4 {
      %cst = arith.constant 0.000000e+00 : f32
      %21 = vector.broadcast %cst : f32 to vector<8x1xf32>
      %c0_12 = arith.constant 0 : index
      %c0_13 = arith.constant 0 : index
      %22 = vector.load %arg9[%c0_12, %c0_13] : memref<8x1xf32, #tpu.memory_space<vmem>>, vector<8x1xf32>
      tpu.vector_store %arg9[%c0_12, %c0_13], %21 {strides = array<i32>} : memref<8x1xf32, #tpu.memory_space<vmem>>, vector<8x1xf32>,
    } else {
    }
    %c0_i32_3 = arith.constant 0 : i32
    %5 = arith.cmpi eq, %arg0, %c0_i32_3 : i32
    %6 = arith.extui %5 : i1 to i32
    %c0_i32_4 = arith.constant 0 : i32
    %7 = arith.cmpi ne, %6, %c0_i32_4 : i32
    scf.if %7 {
      %c0_12 = arith.constant 0 : index
      %c0_13 = arith.constant 0 : index
      %21 = vector.load %arg9[%c0_12, %c0_13] : memref<8x1xf32, #tpu.memory_space<vmem>>, vector<8x1xf32>
      %cst = arith.constant dense<0.000000e+00> : vector<8xf32>
      %22 = vector.multi_reduction <add>, %1, %cst [1] : vector<8x256xf32> to vector<8xf32>
      %23 = vector.shape_cast %22 : vector<8xf32> to vector<8x1xf32>
      %24 = arith.addf %21, %23 : vector<8x1xf32>
      %c0_14 = arith.constant 0 : index
      %c0_15 = arith.constant 0 : index
      %25 = vector.load %arg9[%c0_14, %c0_15] : memref<8x1xf32, #tpu.memory_space<vmem>>, vector<8x1xf32>
      tpu.vector_store %arg9[%c0_14, %c0_15], %24 {strides = array<i32>} : memref<8x1xf32, #tpu.memory_space<vmem>>, vector<8x1xf32>,
    } else {
    }
    %c1_i32 = arith.constant 1 : i32
    %8 = arith.cmpi eq, %arg0, %c1_i32 : i32
    %9 = arith.extui %8 : i1 to i32
    %c0_i32_5 = arith.constant 0 : i32
    %10 = arith.cmpi ne, %9, %c0_i32_5 : i32
    scf.if %10 {
      %c0_12 = arith.constant 0 : index
      %c0_13 = arith.constant 0 : index
      %21 = vector.load %arg10[%c0_12, %c0_13] : memref<8x1xf32, #tpu.memory_space<vmem>>, vector<8x1xf32>
      %22 = vector.broadcast %21 : vector<8x1xf32> to vector<8x256xf32>
      %23 = arith.subf %1, %22 : vector<8x256xf32>
      %c0_14 = arith.constant 0 : index
      %c0_15 = arith.constant 0 : index
      %24 = vector.load %arg9[%c0_14, %c0_15] : memref<8x1xf32, #tpu.memory_space<vmem>>, vector<8x1xf32>
      %25 = arith.mulf %23, %23 : vector<8x256xf32>
      %cst = arith.constant dense<0.000000e+00> : vector<8xf32>
      %26 = vector.multi_reduction <add>, %25, %cst [1] : vector<8x256xf32> to vector<8xf32>
      %27 = vector.shape_cast %26 : vector<8xf32> to vector<8x1xf32>
      %28 = arith.addf %24, %27 : vector<8x1xf32>
      %c0_16 = arith.constant 0 : index
      %c0_17 = arith.constant 0 : index
      %29 = vector.load %arg9[%c0_16, %c0_17] : memref<8x1xf32, #tpu.memory_space<vmem>>, vector<8x1xf32>
      tpu.vector_store %arg9[%c0_16, %c0_17], %28 {strides = array<i32>} : memref<8x1xf32, #tpu.memory_space<vmem>>, vector<8x1xf32>,
    } else {
    }
    %c0_i32_6 = arith.constant 0 : i32
    %11 = arith.cmpi eq, %arg0, %c0_i32_6 : i32
    %c1_i32_7 = arith.constant 1 : i32
    %12 = arith.cmpi eq, %arg1, %c1_i32_7 : i32
    %13 = arith.andi %11, %12 : i1
    %14 = arith.extui %13 : i1 to i32
    %c0_i32_8 = arith.constant 0 : i32
    %15 = arith.cmpi ne, %14, %c0_i32_8 : i32
    scf.if %15 {
      %c0_12 = arith.constant 0 : index
      %c0_13 = arith.constant 0 : index
      %21 = vector.load %arg9[%c0_12, %c0_13] : memref<8x1xf32, #tpu.memory_space<vmem>>, vector<8x1xf32>
      %cst = arith.constant 0.001953125 : f32
      %22 = vector.broadcast %cst : f32 to vector<8x1xf32>
      %23 = arith.mulf %21, %22 : vector<8x1xf32>
      %c0_14 = arith.constant 0 : index
      %c0_15 = arith.constant 0 : index
      %24 = vector.load %arg10[%c0_14, %c0_15] : memref<8x1xf32, #tpu.memory_space<vmem>>, vector<8x1xf32>
      tpu.vector_store %arg10[%c0_14, %c0_15], %23 {strides = array<i32>} : memref<8x1xf32, #tpu.memory_space<vmem>>, vector<8x1xf32>,
    } else {
    }
    %c1_i32_9 = arith.constant 1 : i32
    %16 = arith.cmpi eq, %arg0, %c1_i32_9 : i32
    %c1_i32_10 = arith.constant 1 : i32
    %17 = arith.cmpi eq, %arg1, %c1_i32_10 : i32
    %18 = arith.andi %16, %17 : i1
    %19 = arith.extui %18 : i1 to i32
    %c0_i32_11 = arith.constant 0 : i32
    %20 = arith.cmpi ne, %19, %c0_i32_11 : i32
    scf.if %20 {
      %c0_12 = arith.constant 0 : index
      %c0_13 = arith.constant 0 : index
      %21 = vector.load %arg9[%c0_12, %c0_13] : memref<8x1xf32, #tpu.memory_space<vmem>>, vector<8x1xf32>
      %cst = arith.constant 0.001953125 : f32
      %22 = vector.broadcast %cst : f32 to vector<8x1xf32>
      %23 = arith.mulf %21, %22 : vector<8x1xf32>
      %cst_14 = arith.constant 9.99999974E-6 : f32
      %24 = vector.broadcast %cst_14 : f32 to vector<8x1xf32>
      %25 = arith.addf %23, %24 : vector<8x1xf32>
      %26 = math.rsqrt %25 : vector<8x1xf32>
      %c0_15 = arith.constant 0 : index
      %c0_16 = arith.constant 0 : index
      %27 = vector.load %arg10[%c0_15, %c0_16] : memref<8x1xf32, #tpu.memory_space<vmem>>, vector<8x1xf32>
      %c0_17 = arith.constant 0 : index
      %c0_18 = arith.constant 0 : index
      %28 = vector.load %arg7[%c0_17, %c0_18] : memref<8x1xf32, #tpu.memory_space<vmem>>, vector<8x1xf32>
      tpu.vector_store %arg7[%c0_17, %c0_18], %26 {strides = array<i32>} : memref<8x1xf32, #tpu.memory_space<vmem>>, vector<8x1xf32>,
      %cst_19 = arith.constant 0.000000e+00 : f32
      %29 = vector.broadcast %cst_19 : f32 to vector<8x1xf32>
      %30 = arith.subf %29, %27 : vector<8x1xf32>
      %31 = arith.mulf %30, %26 : vector<8x1xf32>
      %c0_20 = arith.constant 0 : index
      %c0_21 = arith.constant 0 : index
      %32 = vector.load %arg8[%c0_20, %c0_21] : memref<8x1xf32, #tpu.memory_space<vmem>>, vector<8x1xf32>
      tpu.vector_store %arg8[%c0_20, %c0_21], %31 {strides = array<i32>} : memref<8x1xf32, #tpu.memory_space<vmem>>, vector<8x1xf32>,
      %c0_22 = arith.constant 0 : index
      %c0_23 = arith.constant 0 : index
      %33 = vector.load %arg3[%c0_22, %c0_23] : memref<8x1xf32, #tpu.memory_space<vmem>>, vector<8x1xf32>
      %34 = arith.mulf %33, %26 : vector<8x1xf32>
      %c0_24 = arith.constant 0 : index
      %c0_25 = arith.constant 0 : index
      %35 = vector.load %arg5[%c0_24, %c0_25] : memref<8x1xf32, #tpu.memory_space<vmem>>, vector<8x1xf32>
      tpu.vector_store %arg5[%c0_24, %c0_25], %34 {strides = array<i32>} : memref<8x1xf32, #tpu.memory_space<vmem>>, vector<8x1xf32>,
      %c0_26 = arith.constant 0 : index
      %c0_27 = arith.constant 0 : index
      %36 = vector.load %arg4[%c0_26, %c0_27] : memref<8x1xf32, #tpu.memory_space<vmem>>, vector<8x1xf32>
      %37 = arith.mulf %27, %34 : vector<8x1xf32>
      %38 = arith.subf %36, %37 : vector<8x1xf32>
      %c0_28 = arith.constant 0 : index
      %c0_29 = arith.constant 0 : index
      %39 = vector.load %arg6[%c0_28, %c0_29] : memref<8x1xf32, #tpu.memory_space<vmem>>, vector<8x1xf32>
      tpu.vector_store %arg6[%c0_28, %c0_29], %38 {strides = array<i32>} : memref<8x1xf32, #tpu.memory_space<vmem>>, vector<8x1xf32>,
    } else {
    }
    return
  }
  func.func @transform_0(%arg0: i32, %arg1: i32) -> (i32, i32, i32) {
    %c0_i32 = arith.constant 0 : i32
    %c0_i32_0 = arith.constant 0 : i32
    %c0_i32_1 = arith.constant 0 : i32
    return %arg1, %c0_i32, %c0_i32_0 : i32, i32, i32
  }
  func.func @transform_1(%arg0: i32, %arg1: i32) -> (i32, i32) {
    %c0_i32 = arith.constant 0 : i32
    %c0_i32_0 = arith.constant 0 : i32
    %c0_i32_1 = arith.constant 0 : i32
    return %c0_i32, %c0_i32_0 : i32, i32
  }
  func.func @transform_2(%arg0: i32, %arg1: i32) -> (i32, i32) {
    %c0_i32 = arith.constant 0 : i32
    %c0_i32_0 = arith.constant 0 : i32
    %c0_i32_1 = arith.constant 0 : i32
    return %c0_i32, %c0_i32_0 : i32, i32
  }
  func.func @transform_3(%arg0: i32, %arg1: i32) -> (i32, i32) {
    %c0_i32 = arith.constant 0 : i32
    %c0_i32_0 = arith.constant 0 : i32
    %c0_i32_1 = arith.constant 0 : i32
    return %c0_i32, %c0_i32_0 : i32, i32
  }
  func.func @transform_4(%arg0: i32, %arg1: i32) -> (i32, i32) {
    %c0_i32 = arith.constant 0 : i32
    %c0_i32_0 = arith.constant 0 : i32
    %c0_i32_1 = arith.constant 0 : i32
    return %c0_i32, %c0_i32_0 : i32, i32
  }
  func.func @transform_5(%arg0: i32, %arg1: i32) -> (i32, i32) {
    %c0_i32 = arith.constant 0 : i32
    %c0_i32_0 = arith.constant 0 : i32
    %c0_i32_1 = arith.constant 0 : i32
    return %c0_i32, %c0_i32_0 : i32, i32
  }
  func.func @transform_6(%arg0: i32, %arg1: i32) -> (i32, i32) {
    %c0_i32 = arith.constant 0 : i32
    %c0_i32_0 = arith.constant 0 : i32
    %c0_i32_1 = arith.constant 0 : i32
    return %c0_i32, %c0_i32_0 : i32, i32
  }
}

module attributes {stable_mosaic.version = 11 : i64} {
  func.func @_bn_var_kernel(%arg0: i32, %arg1: memref<1x32x256xf32, #tpu.memory_space<vmem>>, %arg2: memref<32x1xf32, #tpu.memory_space<vmem>>, %arg3: memref<32x1xf32, #tpu.memory_space<vmem>>, %arg4: memref<32x1xf32, #tpu.memory_space<vmem>>, %arg5: memref<32x1xf32, #tpu.memory_space<vmem>>, %arg6: memref<32x1xf32, #tpu.memory_space<vmem>>, %arg7: memref<32x1xf32, #tpu.memory_space<vmem>>) attributes {dimension_semantics = [#tpu.dimension_semantics<arbitrary>], iteration_bounds = array<i64: 2>, scalar_prefetch = 0 : i64, scratch_operands = 1 : i64, tpu.core_type = #tpu.core_type<tc>, window_params = [{transform_indices = @transform_0, window_bounds = array<i64: 1, 32, 256>}, {pipeline_mode = #tpu.pipeline_mode<synchronous>, transform_indices = @transform_1, window_bounds = array<i64: 32, 1>}, {pipeline_mode = #tpu.pipeline_mode<synchronous>, transform_indices = @transform_2, window_bounds = array<i64: 32, 1>}, {pipeline_mode = #tpu.pipeline_mode<synchronous>, transform_indices = @transform_3, window_bounds = array<i64: 32, 1>}, {pipeline_mode = #tpu.pipeline_mode<synchronous>, transform_indices = @transform_4, window_bounds = array<i64: 32, 1>}, {pipeline_mode = #tpu.pipeline_mode<synchronous>, transform_indices = @transform_5, window_bounds = array<i64: 32, 1>}]} {
    %c0 = arith.constant 0 : index
    %c0_0 = arith.constant 0 : index
    %0 = vector.load %arg2[%c0, %c0_0] : memref<32x1xf32, #tpu.memory_space<vmem>>, vector<32x1xf32>
    %cst = arith.constant 0.001953125 : f32
    %1 = vector.broadcast %cst : f32 to vector<32x1xf32>
    %2 = arith.mulf %0, %1 : vector<32x1xf32>
    %c0_1 = arith.constant 0 : index
    %c0_2 = arith.constant 0 : index
    %c0_3 = arith.constant 0 : index
    %3 = vector.load %arg1[%c0_1, %c0_2, %c0_3] : memref<1x32x256xf32, #tpu.memory_space<vmem>>, vector<1x32x256xf32>
    %4 = vector.shape_cast %3 : vector<1x32x256xf32> to vector<32x256xf32>
    %c0_i32 = arith.constant 0 : i32
    %5 = arith.cmpi eq, %arg0, %c0_i32 : i32
    %6 = arith.extui %5 : i1 to i32
    %c0_i32_4 = arith.constant 0 : i32
    %7 = arith.cmpi ne, %6, %c0_i32_4 : i32
    scf.if %7 {
      %cst_11 = arith.constant 0.000000e+00 : f32
      %19 = vector.broadcast %cst_11 : f32 to vector<32x1xf32>
      %c0_12 = arith.constant 0 : index
      %c0_13 = arith.constant 0 : index
      %20 = vector.load %arg7[%c0_12, %c0_13] : memref<32x1xf32, #tpu.memory_space<vmem>>, vector<32x1xf32>
      tpu.vector_store %arg7[%c0_12, %c0_13], %19 {strides = array<i32>} : memref<32x1xf32, #tpu.memory_space<vmem>>, vector<32x1xf32>,
    } else {
    }
    %8 = vector.broadcast %2 : vector<32x1xf32> to vector<32x256xf32>
    %9 = arith.subf %4, %8 : vector<32x256xf32>
    %c0_5 = arith.constant 0 : index
    %c0_6 = arith.constant 0 : index
    %10 = vector.load %arg7[%c0_5, %c0_6] : memref<32x1xf32, #tpu.memory_space<vmem>>, vector<32x1xf32>
    %11 = arith.mulf %9, %9 : vector<32x256xf32>
    %cst_7 = arith.constant dense<0.000000e+00> : vector<32xf32>
    %12 = vector.multi_reduction <add>, %11, %cst_7 [1] : vector<32x256xf32> to vector<32xf32>
    %13 = vector.shape_cast %12 : vector<32xf32> to vector<32x1xf32>
    %14 = arith.addf %10, %13 : vector<32x1xf32>
    %c0_8 = arith.constant 0 : index
    %c0_9 = arith.constant 0 : index
    %15 = vector.load %arg7[%c0_8, %c0_9] : memref<32x1xf32, #tpu.memory_space<vmem>>, vector<32x1xf32>
    tpu.vector_store %arg7[%c0_8, %c0_9], %14 {strides = array<i32>} : memref<32x1xf32, #tpu.memory_space<vmem>>, vector<32x1xf32>,
    %c1_i32 = arith.constant 1 : i32
    %16 = arith.cmpi eq, %arg0, %c1_i32 : i32
    %17 = arith.extui %16 : i1 to i32
    %c0_i32_10 = arith.constant 0 : i32
    %18 = arith.cmpi ne, %17, %c0_i32_10 : i32
    scf.if %18 {
      %c0_11 = arith.constant 0 : index
      %c0_12 = arith.constant 0 : index
      %19 = vector.load %arg7[%c0_11, %c0_12] : memref<32x1xf32, #tpu.memory_space<vmem>>, vector<32x1xf32>
      %cst_13 = arith.constant 0.001953125 : f32
      %20 = vector.broadcast %cst_13 : f32 to vector<32x1xf32>
      %21 = arith.mulf %19, %20 : vector<32x1xf32>
      %c0_14 = arith.constant 0 : index
      %c0_15 = arith.constant 0 : index
      %22 = vector.load %arg3[%c0_14, %c0_15] : memref<32x1xf32, #tpu.memory_space<vmem>>, vector<32x1xf32>
      %cst_16 = arith.constant 9.99999974E-6 : f32
      %23 = vector.broadcast %cst_16 : f32 to vector<32x1xf32>
      %24 = arith.addf %21, %23 : vector<32x1xf32>
      %25 = math.rsqrt %24 : vector<32x1xf32>
      %26 = arith.mulf %22, %25 : vector<32x1xf32>
      %c0_17 = arith.constant 0 : index
      %c0_18 = arith.constant 0 : index
      %27 = vector.load %arg5[%c0_17, %c0_18] : memref<32x1xf32, #tpu.memory_space<vmem>>, vector<32x1xf32>
      tpu.vector_store %arg5[%c0_17, %c0_18], %26 {strides = array<i32>} : memref<32x1xf32, #tpu.memory_space<vmem>>, vector<32x1xf32>,
      %c0_19 = arith.constant 0 : index
      %c0_20 = arith.constant 0 : index
      %28 = vector.load %arg4[%c0_19, %c0_20] : memref<32x1xf32, #tpu.memory_space<vmem>>, vector<32x1xf32>
      %29 = arith.mulf %2, %26 : vector<32x1xf32>
      %30 = arith.subf %28, %29 : vector<32x1xf32>
      %c0_21 = arith.constant 0 : index
      %c0_22 = arith.constant 0 : index
      %31 = vector.load %arg6[%c0_21, %c0_22] : memref<32x1xf32, #tpu.memory_space<vmem>>, vector<32x1xf32>
      tpu.vector_store %arg6[%c0_21, %c0_22], %30 {strides = array<i32>} : memref<32x1xf32, #tpu.memory_space<vmem>>, vector<32x1xf32>,
    } else {
    }
    return
  }
  func.func @transform_0(%arg0: i32) -> (i32, i32, i32) {
    %c0_i32 = arith.constant 0 : i32
    %c0_i32_0 = arith.constant 0 : i32
    %c0_i32_1 = arith.constant 0 : i32
    return %arg0, %c0_i32, %c0_i32_0 : i32, i32, i32
  }
  func.func @transform_1(%arg0: i32) -> (i32, i32) {
    %c0_i32 = arith.constant 0 : i32
    %c0_i32_0 = arith.constant 0 : i32
    %c0_i32_1 = arith.constant 0 : i32
    return %c0_i32, %c0_i32_0 : i32, i32
  }
  func.func @transform_2(%arg0: i32) -> (i32, i32) {
    %c0_i32 = arith.constant 0 : i32
    %c0_i32_0 = arith.constant 0 : i32
    %c0_i32_1 = arith.constant 0 : i32
    return %c0_i32, %c0_i32_0 : i32, i32
  }
  func.func @transform_3(%arg0: i32) -> (i32, i32) {
    %c0_i32 = arith.constant 0 : i32
    %c0_i32_0 = arith.constant 0 : i32
    %c0_i32_1 = arith.constant 0 : i32
    return %c0_i32, %c0_i32_0 : i32, i32
  }
  func.func @transform_4(%arg0: i32) -> (i32, i32) {
    %c0_i32 = arith.constant 0 : i32
    %c0_i32_0 = arith.constant 0 : i32
    %c0_i32_1 = arith.constant 0 : i32
    return %c0_i32, %c0_i32_0 : i32, i32
  }
  func.func @transform_5(%arg0: i32) -> (i32, i32) {
    %c0_i32 = arith.constant 0 : i32
    %c0_i32_0 = arith.constant 0 : i32
    %c0_i32_1 = arith.constant 0 : i32
    return %c0_i32, %c0_i32_0 : i32, i32
  }
}

module attributes {stable_mosaic.version = 11 : i64} {
  func.func @_conv3x3_kernel(%arg0: i32, %arg1: memref<32x1xf32, #tpu.memory_space<vmem>>, %arg2: memref<32x1xf32, #tpu.memory_space<vmem>>, %arg3: memref<1x32x256xf32, #tpu.memory_space<vmem>>, %arg4: memref<9x1x32xbf16, #tpu.memory_space<vmem>>, %arg5: memref<1x1xf32, #tpu.memory_space<vmem>>, %arg6: memref<1x1x256xf32, #tpu.memory_space<vmem>>) attributes {dimension_semantics = [#tpu.dimension_semantics<parallel>], iteration_bounds = array<i64: 2>, scalar_prefetch = 0 : i64, scratch_operands = 0 : i64, tpu.core_type = #tpu.core_type<tc>, window_params = [{pipeline_mode = #tpu.pipeline_mode<synchronous>, transform_indices = @transform_0, window_bounds = array<i64: 32, 1>}, {pipeline_mode = #tpu.pipeline_mode<synchronous>, transform_indices = @transform_1, window_bounds = array<i64: 32, 1>}, {transform_indices = @transform_2, window_bounds = array<i64: 1, 32, 256>}, {pipeline_mode = #tpu.pipeline_mode<synchronous>, transform_indices = @transform_3, window_bounds = array<i64: 9, 1, 32>}, {pipeline_mode = #tpu.pipeline_mode<synchronous>, transform_indices = @transform_4, window_bounds = array<i64: 1, 1>}, {transform_indices = @transform_5, window_bounds = array<i64: 1, 1, 256>}]} {
    %c0 = arith.constant 0 : index
    %c0_0 = arith.constant 0 : index
    %c0_1 = arith.constant 0 : index
    %0 = vector.load %arg3[%c0, %c0_0, %c0_1] : memref<1x32x256xf32, #tpu.memory_space<vmem>>, vector<1x32x256xf32>
    %1 = vector.shape_cast %0 : vector<1x32x256xf32> to vector<32x256xf32>
    %c0_2 = arith.constant 0 : index
    %c0_3 = arith.constant 0 : index
    %2 = vector.load %arg1[%c0_2, %c0_3] : memref<32x1xf32, #tpu.memory_space<vmem>>, vector<32x1xf32>
    %3 = vector.broadcast %2 : vector<32x1xf32> to vector<32x256xf32>
    %4 = arith.mulf %1, %3 : vector<32x256xf32>
    %c0_4 = arith.constant 0 : index
    %c0_5 = arith.constant 0 : index
    %5 = vector.load %arg2[%c0_4, %c0_5] : memref<32x1xf32, #tpu.memory_space<vmem>>, vector<32x1xf32>
    %6 = vector.broadcast %5 : vector<32x1xf32> to vector<32x256xf32>
    %7 = arith.addf %4, %6 : vector<32x256xf32>
    %cst = arith.constant 0.000000e+00 : f32
    %8 = vector.broadcast %cst : f32 to vector<32x256xf32>
    %9 = arith.maximumf %7, %8 : vector<32x256xf32>
    %10 = tpu.iota {dimensions = array<i32: 1>} : vector<1x256xi32>
    %c16_i32 = arith.constant 16 : i32
    %c0_i32 = arith.constant 0 : i32
    %11 = arith.cmpi eq, %c16_i32, %c0_i32 : i32
    %c1_i32 = arith.constant 1 : i32
    %12 = arith.select %11, %c1_i32, %c16_i32 : i32
    %13 = vector.broadcast %12 : i32 to vector<1x256xi32>
    %14 = arith.remsi %10, %13 : vector<1x256xi32>
    %c0_i32_6 = arith.constant 0 : i32
    %15 = vector.broadcast %c0_i32_6 : i32 to vector<1x256xi32>
    %16 = arith.cmpi ne, %14, %15 : vector<1x256xi32>
    %c0_i32_7 = arith.constant 0 : i32
    %17 = vector.broadcast %c0_i32_7 : i32 to vector<1x256xi32>
    %18 = arith.cmpi slt, %14, %17 : vector<1x256xi32>
    %c0_i32_8 = arith.constant 0 : i32
    %19 = arith.cmpi slt, %12, %c0_i32_8 : i32
    %20 = vector.broadcast %19 : i1 to vector<1x256xi1>
    %21 = vector.broadcast %20 : vector<1x256xi1> to vector<1x256xi1>
    %22 = arith.xori %18, %21 : vector<1x256xi1>
    %23 = arith.andi %22, %16 : vector<1x256xi1>
    %24 = vector.broadcast %12 : i32 to vector<1x256xi32>
    %25 = arith.addi %14, %24 : vector<1x256xi32>
    %26 = arith.select %23, %25, %14 : vector<1x256xi1>, vector<1x256xi32>
    %cst_9 = arith.constant 0.000000e+00 : f32
    %27 = vector.broadcast %cst_9 : f32 to vector<32x256xf32>
    %c15_i32 = arith.constant 15 : i32
    %28 = vector.broadcast %c15_i32 : i32 to vector<1x256xi32>
    %29 = arith.cmpi ne, %26, %28 : vector<1x256xi32>
    %30 = vector.shape_cast %29 : vector<1x256xi1> to vector<1x256xi1>
    %31 = vector.broadcast %30 : vector<1x256xi1> to vector<32x256xi1>
    %32 = arith.select %31, %9, %27 : vector<32x256xi1>, vector<32x256xf32>
    %33 = arith.truncf %32 : vector<32x256xf32> to vector<32x256xbf16>
    %34 = arith.truncf %9 : vector<32x256xf32> to vector<32x256xbf16>
    %c0_i32_10 = arith.constant 0 : i32
    %35 = vector.broadcast %c0_i32_10 : i32 to vector<1x256xi32>
    %36 = arith.cmpi ne, %26, %35 : vector<1x256xi32>
    %37 = vector.shape_cast %36 : vector<1x256xi1> to vector<1x256xi1>
    %38 = vector.broadcast %37 : vector<1x256xi1> to vector<32x256xi1>
    %39 = arith.select %38, %9, %27 : vector<32x256xi1>, vector<32x256xf32>
    %40 = arith.truncf %39 : vector<32x256xf32> to vector<32x256xbf16>
    %cst_11 = arith.constant 0.000000e+00 : bf16
    %41 = vector.broadcast %cst_11 : bf16 to vector<32x17xbf16>
    %42 = vector.extract_strided_slice %33 {offsets = [0, 0], sizes = [32, 239], strides = [1, 1]} : vector<32x256xbf16> to vector<32x239xbf16>
    %43 = tpu.concatenate %41, %42 in 1 : vector<32x17xbf16>, vector<32x239xbf16> -> vector<32x256xbf16>
    %c0_12 = arith.constant 0 : index
    %c0_13 = arith.constant 0 : index
    %c0_14 = arith.constant 0 : index
    %44 = vector.load %arg4[%c0_12, %c0_13, %c0_14] : memref<9x1x32xbf16, #tpu.memory_space<vmem>>, vector<1x1x32xbf16>
    %45 = vector.shape_cast %44 : vector<1x1x32xbf16> to vector<1x32xbf16>
    %cst_15 = arith.constant dense<0.000000e+00> : vector<1x256xf32>
    %46 = tpu.matmul %45, %43, %cst_15 {dimension_numbers = #tpu.dot_dimension_numbers<[1], [0], [0], [1], [0, 0, 1, 1], [], []>} : vector<1x32xbf16>, vector<32x256xbf16>, vector<1x256xf32> -> vector<1x256xf32>
    %cst_16 = arith.constant 0.000000e+00 : bf16
    %47 = vector.broadcast %cst_16 : bf16 to vector<32x16xbf16>
    %48 = vector.extract_strided_slice %34 {offsets = [0, 0], sizes = [32, 240], strides = [1, 1]} : vector<32x256xbf16> to vector<32x240xbf16>
    %49 = tpu.concatenate %47, %48 in 1 : vector<32x16xbf16>, vector<32x240xbf16> -> vector<32x256xbf16>
    %c1 = arith.constant 1 : index
    %c0_17 = arith.constant 0 : index
    %c0_18 = arith.constant 0 : index
    %50 = vector.load %arg4[%c1, %c0_17, %c0_18] : memref<9x1x32xbf16, #tpu.memory_space<vmem>>, vector<1x1x32xbf16>
    %51 = vector.shape_cast %50 : vector<1x1x32xbf16> to vector<1x32xbf16>
    %cst_19 = arith.constant dense<0.000000e+00> : vector<1x256xf32>
    %52 = tpu.matmul %51, %49, %cst_19 {dimension_numbers = #tpu.dot_dimension_numbers<[1], [0], [0], [1], [0, 0, 1, 1], [], []>} : vector<1x32xbf16>, vector<32x256xbf16>, vector<1x256xf32> -> vector<1x256xf32>
    %53 = arith.addf %46, %52 : vector<1x256xf32>
    %cst_20 = arith.constant 0.000000e+00 : bf16
    %54 = vector.broadcast %cst_20 : bf16 to vector<32x15xbf16>
    %55 = vector.extract_strided_slice %40 {offsets = [0, 0], sizes = [32, 241], strides = [1, 1]} : vector<32x256xbf16> to vector<32x241xbf16>
    %56 = tpu.concatenate %54, %55 in 1 : vector<32x15xbf16>, vector<32x241xbf16> -> vector<32x256xbf16>
    %c2 = arith.constant 2 : index
    %c0_21 = arith.constant 0 : index
    %c0_22 = arith.constant 0 : index
    %57 = vector.load %arg4[%c2, %c0_21, %c0_22] : memref<9x1x32xbf16, #tpu.memory_space<vmem>>, vector<1x1x32xbf16>
    %58 = vector.shape_cast %57 : vector<1x1x32xbf16> to vector<1x32xbf16>
    %cst_23 = arith.constant dense<0.000000e+00> : vector<1x256xf32>
    %59 = tpu.matmul %58, %56, %cst_23 {dimension_numbers = #tpu.dot_dimension_numbers<[1], [0], [0], [1], [0, 0, 1, 1], [], []>} : vector<1x32xbf16>, vector<32x256xbf16>, vector<1x256xf32> -> vector<1x256xf32>
    %60 = arith.addf %53, %59 : vector<1x256xf32>
    %cst_24 = arith.constant 0.000000e+00 : bf16
    %61 = vector.broadcast %cst_24 : bf16 to vector<32x1xbf16>
    %62 = vector.extract_strided_slice %33 {offsets = [0, 0], sizes = [32, 255], strides = [1, 1]} : vector<32x256xbf16> to vector<32x255xbf16>
    %63 = tpu.concatenate %61, %62 in 1 : vector<32x1xbf16>, vector<32x255xbf16> -> vector<32x256xbf16>
    %c3 = arith.constant 3 : index
    %c0_25 = arith.constant 0 : index
    %c0_26 = arith.constant 0 : index
    %64 = vector.load %arg4[%c3, %c0_25, %c0_26] : memref<9x1x32xbf16, #tpu.memory_space<vmem>>, vector<1x1x32xbf16>
    %65 = vector.shape_cast %64 : vector<1x1x32xbf16> to vector<1x32xbf16>
    %cst_27 = arith.constant dense<0.000000e+00> : vector<1x256xf32>
    %66 = tpu.matmul %65, %63, %cst_27 {dimension_numbers = #tpu.dot_dimension_numbers<[1], [0], [0], [1], [0, 0, 1, 1], [], []>} : vector<1x32xbf16>, vector<32x256xbf16>, vector<1x256xf32> -> vector<1x256xf32>
    %67 = arith.addf %60, %66 : vector<1x256xf32>
    %c4 = arith.constant 4 : index
    %c0_28 = arith.constant 0 : index
    %c0_29 = arith.constant 0 : index
    %68 = vector.load %arg4[%c4, %c0_28, %c0_29] : memref<9x1x32xbf16, #tpu.memory_space<vmem>>, vector<1x1x32xbf16>
    %69 = vector.shape_cast %68 : vector<1x1x32xbf16> to vector<1x32xbf16>
    %cst_30 = arith.constant dense<0.000000e+00> : vector<1x256xf32>
    %70 = tpu.matmul %69, %34, %cst_30 {dimension_numbers = #tpu.dot_dimension_numbers<[1], [0], [0], [1], [0, 0, 1, 1], [], []>} : vector<1x32xbf16>, vector<32x256xbf16>, vector<1x256xf32> -> vector<1x256xf32>
    %71 = arith.addf %67, %70 : vector<1x256xf32>
    %72 = vector.extract_strided_slice %40 {offsets = [0, 1], sizes = [32, 255], strides = [1, 1]} : vector<32x256xbf16> to vector<32x255xbf16>
    %cst_31 = arith.constant 0.000000e+00 : bf16
    %73 = vector.broadcast %cst_31 : bf16 to vector<32x1xbf16>
    %74 = tpu.concatenate %72, %73 in 1 : vector<32x255xbf16>, vector<32x1xbf16> -> vector<32x256xbf16>
    %c5 = arith.constant 5 : index
    %c0_32 = arith.constant 0 : index
    %c0_33 = arith.constant 0 : index
    %75 = vector.load %arg4[%c5, %c0_32, %c0_33] : memref<9x1x32xbf16, #tpu.memory_space<vmem>>, vector<1x1x32xbf16>
    %76 = vector.shape_cast %75 : vector<1x1x32xbf16> to vector<1x32xbf16>
    %cst_34 = arith.constant dense<0.000000e+00> : vector<1x256xf32>
    %77 = tpu.matmul %76, %74, %cst_34 {dimension_numbers = #tpu.dot_dimension_numbers<[1], [0], [0], [1], [0, 0, 1, 1], [], []>} : vector<1x32xbf16>, vector<32x256xbf16>, vector<1x256xf32> -> vector<1x256xf32>
    %78 = arith.addf %71, %77 : vector<1x256xf32>
    %79 = vector.extract_strided_slice %33 {offsets = [0, 15], sizes = [32, 241], strides = [1, 1]} : vector<32x256xbf16> to vector<32x241xbf16>
    %cst_35 = arith.constant 0.000000e+00 : bf16
    %80 = vector.broadcast %cst_35 : bf16 to vector<32x15xbf16>
    %81 = tpu.concatenate %79, %80 in 1 : vector<32x241xbf16>, vector<32x15xbf16> -> vector<32x256xbf16>
    %c6 = arith.constant 6 : index
    %c0_36 = arith.constant 0 : index
    %c0_37 = arith.constant 0 : index
    %82 = vector.load %arg4[%c6, %c0_36, %c0_37] : memref<9x1x32xbf16, #tpu.memory_space<vmem>>, vector<1x1x32xbf16>
    %83 = vector.shape_cast %82 : vector<1x1x32xbf16> to vector<1x32xbf16>
    %cst_38 = arith.constant dense<0.000000e+00> : vector<1x256xf32>
    %84 = tpu.matmul %83, %81, %cst_38 {dimension_numbers = #tpu.dot_dimension_numbers<[1], [0], [0], [1], [0, 0, 1, 1], [], []>} : vector<1x32xbf16>, vector<32x256xbf16>, vector<1x256xf32> -> vector<1x256xf32>
    %85 = arith.addf %78, %84 : vector<1x256xf32>
    %86 = vector.extract_strided_slice %34 {offsets = [0, 16], sizes = [32, 240], strides = [1, 1]} : vector<32x256xbf16> to vector<32x240xbf16>
    %cst_39 = arith.constant 0.000000e+00 : bf16
    %87 = vector.broadcast %cst_39 : bf16 to vector<32x16xbf16>
    %88 = tpu.concatenate %86, %87 in 1 : vector<32x240xbf16>, vector<32x16xbf16> -> vector<32x256xbf16>
    %c7 = arith.constant 7 : index
    %c0_40 = arith.constant 0 : index
    %c0_41 = arith.constant 0 : index
    %89 = vector.load %arg4[%c7, %c0_40, %c0_41] : memref<9x1x32xbf16, #tpu.memory_space<vmem>>, vector<1x1x32xbf16>
    %90 = vector.shape_cast %89 : vector<1x1x32xbf16> to vector<1x32xbf16>
    %cst_42 = arith.constant dense<0.000000e+00> : vector<1x256xf32>
    %91 = tpu.matmul %90, %88, %cst_42 {dimension_numbers = #tpu.dot_dimension_numbers<[1], [0], [0], [1], [0, 0, 1, 1], [], []>} : vector<1x32xbf16>, vector<32x256xbf16>, vector<1x256xf32> -> vector<1x256xf32>
    %92 = arith.addf %85, %91 : vector<1x256xf32>
    %93 = vector.extract_strided_slice %40 {offsets = [0, 17], sizes = [32, 239], strides = [1, 1]} : vector<32x256xbf16> to vector<32x239xbf16>
    %cst_43 = arith.constant 0.000000e+00 : bf16
    %94 = vector.broadcast %cst_43 : bf16 to vector<32x17xbf16>
    %95 = tpu.concatenate %93, %94 in 1 : vector<32x239xbf16>, vector<32x17xbf16> -> vector<32x256xbf16>
    %c8 = arith.constant 8 : index
    %c0_44 = arith.constant 0 : index
    %c0_45 = arith.constant 0 : index
    %96 = vector.load %arg4[%c8, %c0_44, %c0_45] : memref<9x1x32xbf16, #tpu.memory_space<vmem>>, vector<1x1x32xbf16>
    %97 = vector.shape_cast %96 : vector<1x1x32xbf16> to vector<1x32xbf16>
    %cst_46 = arith.constant dense<0.000000e+00> : vector<1x256xf32>
    %98 = tpu.matmul %97, %95, %cst_46 {dimension_numbers = #tpu.dot_dimension_numbers<[1], [0], [0], [1], [0, 0, 1, 1], [], []>} : vector<1x32xbf16>, vector<32x256xbf16>, vector<1x256xf32> -> vector<1x256xf32>
    %99 = arith.addf %92, %98 : vector<1x256xf32>
    %c0_47 = arith.constant 0 : index
    %c0_48 = arith.constant 0 : index
    %100 = vector.load %arg5[%c0_47, %c0_48] : memref<1x1xf32, #tpu.memory_space<vmem>>, vector<1x1xf32>
    %101 = vector.broadcast %100 : vector<1x1xf32> to vector<1x256xf32>
    %102 = arith.addf %99, %101 : vector<1x256xf32>
    %103 = arith.negf %102 : vector<1x256xf32>
    %104 = math.exp %103 : vector<1x256xf32>
    %cst_49 = arith.constant 1.000000e+00 : f32
    %105 = vector.broadcast %cst_49 : f32 to vector<1x256xf32>
    %106 = arith.addf %105, %104 : vector<1x256xf32>
    %107 = arith.divf %105, %106 : vector<1x256xf32>
    %c0_50 = arith.constant 0 : index
    %c0_51 = arith.constant 0 : index
    %c0_52 = arith.constant 0 : index
    %108 = vector.load %arg6[%c0_50, %c0_51, %c0_52] : memref<1x1x256xf32, #tpu.memory_space<vmem>>, vector<1x1x256xf32>
    %109 = vector.shape_cast %108 : vector<1x1x256xf32> to vector<1x256xf32>
    %110 = vector.shape_cast %107 : vector<1x256xf32> to vector<1x1x256xf32>
    tpu.vector_store %arg6[%c0_50, %c0_51, %c0_52], %110 {strides = array<i32>} : memref<1x1x256xf32, #tpu.memory_space<vmem>>, vector<1x1x256xf32>,
    return
  }
  func.func @transform_0(%arg0: i32) -> (i32, i32) {
    %c0_i32 = arith.constant 0 : i32
    %c0_i32_0 = arith.constant 0 : i32
    %c0_i32_1 = arith.constant 0 : i32
    return %c0_i32, %c0_i32_0 : i32, i32
  }
  func.func @transform_1(%arg0: i32) -> (i32, i32) {
    %c0_i32 = arith.constant 0 : i32
    %c0_i32_0 = arith.constant 0 : i32
    %c0_i32_1 = arith.constant 0 : i32
    return %c0_i32, %c0_i32_0 : i32, i32
  }
  func.func @transform_2(%arg0: i32) -> (i32, i32, i32) {
    %c0_i32 = arith.constant 0 : i32
    %c0_i32_0 = arith.constant 0 : i32
    %c0_i32_1 = arith.constant 0 : i32
    return %arg0, %c0_i32, %c0_i32_0 : i32, i32, i32
  }
  func.func @transform_3(%arg0: i32) -> (i32, i32, i32) {
    %c0_i32 = arith.constant 0 : i32
    %c0_i32_0 = arith.constant 0 : i32
    %c0_i32_1 = arith.constant 0 : i32
    %c0_i32_2 = arith.constant 0 : i32
    return %c0_i32, %c0_i32_0, %c0_i32_1 : i32, i32, i32
  }
  func.func @transform_4(%arg0: i32) -> (i32, i32) {
    %c0_i32 = arith.constant 0 : i32
    %c0_i32_0 = arith.constant 0 : i32
    %c0_i32_1 = arith.constant 0 : i32
    return %c0_i32, %c0_i32_0 : i32, i32
  }
  func.func @transform_5(%arg0: i32) -> (i32, i32, i32) {
    %c0_i32 = arith.constant 0 : i32
    %c0_i32_0 = arith.constant 0 : i32
    %c0_i32_1 = arith.constant 0 : i32
    return %arg0, %c0_i32, %c0_i32_0 : i32, i32, i32
  }
}

module attributes {stable_mosaic.version = 11 : i64} {
  func.func @_conv3x3_kernel(%arg0: i32, %arg1: memref<8x1xf32, #tpu.memory_space<vmem>>, %arg2: memref<8x1xf32, #tpu.memory_space<vmem>>, %arg3: memref<1x8x256xf32, #tpu.memory_space<vmem>>, %arg4: memref<9x32x8xbf16, #tpu.memory_space<vmem>>, %arg5: memref<32x1xf32, #tpu.memory_space<vmem>>, %arg6: memref<1x32x256xf32, #tpu.memory_space<vmem>>, %arg7: memref<32x1xf32, #tpu.memory_space<vmem>>, %arg8: memref<32x1xf32, #tpu.memory_space<vmem>>) attributes {dimension_semantics = [#tpu.dimension_semantics<arbitrary>], iteration_bounds = array<i64: 2>, scalar_prefetch = 0 : i64, scratch_operands = 1 : i64, tpu.core_type = #tpu.core_type<tc>, window_params = [{pipeline_mode = #tpu.pipeline_mode<synchronous>, transform_indices = @transform_0, window_bounds = array<i64: 8, 1>}, {pipeline_mode = #tpu.pipeline_mode<synchronous>, transform_indices = @transform_1, window_bounds = array<i64: 8, 1>}, {transform_indices = @transform_2, window_bounds = array<i64: 1, 8, 256>}, {pipeline_mode = #tpu.pipeline_mode<synchronous>, transform_indices = @transform_3, window_bounds = array<i64: 9, 32, 8>}, {pipeline_mode = #tpu.pipeline_mode<synchronous>, transform_indices = @transform_4, window_bounds = array<i64: 32, 1>}, {transform_indices = @transform_5, window_bounds = array<i64: 1, 32, 256>}, {pipeline_mode = #tpu.pipeline_mode<synchronous>, transform_indices = @transform_6, window_bounds = array<i64: 32, 1>}]} {
    %c0 = arith.constant 0 : index
    %c0_0 = arith.constant 0 : index
    %c0_1 = arith.constant 0 : index
    %0 = vector.load %arg3[%c0, %c0_0, %c0_1] : memref<1x8x256xf32, #tpu.memory_space<vmem>>, vector<1x8x256xf32>
    %1 = vector.shape_cast %0 : vector<1x8x256xf32> to vector<8x256xf32>
    %c0_2 = arith.constant 0 : index
    %c0_3 = arith.constant 0 : index
    %2 = vector.load %arg1[%c0_2, %c0_3] : memref<8x1xf32, #tpu.memory_space<vmem>>, vector<8x1xf32>
    %3 = vector.broadcast %2 : vector<8x1xf32> to vector<8x256xf32>
    %4 = arith.mulf %1, %3 : vector<8x256xf32>
    %c0_4 = arith.constant 0 : index
    %c0_5 = arith.constant 0 : index
    %5 = vector.load %arg2[%c0_4, %c0_5] : memref<8x1xf32, #tpu.memory_space<vmem>>, vector<8x1xf32>
    %6 = vector.broadcast %5 : vector<8x1xf32> to vector<8x256xf32>
    %7 = arith.addf %4, %6 : vector<8x256xf32>
    %cst = arith.constant 0.000000e+00 : f32
    %8 = vector.broadcast %cst : f32 to vector<8x256xf32>
    %9 = arith.maximumf %7, %8 : vector<8x256xf32>
    %10 = tpu.iota {dimensions = array<i32: 1>} : vector<1x256xi32>
    %c16_i32 = arith.constant 16 : i32
    %c0_i32 = arith.constant 0 : i32
    %11 = arith.cmpi eq, %c16_i32, %c0_i32 : i32
    %c1_i32 = arith.constant 1 : i32
    %12 = arith.select %11, %c1_i32, %c16_i32 : i32
    %13 = vector.broadcast %12 : i32 to vector<1x256xi32>
    %14 = arith.remsi %10, %13 : vector<1x256xi32>
    %c0_i32_6 = arith.constant 0 : i32
    %15 = vector.broadcast %c0_i32_6 : i32 to vector<1x256xi32>
    %16 = arith.cmpi ne, %14, %15 : vector<1x256xi32>
    %c0_i32_7 = arith.constant 0 : i32
    %17 = vector.broadcast %c0_i32_7 : i32 to vector<1x256xi32>
    %18 = arith.cmpi slt, %14, %17 : vector<1x256xi32>
    %c0_i32_8 = arith.constant 0 : i32
    %19 = arith.cmpi slt, %12, %c0_i32_8 : i32
    %20 = vector.broadcast %19 : i1 to vector<1x256xi1>
    %21 = vector.broadcast %20 : vector<1x256xi1> to vector<1x256xi1>
    %22 = arith.xori %18, %21 : vector<1x256xi1>
    %23 = arith.andi %22, %16 : vector<1x256xi1>
    %24 = vector.broadcast %12 : i32 to vector<1x256xi32>
    %25 = arith.addi %14, %24 : vector<1x256xi32>
    %26 = arith.select %23, %25, %14 : vector<1x256xi1>, vector<1x256xi32>
    %cst_9 = arith.constant 0.000000e+00 : f32
    %27 = vector.broadcast %cst_9 : f32 to vector<8x256xf32>
    %c15_i32 = arith.constant 15 : i32
    %28 = vector.broadcast %c15_i32 : i32 to vector<1x256xi32>
    %29 = arith.cmpi ne, %26, %28 : vector<1x256xi32>
    %30 = vector.shape_cast %29 : vector<1x256xi1> to vector<1x256xi1>
    %31 = vector.broadcast %30 : vector<1x256xi1> to vector<8x256xi1>
    %32 = arith.select %31, %9, %27 : vector<8x256xi1>, vector<8x256xf32>
    %33 = arith.truncf %32 : vector<8x256xf32> to vector<8x256xbf16>
    %34 = arith.truncf %9 : vector<8x256xf32> to vector<8x256xbf16>
    %c0_i32_10 = arith.constant 0 : i32
    %35 = vector.broadcast %c0_i32_10 : i32 to vector<1x256xi32>
    %36 = arith.cmpi ne, %26, %35 : vector<1x256xi32>
    %37 = vector.shape_cast %36 : vector<1x256xi1> to vector<1x256xi1>
    %38 = vector.broadcast %37 : vector<1x256xi1> to vector<8x256xi1>
    %39 = arith.select %38, %9, %27 : vector<8x256xi1>, vector<8x256xf32>
    %40 = arith.truncf %39 : vector<8x256xf32> to vector<8x256xbf16>
    %cst_11 = arith.constant 0.000000e+00 : bf16
    %41 = vector.broadcast %cst_11 : bf16 to vector<8x17xbf16>
    %42 = vector.extract_strided_slice %33 {offsets = [0, 0], sizes = [8, 239], strides = [1, 1]} : vector<8x256xbf16> to vector<8x239xbf16>
    %43 = tpu.concatenate %41, %42 in 1 : vector<8x17xbf16>, vector<8x239xbf16> -> vector<8x256xbf16>
    %c0_12 = arith.constant 0 : index
    %c0_13 = arith.constant 0 : index
    %c0_14 = arith.constant 0 : index
    %44 = vector.load %arg4[%c0_12, %c0_13, %c0_14] : memref<9x32x8xbf16, #tpu.memory_space<vmem>>, vector<1x32x8xbf16>
    %45 = vector.shape_cast %44 : vector<1x32x8xbf16> to vector<32x8xbf16>
    %cst_15 = arith.constant dense<0.000000e+00> : vector<32x256xf32>
    %46 = tpu.matmul %45, %43, %cst_15 {dimension_numbers = #tpu.dot_dimension_numbers<[1], [0], [0], [1], [0, 0, 1, 1], [], []>} : vector<32x8xbf16>, vector<8x256xbf16>, vector<32x256xf32> -> vector<32x256xf32>
    %cst_16 = arith.constant 0.000000e+00 : bf16
    %47 = vector.broadcast %cst_16 : bf16 to vector<8x16xbf16>
    %48 = vector.extract_strided_slice %34 {offsets = [0, 0], sizes = [8, 240], strides = [1, 1]} : vector<8x256xbf16> to vector<8x240xbf16>
    %49 = tpu.concatenate %47, %48 in 1 : vector<8x16xbf16>, vector<8x240xbf16> -> vector<8x256xbf16>
    %c1 = arith.constant 1 : index
    %c0_17 = arith.constant 0 : index
    %c0_18 = arith.constant 0 : index
    %50 = vector.load %arg4[%c1, %c0_17, %c0_18] : memref<9x32x8xbf16, #tpu.memory_space<vmem>>, vector<1x32x8xbf16>
    %51 = vector.shape_cast %50 : vector<1x32x8xbf16> to vector<32x8xbf16>
    %cst_19 = arith.constant dense<0.000000e+00> : vector<32x256xf32>
    %52 = tpu.matmul %51, %49, %cst_19 {dimension_numbers = #tpu.dot_dimension_numbers<[1], [0], [0], [1], [0, 0, 1, 1], [], []>} : vector<32x8xbf16>, vector<8x256xbf16>, vector<32x256xf32> -> vector<32x256xf32>
    %53 = arith.addf %46, %52 : vector<32x256xf32>
    %cst_20 = arith.constant 0.000000e+00 : bf16
    %54 = vector.broadcast %cst_20 : bf16 to vector<8x15xbf16>
    %55 = vector.extract_strided_slice %40 {offsets = [0, 0], sizes = [8, 241], strides = [1, 1]} : vector<8x256xbf16> to vector<8x241xbf16>
    %56 = tpu.concatenate %54, %55 in 1 : vector<8x15xbf16>, vector<8x241xbf16> -> vector<8x256xbf16>
    %c2 = arith.constant 2 : index
    %c0_21 = arith.constant 0 : index
    %c0_22 = arith.constant 0 : index
    %57 = vector.load %arg4[%c2, %c0_21, %c0_22] : memref<9x32x8xbf16, #tpu.memory_space<vmem>>, vector<1x32x8xbf16>
    %58 = vector.shape_cast %57 : vector<1x32x8xbf16> to vector<32x8xbf16>
    %cst_23 = arith.constant dense<0.000000e+00> : vector<32x256xf32>
    %59 = tpu.matmul %58, %56, %cst_23 {dimension_numbers = #tpu.dot_dimension_numbers<[1], [0], [0], [1], [0, 0, 1, 1], [], []>} : vector<32x8xbf16>, vector<8x256xbf16>, vector<32x256xf32> -> vector<32x256xf32>
    %60 = arith.addf %53, %59 : vector<32x256xf32>
    %cst_24 = arith.constant 0.000000e+00 : bf16
    %61 = vector.broadcast %cst_24 : bf16 to vector<8x1xbf16>
    %62 = vector.extract_strided_slice %33 {offsets = [0, 0], sizes = [8, 255], strides = [1, 1]} : vector<8x256xbf16> to vector<8x255xbf16>
    %63 = tpu.concatenate %61, %62 in 1 : vector<8x1xbf16>, vector<8x255xbf16> -> vector<8x256xbf16>
    %c3 = arith.constant 3 : index
    %c0_25 = arith.constant 0 : index
    %c0_26 = arith.constant 0 : index
    %64 = vector.load %arg4[%c3, %c0_25, %c0_26] : memref<9x32x8xbf16, #tpu.memory_space<vmem>>, vector<1x32x8xbf16>
    %65 = vector.shape_cast %64 : vector<1x32x8xbf16> to vector<32x8xbf16>
    %cst_27 = arith.constant dense<0.000000e+00> : vector<32x256xf32>
    %66 = tpu.matmul %65, %63, %cst_27 {dimension_numbers = #tpu.dot_dimension_numbers<[1], [0], [0], [1], [0, 0, 1, 1], [], []>} : vector<32x8xbf16>, vector<8x256xbf16>, vector<32x256xf32> -> vector<32x256xf32>
    %67 = arith.addf %60, %66 : vector<32x256xf32>
    %c4 = arith.constant 4 : index
    %c0_28 = arith.constant 0 : index
    %c0_29 = arith.constant 0 : index
    %68 = vector.load %arg4[%c4, %c0_28, %c0_29] : memref<9x32x8xbf16, #tpu.memory_space<vmem>>, vector<1x32x8xbf16>
    %69 = vector.shape_cast %68 : vector<1x32x8xbf16> to vector<32x8xbf16>
    %cst_30 = arith.constant dense<0.000000e+00> : vector<32x256xf32>
    %70 = tpu.matmul %69, %34, %cst_30 {dimension_numbers = #tpu.dot_dimension_numbers<[1], [0], [0], [1], [0, 0, 1, 1], [], []>} : vector<32x8xbf16>, vector<8x256xbf16>, vector<32x256xf32> -> vector<32x256xf32>
    %71 = arith.addf %67, %70 : vector<32x256xf32>
    %72 = vector.extract_strided_slice %40 {offsets = [0, 1], sizes = [8, 255], strides = [1, 1]} : vector<8x256xbf16> to vector<8x255xbf16>
    %cst_31 = arith.constant 0.000000e+00 : bf16
    %73 = vector.broadcast %cst_31 : bf16 to vector<8x1xbf16>
    %74 = tpu.concatenate %72, %73 in 1 : vector<8x255xbf16>, vector<8x1xbf16> -> vector<8x256xbf16>
    %c5 = arith.constant 5 : index
    %c0_32 = arith.constant 0 : index
    %c0_33 = arith.constant 0 : index
    %75 = vector.load %arg4[%c5, %c0_32, %c0_33] : memref<9x32x8xbf16, #tpu.memory_space<vmem>>, vector<1x32x8xbf16>
    %76 = vector.shape_cast %75 : vector<1x32x8xbf16> to vector<32x8xbf16>
    %cst_34 = arith.constant dense<0.000000e+00> : vector<32x256xf32>
    %77 = tpu.matmul %76, %74, %cst_34 {dimension_numbers = #tpu.dot_dimension_numbers<[1], [0], [0], [1], [0, 0, 1, 1], [], []>} : vector<32x8xbf16>, vector<8x256xbf16>, vector<32x256xf32> -> vector<32x256xf32>
    %78 = arith.addf %71, %77 : vector<32x256xf32>
    %79 = vector.extract_strided_slice %33 {offsets = [0, 15], sizes = [8, 241], strides = [1, 1]} : vector<8x256xbf16> to vector<8x241xbf16>
    %cst_35 = arith.constant 0.000000e+00 : bf16
    %80 = vector.broadcast %cst_35 : bf16 to vector<8x15xbf16>
    %81 = tpu.concatenate %79, %80 in 1 : vector<8x241xbf16>, vector<8x15xbf16> -> vector<8x256xbf16>
    %c6 = arith.constant 6 : index
    %c0_36 = arith.constant 0 : index
    %c0_37 = arith.constant 0 : index
    %82 = vector.load %arg4[%c6, %c0_36, %c0_37] : memref<9x32x8xbf16, #tpu.memory_space<vmem>>, vector<1x32x8xbf16>
    %83 = vector.shape_cast %82 : vector<1x32x8xbf16> to vector<32x8xbf16>
    %cst_38 = arith.constant dense<0.000000e+00> : vector<32x256xf32>
    %84 = tpu.matmul %83, %81, %cst_38 {dimension_numbers = #tpu.dot_dimension_numbers<[1], [0], [0], [1], [0, 0, 1, 1], [], []>} : vector<32x8xbf16>, vector<8x256xbf16>, vector<32x256xf32> -> vector<32x256xf32>
    %85 = arith.addf %78, %84 : vector<32x256xf32>
    %86 = vector.extract_strided_slice %34 {offsets = [0, 16], sizes = [8, 240], strides = [1, 1]} : vector<8x256xbf16> to vector<8x240xbf16>
    %cst_39 = arith.constant 0.000000e+00 : bf16
    %87 = vector.broadcast %cst_39 : bf16 to vector<8x16xbf16>
    %88 = tpu.concatenate %86, %87 in 1 : vector<8x240xbf16>, vector<8x16xbf16> -> vector<8x256xbf16>
    %c7 = arith.constant 7 : index
    %c0_40 = arith.constant 0 : index
    %c0_41 = arith.constant 0 : index
    %89 = vector.load %arg4[%c7, %c0_40, %c0_41] : memref<9x32x8xbf16, #tpu.memory_space<vmem>>, vector<1x32x8xbf16>
    %90 = vector.shape_cast %89 : vector<1x32x8xbf16> to vector<32x8xbf16>
    %cst_42 = arith.constant dense<0.000000e+00> : vector<32x256xf32>
    %91 = tpu.matmul %90, %88, %cst_42 {dimension_numbers = #tpu.dot_dimension_numbers<[1], [0], [0], [1], [0, 0, 1, 1], [], []>} : vector<32x8xbf16>, vector<8x256xbf16>, vector<32x256xf32> -> vector<32x256xf32>
    %92 = arith.addf %85, %91 : vector<32x256xf32>
    %93 = vector.extract_strided_slice %40 {offsets = [0, 17], sizes = [8, 239], strides = [1, 1]} : vector<8x256xbf16> to vector<8x239xbf16>
    %cst_43 = arith.constant 0.000000e+00 : bf16
    %94 = vector.broadcast %cst_43 : bf16 to vector<8x17xbf16>
    %95 = tpu.concatenate %93, %94 in 1 : vector<8x239xbf16>, vector<8x17xbf16> -> vector<8x256xbf16>
    %c8 = arith.constant 8 : index
    %c0_44 = arith.constant 0 : index
    %c0_45 = arith.constant 0 : index
    %96 = vector.load %arg4[%c8, %c0_44, %c0_45] : memref<9x32x8xbf16, #tpu.memory_space<vmem>>, vector<1x32x8xbf16>
    %97 = vector.shape_cast %96 : vector<1x32x8xbf16> to vector<32x8xbf16>
    %cst_46 = arith.constant dense<0.000000e+00> : vector<32x256xf32>
    %98 = tpu.matmul %97, %95, %cst_46 {dimension_numbers = #tpu.dot_dimension_numbers<[1], [0], [0], [1], [0, 0, 1, 1], [], []>} : vector<32x8xbf16>, vector<8x256xbf16>, vector<32x256xf32> -> vector<32x256xf32>
    %99 = arith.addf %92, %98 : vector<32x256xf32>
    %c0_47 = arith.constant 0 : index
    %c0_48 = arith.constant 0 : index
    %100 = vector.load %arg5[%c0_47, %c0_48] : memref<32x1xf32, #tpu.memory_space<vmem>>, vector<32x1xf32>
    %101 = vector.broadcast %100 : vector<32x1xf32> to vector<32x256xf32>
    %102 = arith.addf %99, %101 : vector<32x256xf32>
    %c0_i32_49 = arith.constant 0 : i32
    %103 = arith.cmpi eq, %arg0, %c0_i32_49 : i32
    %104 = arith.extui %103 : i1 to i32
    %c0_i32_50 = arith.constant 0 : i32
    %105 = arith.cmpi ne, %104, %c0_i32_50 : i32
    scf.if %105 {
      %cst_61 = arith.constant 0.000000e+00 : f32
      %117 = vector.broadcast %cst_61 : f32 to vector<32x1xf32>
      %c0_62 = arith.constant 0 : index
      %c0_63 = arith.constant 0 : index
      %118 = vector.load %arg8[%c0_62, %c0_63] : memref<32x1xf32, #tpu.memory_space<vmem>>, vector<32x1xf32>
      tpu.vector_store %arg8[%c0_62, %c0_63], %117 {strides = array<i32>} : memref<32x1xf32, #tpu.memory_space<vmem>>, vector<32x1xf32>,
    } else {
    }
    %c0_51 = arith.constant 0 : index
    %c0_52 = arith.constant 0 : index
    %106 = vector.load %arg8[%c0_51, %c0_52] : memref<32x1xf32, #tpu.memory_space<vmem>>, vector<32x1xf32>
    %cst_53 = arith.constant dense<0.000000e+00> : vector<32xf32>
    %107 = vector.multi_reduction <add>, %102, %cst_53 [1] : vector<32x256xf32> to vector<32xf32>
    %108 = vector.shape_cast %107 : vector<32xf32> to vector<32x1xf32>
    %109 = arith.addf %106, %108 : vector<32x1xf32>
    %c0_54 = arith.constant 0 : index
    %c0_55 = arith.constant 0 : index
    %110 = vector.load %arg8[%c0_54, %c0_55] : memref<32x1xf32, #tpu.memory_space<vmem>>, vector<32x1xf32>
    tpu.vector_store %arg8[%c0_54, %c0_55], %109 {strides = array<i32>} : memref<32x1xf32, #tpu.memory_space<vmem>>, vector<32x1xf32>,
    %c1_i32_56 = arith.constant 1 : i32
    %111 = arith.cmpi eq, %arg0, %c1_i32_56 : i32
    %112 = arith.extui %111 : i1 to i32
    %c0_i32_57 = arith.constant 0 : i32
    %113 = arith.cmpi ne, %112, %c0_i32_57 : i32
    scf.if %113 {
      %c0_61 = arith.constant 0 : index
      %c0_62 = arith.constant 0 : index
      %117 = vector.load %arg8[%c0_61, %c0_62] : memref<32x1xf32, #tpu.memory_space<vmem>>, vector<32x1xf32>
      %c0_63 = arith.constant 0 : index
      %c0_64 = arith.constant 0 : index
      %118 = vector.load %arg7[%c0_63, %c0_64] : memref<32x1xf32, #tpu.memory_space<vmem>>, vector<32x1xf32>
      tpu.vector_store %arg7[%c0_63, %c0_64], %117 {strides = array<i32>} : memref<32x1xf32, #tpu.memory_space<vmem>>, vector<32x1xf32>,
    } else {
    }
    %c0_58 = arith.constant 0 : index
    %c0_59 = arith.constant 0 : index
    %c0_60 = arith.constant 0 : index
    %114 = vector.load %arg6[%c0_58, %c0_59, %c0_60] : memref<1x32x256xf32, #tpu.memory_space<vmem>>, vector<1x32x256xf32>
    %115 = vector.shape_cast %114 : vector<1x32x256xf32> to vector<32x256xf32>
    %116 = vector.shape_cast %102 : vector<32x256xf32> to vector<1x32x256xf32>
    tpu.vector_store %arg6[%c0_58, %c0_59, %c0_60], %116 {strides = array<i32>} : memref<1x32x256xf32, #tpu.memory_space<vmem>>, vector<1x32x256xf32>,
    return
  }
  func.func @transform_0(%arg0: i32) -> (i32, i32) {
    %c0_i32 = arith.constant 0 : i32
    %c0_i32_0 = arith.constant 0 : i32
    %c0_i32_1 = arith.constant 0 : i32
    return %c0_i32, %c0_i32_0 : i32, i32
  }
  func.func @transform_1(%arg0: i32) -> (i32, i32) {
    %c0_i32 = arith.constant 0 : i32
    %c0_i32_0 = arith.constant 0 : i32
    %c0_i32_1 = arith.constant 0 : i32
    return %c0_i32, %c0_i32_0 : i32, i32
  }
  func.func @transform_2(%arg0: i32) -> (i32, i32, i32) {
    %c0_i32 = arith.constant 0 : i32
    %c0_i32_0 = arith.constant 0 : i32
    %c0_i32_1 = arith.constant 0 : i32
    return %arg0, %c0_i32, %c0_i32_0 : i32, i32, i32
  }
  func.func @transform_3(%arg0: i32) -> (i32, i32, i32) {
    %c0_i32 = arith.constant 0 : i32
    %c0_i32_0 = arith.constant 0 : i32
    %c0_i32_1 = arith.constant 0 : i32
    %c0_i32_2 = arith.constant 0 : i32
    return %c0_i32, %c0_i32_0, %c0_i32_1 : i32, i32, i32
  }
  func.func @transform_4(%arg0: i32) -> (i32, i32) {
    %c0_i32 = arith.constant 0 : i32
    %c0_i32_0 = arith.constant 0 : i32
    %c0_i32_1 = arith.constant 0 : i32
    return %c0_i32, %c0_i32_0 : i32, i32
  }
  func.func @transform_5(%arg0: i32) -> (i32, i32, i32) {
    %c0_i32 = arith.constant 0 : i32
    %c0_i32_0 = arith.constant 0 : i32
    %c0_i32_1 = arith.constant 0 : i32
    return %arg0, %c0_i32, %c0_i32_0 : i32, i32, i32
  }
  func.func @transform_6(%arg0: i32) -> (i32, i32) {
    %c0_i32 = arith.constant 0 : i32
    %c0_i32_0 = arith.constant 0 : i32
    %c0_i32_1 = arith.constant 0 : i32
    return %c0_i32, %c0_i32_0 : i32, i32
  }
}

module attributes {stable_mosaic.version = 11 : i64} {
  func.func @_conv3x3_kernel(%arg0: i32, %arg1: memref<1x32x256xf32, #tpu.memory_space<vmem>>, %arg2: memref<9x32x32xbf16, #tpu.memory_space<vmem>>, %arg3: memref<32x1xf32, #tpu.memory_space<vmem>>, %arg4: memref<1x32x256xf32, #tpu.memory_space<vmem>>) attributes {dimension_semantics = [#tpu.dimension_semantics<parallel>], iteration_bounds = array<i64: 2>, scalar_prefetch = 0 : i64, scratch_operands = 0 : i64, tpu.core_type = #tpu.core_type<tc>, window_params = [{transform_indices = @transform_0, window_bounds = array<i64: 1, 32, 256>}, {pipeline_mode = #tpu.pipeline_mode<synchronous>, transform_indices = @transform_1, window_bounds = array<i64: 9, 32, 32>}, {pipeline_mode = #tpu.pipeline_mode<synchronous>, transform_indices = @transform_2, window_bounds = array<i64: 32, 1>}, {transform_indices = @transform_3, window_bounds = array<i64: 1, 32, 256>}]} {
    %c0 = arith.constant 0 : index
    %c0_0 = arith.constant 0 : index
    %c0_1 = arith.constant 0 : index
    %0 = vector.load %arg1[%c0, %c0_0, %c0_1] : memref<1x32x256xf32, #tpu.memory_space<vmem>>, vector<1x32x256xf32>
    %1 = vector.shape_cast %0 : vector<1x32x256xf32> to vector<32x256xf32>
    %2 = tpu.iota {dimensions = array<i32: 1>} : vector<1x256xi32>
    %c16_i32 = arith.constant 16 : i32
    %c0_i32 = arith.constant 0 : i32
    %3 = arith.cmpi eq, %c16_i32, %c0_i32 : i32
    %c1_i32 = arith.constant 1 : i32
    %4 = arith.select %3, %c1_i32, %c16_i32 : i32
    %5 = vector.broadcast %4 : i32 to vector<1x256xi32>
    %6 = arith.remsi %2, %5 : vector<1x256xi32>
    %c0_i32_2 = arith.constant 0 : i32
    %7 = vector.broadcast %c0_i32_2 : i32 to vector<1x256xi32>
    %8 = arith.cmpi ne, %6, %7 : vector<1x256xi32>
    %c0_i32_3 = arith.constant 0 : i32
    %9 = vector.broadcast %c0_i32_3 : i32 to vector<1x256xi32>
    %10 = arith.cmpi slt, %6, %9 : vector<1x256xi32>
    %c0_i32_4 = arith.constant 0 : i32
    %11 = arith.cmpi slt, %4, %c0_i32_4 : i32
    %12 = vector.broadcast %11 : i1 to vector<1x256xi1>
    %13 = vector.broadcast %12 : vector<1x256xi1> to vector<1x256xi1>
    %14 = arith.xori %10, %13 : vector<1x256xi1>
    %15 = arith.andi %14, %8 : vector<1x256xi1>
    %16 = vector.broadcast %4 : i32 to vector<1x256xi32>
    %17 = arith.addi %6, %16 : vector<1x256xi32>
    %18 = arith.select %15, %17, %6 : vector<1x256xi1>, vector<1x256xi32>
    %cst = arith.constant 0.000000e+00 : f32
    %19 = vector.broadcast %cst : f32 to vector<32x256xf32>
    %c15_i32 = arith.constant 15 : i32
    %20 = vector.broadcast %c15_i32 : i32 to vector<1x256xi32>
    %21 = arith.cmpi ne, %18, %20 : vector<1x256xi32>
    %22 = vector.shape_cast %21 : vector<1x256xi1> to vector<1x256xi1>
    %23 = vector.broadcast %22 : vector<1x256xi1> to vector<32x256xi1>
    %24 = arith.select %23, %1, %19 : vector<32x256xi1>, vector<32x256xf32>
    %25 = arith.truncf %24 : vector<32x256xf32> to vector<32x256xbf16>
    %26 = arith.truncf %1 : vector<32x256xf32> to vector<32x256xbf16>
    %c0_i32_5 = arith.constant 0 : i32
    %27 = vector.broadcast %c0_i32_5 : i32 to vector<1x256xi32>
    %28 = arith.cmpi ne, %18, %27 : vector<1x256xi32>
    %29 = vector.shape_cast %28 : vector<1x256xi1> to vector<1x256xi1>
    %30 = vector.broadcast %29 : vector<1x256xi1> to vector<32x256xi1>
    %31 = arith.select %30, %1, %19 : vector<32x256xi1>, vector<32x256xf32>
    %32 = arith.truncf %31 : vector<32x256xf32> to vector<32x256xbf16>
    %cst_6 = arith.constant 0.000000e+00 : bf16
    %33 = vector.broadcast %cst_6 : bf16 to vector<32x17xbf16>
    %34 = vector.extract_strided_slice %25 {offsets = [0, 0], sizes = [32, 239], strides = [1, 1]} : vector<32x256xbf16> to vector<32x239xbf16>
    %35 = tpu.concatenate %33, %34 in 1 : vector<32x17xbf16>, vector<32x239xbf16> -> vector<32x256xbf16>
    %c0_7 = arith.constant 0 : index
    %c0_8 = arith.constant 0 : index
    %c0_9 = arith.constant 0 : index
    %36 = vector.load %arg2[%c0_7, %c0_8, %c0_9] : memref<9x32x32xbf16, #tpu.memory_space<vmem>>, vector<1x32x32xbf16>
    %37 = vector.shape_cast %36 : vector<1x32x32xbf16> to vector<32x32xbf16>
    %cst_10 = arith.constant dense<0.000000e+00> : vector<32x256xf32>
    %38 = tpu.matmul %37, %35, %cst_10 {dimension_numbers = #tpu.dot_dimension_numbers<[1], [0], [0], [1], [0, 0, 1, 1], [], []>} : vector<32x32xbf16>, vector<32x256xbf16>, vector<32x256xf32> -> vector<32x256xf32>
    %cst_11 = arith.constant 0.000000e+00 : bf16
    %39 = vector.broadcast %cst_11 : bf16 to vector<32x16xbf16>
    %40 = vector.extract_strided_slice %26 {offsets = [0, 0], sizes = [32, 240], strides = [1, 1]} : vector<32x256xbf16> to vector<32x240xbf16>
    %41 = tpu.concatenate %39, %40 in 1 : vector<32x16xbf16>, vector<32x240xbf16> -> vector<32x256xbf16>
    %c1 = arith.constant 1 : index
    %c0_12 = arith.constant 0 : index
    %c0_13 = arith.constant 0 : index
    %42 = vector.load %arg2[%c1, %c0_12, %c0_13] : memref<9x32x32xbf16, #tpu.memory_space<vmem>>, vector<1x32x32xbf16>
    %43 = vector.shape_cast %42 : vector<1x32x32xbf16> to vector<32x32xbf16>
    %cst_14 = arith.constant dense<0.000000e+00> : vector<32x256xf32>
    %44 = tpu.matmul %43, %41, %cst_14 {dimension_numbers = #tpu.dot_dimension_numbers<[1], [0], [0], [1], [0, 0, 1, 1], [], []>} : vector<32x32xbf16>, vector<32x256xbf16>, vector<32x256xf32> -> vector<32x256xf32>
    %45 = arith.addf %38, %44 : vector<32x256xf32>
    %cst_15 = arith.constant 0.000000e+00 : bf16
    %46 = vector.broadcast %cst_15 : bf16 to vector<32x15xbf16>
    %47 = vector.extract_strided_slice %32 {offsets = [0, 0], sizes = [32, 241], strides = [1, 1]} : vector<32x256xbf16> to vector<32x241xbf16>
    %48 = tpu.concatenate %46, %47 in 1 : vector<32x15xbf16>, vector<32x241xbf16> -> vector<32x256xbf16>
    %c2 = arith.constant 2 : index
    %c0_16 = arith.constant 0 : index
    %c0_17 = arith.constant 0 : index
    %49 = vector.load %arg2[%c2, %c0_16, %c0_17] : memref<9x32x32xbf16, #tpu.memory_space<vmem>>, vector<1x32x32xbf16>
    %50 = vector.shape_cast %49 : vector<1x32x32xbf16> to vector<32x32xbf16>
    %cst_18 = arith.constant dense<0.000000e+00> : vector<32x256xf32>
    %51 = tpu.matmul %50, %48, %cst_18 {dimension_numbers = #tpu.dot_dimension_numbers<[1], [0], [0], [1], [0, 0, 1, 1], [], []>} : vector<32x32xbf16>, vector<32x256xbf16>, vector<32x256xf32> -> vector<32x256xf32>
    %52 = arith.addf %45, %51 : vector<32x256xf32>
    %cst_19 = arith.constant 0.000000e+00 : bf16
    %53 = vector.broadcast %cst_19 : bf16 to vector<32x1xbf16>
    %54 = vector.extract_strided_slice %25 {offsets = [0, 0], sizes = [32, 255], strides = [1, 1]} : vector<32x256xbf16> to vector<32x255xbf16>
    %55 = tpu.concatenate %53, %54 in 1 : vector<32x1xbf16>, vector<32x255xbf16> -> vector<32x256xbf16>
    %c3 = arith.constant 3 : index
    %c0_20 = arith.constant 0 : index
    %c0_21 = arith.constant 0 : index
    %56 = vector.load %arg2[%c3, %c0_20, %c0_21] : memref<9x32x32xbf16, #tpu.memory_space<vmem>>, vector<1x32x32xbf16>
    %57 = vector.shape_cast %56 : vector<1x32x32xbf16> to vector<32x32xbf16>
    %cst_22 = arith.constant dense<0.000000e+00> : vector<32x256xf32>
    %58 = tpu.matmul %57, %55, %cst_22 {dimension_numbers = #tpu.dot_dimension_numbers<[1], [0], [0], [1], [0, 0, 1, 1], [], []>} : vector<32x32xbf16>, vector<32x256xbf16>, vector<32x256xf32> -> vector<32x256xf32>
    %59 = arith.addf %52, %58 : vector<32x256xf32>
    %c4 = arith.constant 4 : index
    %c0_23 = arith.constant 0 : index
    %c0_24 = arith.constant 0 : index
    %60 = vector.load %arg2[%c4, %c0_23, %c0_24] : memref<9x32x32xbf16, #tpu.memory_space<vmem>>, vector<1x32x32xbf16>
    %61 = vector.shape_cast %60 : vector<1x32x32xbf16> to vector<32x32xbf16>
    %cst_25 = arith.constant dense<0.000000e+00> : vector<32x256xf32>
    %62 = tpu.matmul %61, %26, %cst_25 {dimension_numbers = #tpu.dot_dimension_numbers<[1], [0], [0], [1], [0, 0, 1, 1], [], []>} : vector<32x32xbf16>, vector<32x256xbf16>, vector<32x256xf32> -> vector<32x256xf32>
    %63 = arith.addf %59, %62 : vector<32x256xf32>
    %64 = vector.extract_strided_slice %32 {offsets = [0, 1], sizes = [32, 255], strides = [1, 1]} : vector<32x256xbf16> to vector<32x255xbf16>
    %cst_26 = arith.constant 0.000000e+00 : bf16
    %65 = vector.broadcast %cst_26 : bf16 to vector<32x1xbf16>
    %66 = tpu.concatenate %64, %65 in 1 : vector<32x255xbf16>, vector<32x1xbf16> -> vector<32x256xbf16>
    %c5 = arith.constant 5 : index
    %c0_27 = arith.constant 0 : index
    %c0_28 = arith.constant 0 : index
    %67 = vector.load %arg2[%c5, %c0_27, %c0_28] : memref<9x32x32xbf16, #tpu.memory_space<vmem>>, vector<1x32x32xbf16>
    %68 = vector.shape_cast %67 : vector<1x32x32xbf16> to vector<32x32xbf16>
    %cst_29 = arith.constant dense<0.000000e+00> : vector<32x256xf32>
    %69 = tpu.matmul %68, %66, %cst_29 {dimension_numbers = #tpu.dot_dimension_numbers<[1], [0], [0], [1], [0, 0, 1, 1], [], []>} : vector<32x32xbf16>, vector<32x256xbf16>, vector<32x256xf32> -> vector<32x256xf32>
    %70 = arith.addf %63, %69 : vector<32x256xf32>
    %71 = vector.extract_strided_slice %25 {offsets = [0, 15], sizes = [32, 241], strides = [1, 1]} : vector<32x256xbf16> to vector<32x241xbf16>
    %cst_30 = arith.constant 0.000000e+00 : bf16
    %72 = vector.broadcast %cst_30 : bf16 to vector<32x15xbf16>
    %73 = tpu.concatenate %71, %72 in 1 : vector<32x241xbf16>, vector<32x15xbf16> -> vector<32x256xbf16>
    %c6 = arith.constant 6 : index
    %c0_31 = arith.constant 0 : index
    %c0_32 = arith.constant 0 : index
    %74 = vector.load %arg2[%c6, %c0_31, %c0_32] : memref<9x32x32xbf16, #tpu.memory_space<vmem>>, vector<1x32x32xbf16>
    %75 = vector.shape_cast %74 : vector<1x32x32xbf16> to vector<32x32xbf16>
    %cst_33 = arith.constant dense<0.000000e+00> : vector<32x256xf32>
    %76 = tpu.matmul %75, %73, %cst_33 {dimension_numbers = #tpu.dot_dimension_numbers<[1], [0], [0], [1], [0, 0, 1, 1], [], []>} : vector<32x32xbf16>, vector<32x256xbf16>, vector<32x256xf32> -> vector<32x256xf32>
    %77 = arith.addf %70, %76 : vector<32x256xf32>
    %78 = vector.extract_strided_slice %26 {offsets = [0, 16], sizes = [32, 240], strides = [1, 1]} : vector<32x256xbf16> to vector<32x240xbf16>
    %cst_34 = arith.constant 0.000000e+00 : bf16
    %79 = vector.broadcast %cst_34 : bf16 to vector<32x16xbf16>
    %80 = tpu.concatenate %78, %79 in 1 : vector<32x240xbf16>, vector<32x16xbf16> -> vector<32x256xbf16>
    %c7 = arith.constant 7 : index
    %c0_35 = arith.constant 0 : index
    %c0_36 = arith.constant 0 : index
    %81 = vector.load %arg2[%c7, %c0_35, %c0_36] : memref<9x32x32xbf16, #tpu.memory_space<vmem>>, vector<1x32x32xbf16>
    %82 = vector.shape_cast %81 : vector<1x32x32xbf16> to vector<32x32xbf16>
    %cst_37 = arith.constant dense<0.000000e+00> : vector<32x256xf32>
    %83 = tpu.matmul %82, %80, %cst_37 {dimension_numbers = #tpu.dot_dimension_numbers<[1], [0], [0], [1], [0, 0, 1, 1], [], []>} : vector<32x32xbf16>, vector<32x256xbf16>, vector<32x256xf32> -> vector<32x256xf32>
    %84 = arith.addf %77, %83 : vector<32x256xf32>
    %85 = vector.extract_strided_slice %32 {offsets = [0, 17], sizes = [32, 239], strides = [1, 1]} : vector<32x256xbf16> to vector<32x239xbf16>
    %cst_38 = arith.constant 0.000000e+00 : bf16
    %86 = vector.broadcast %cst_38 : bf16 to vector<32x17xbf16>
    %87 = tpu.concatenate %85, %86 in 1 : vector<32x239xbf16>, vector<32x17xbf16> -> vector<32x256xbf16>
    %c8 = arith.constant 8 : index
    %c0_39 = arith.constant 0 : index
    %c0_40 = arith.constant 0 : index
    %88 = vector.load %arg2[%c8, %c0_39, %c0_40] : memref<9x32x32xbf16, #tpu.memory_space<vmem>>, vector<1x32x32xbf16>
    %89 = vector.shape_cast %88 : vector<1x32x32xbf16> to vector<32x32xbf16>
    %cst_41 = arith.constant dense<0.000000e+00> : vector<32x256xf32>
    %90 = tpu.matmul %89, %87, %cst_41 {dimension_numbers = #tpu.dot_dimension_numbers<[1], [0], [0], [1], [0, 0, 1, 1], [], []>} : vector<32x32xbf16>, vector<32x256xbf16>, vector<32x256xf32> -> vector<32x256xf32>
    %91 = arith.addf %84, %90 : vector<32x256xf32>
    %c0_42 = arith.constant 0 : index
    %c0_43 = arith.constant 0 : index
    %92 = vector.load %arg3[%c0_42, %c0_43] : memref<32x1xf32, #tpu.memory_space<vmem>>, vector<32x1xf32>
    %93 = vector.broadcast %92 : vector<32x1xf32> to vector<32x256xf32>
    %94 = arith.addf %91, %93 : vector<32x256xf32>
    %cst_44 = arith.constant 0.000000e+00 : f32
    %95 = vector.broadcast %cst_44 : f32 to vector<32x256xf32>
    %96 = arith.maximumf %94, %95 : vector<32x256xf32>
    %c0_45 = arith.constant 0 : index
    %c0_46 = arith.constant 0 : index
    %c0_47 = arith.constant 0 : index
    %97 = vector.load %arg4[%c0_45, %c0_46, %c0_47] : memref<1x32x256xf32, #tpu.memory_space<vmem>>, vector<1x32x256xf32>
    %98 = vector.shape_cast %97 : vector<1x32x256xf32> to vector<32x256xf32>
    %99 = vector.shape_cast %96 : vector<32x256xf32> to vector<1x32x256xf32>
    tpu.vector_store %arg4[%c0_45, %c0_46, %c0_47], %99 {strides = array<i32>} : memref<1x32x256xf32, #tpu.memory_space<vmem>>, vector<1x32x256xf32>,
    return
  }
  func.func @transform_0(%arg0: i32) -> (i32, i32, i32) {
    %c0_i32 = arith.constant 0 : i32
    %c0_i32_0 = arith.constant 0 : i32
    %c0_i32_1 = arith.constant 0 : i32
    return %arg0, %c0_i32, %c0_i32_0 : i32, i32, i32
  }
  func.func @transform_1(%arg0: i32) -> (i32, i32, i32) {
    %c0_i32 = arith.constant 0 : i32
    %c0_i32_0 = arith.constant 0 : i32
    %c0_i32_1 = arith.constant 0 : i32
    %c0_i32_2 = arith.constant 0 : i32
    return %c0_i32, %c0_i32_0, %c0_i32_1 : i32, i32, i32
  }
  func.func @transform_2(%arg0: i32) -> (i32, i32) {
    %c0_i32 = arith.constant 0 : i32
    %c0_i32_0 = arith.constant 0 : i32
    %c0_i32_1 = arith.constant 0 : i32
    return %c0_i32, %c0_i32_0 : i32, i32
  }
  func.func @transform_3(%arg0: i32) -> (i32, i32, i32) {
    %c0_i32 = arith.constant 0 : i32
    %c0_i32_0 = arith.constant 0 : i32
    %c0_i32_1 = arith.constant 0 : i32
    return %arg0, %c0_i32, %c0_i32_0 : i32, i32, i32
  }
}

module attributes {stable_mosaic.version = 11 : i64} {
  func.func @_conv3x3_kernel(%arg0: i32, %arg1: memref<1x32x256xf32, #tpu.memory_space<vmem>>, %arg2: memref<9x8x32xbf16, #tpu.memory_space<vmem>>, %arg3: memref<8x1xf32, #tpu.memory_space<vmem>>, %arg4: memref<1x8x256xf32, #tpu.memory_space<vmem>>) attributes {dimension_semantics = [#tpu.dimension_semantics<parallel>], iteration_bounds = array<i64: 2>, scalar_prefetch = 0 : i64, scratch_operands = 0 : i64, tpu.core_type = #tpu.core_type<tc>, window_params = [{transform_indices = @transform_0, window_bounds = array<i64: 1, 32, 256>}, {pipeline_mode = #tpu.pipeline_mode<synchronous>, transform_indices = @transform_1, window_bounds = array<i64: 9, 8, 32>}, {pipeline_mode = #tpu.pipeline_mode<synchronous>, transform_indices = @transform_2, window_bounds = array<i64: 8, 1>}, {transform_indices = @transform_3, window_bounds = array<i64: 1, 8, 256>}]} {
    %c0 = arith.constant 0 : index
    %c0_0 = arith.constant 0 : index
    %c0_1 = arith.constant 0 : index
    %0 = vector.load %arg1[%c0, %c0_0, %c0_1] : memref<1x32x256xf32, #tpu.memory_space<vmem>>, vector<1x32x256xf32>
    %1 = vector.shape_cast %0 : vector<1x32x256xf32> to vector<32x256xf32>
    %2 = tpu.iota {dimensions = array<i32: 1>} : vector<1x256xi32>
    %c16_i32 = arith.constant 16 : i32
    %c0_i32 = arith.constant 0 : i32
    %3 = arith.cmpi eq, %c16_i32, %c0_i32 : i32
    %c1_i32 = arith.constant 1 : i32
    %4 = arith.select %3, %c1_i32, %c16_i32 : i32
    %5 = vector.broadcast %4 : i32 to vector<1x256xi32>
    %6 = arith.remsi %2, %5 : vector<1x256xi32>
    %c0_i32_2 = arith.constant 0 : i32
    %7 = vector.broadcast %c0_i32_2 : i32 to vector<1x256xi32>
    %8 = arith.cmpi ne, %6, %7 : vector<1x256xi32>
    %c0_i32_3 = arith.constant 0 : i32
    %9 = vector.broadcast %c0_i32_3 : i32 to vector<1x256xi32>
    %10 = arith.cmpi slt, %6, %9 : vector<1x256xi32>
    %c0_i32_4 = arith.constant 0 : i32
    %11 = arith.cmpi slt, %4, %c0_i32_4 : i32
    %12 = vector.broadcast %11 : i1 to vector<1x256xi1>
    %13 = vector.broadcast %12 : vector<1x256xi1> to vector<1x256xi1>
    %14 = arith.xori %10, %13 : vector<1x256xi1>
    %15 = arith.andi %14, %8 : vector<1x256xi1>
    %16 = vector.broadcast %4 : i32 to vector<1x256xi32>
    %17 = arith.addi %6, %16 : vector<1x256xi32>
    %18 = arith.select %15, %17, %6 : vector<1x256xi1>, vector<1x256xi32>
    %cst = arith.constant 0.000000e+00 : f32
    %19 = vector.broadcast %cst : f32 to vector<32x256xf32>
    %c15_i32 = arith.constant 15 : i32
    %20 = vector.broadcast %c15_i32 : i32 to vector<1x256xi32>
    %21 = arith.cmpi ne, %18, %20 : vector<1x256xi32>
    %22 = vector.shape_cast %21 : vector<1x256xi1> to vector<1x256xi1>
    %23 = vector.broadcast %22 : vector<1x256xi1> to vector<32x256xi1>
    %24 = arith.select %23, %1, %19 : vector<32x256xi1>, vector<32x256xf32>
    %25 = arith.truncf %24 : vector<32x256xf32> to vector<32x256xbf16>
    %26 = arith.truncf %1 : vector<32x256xf32> to vector<32x256xbf16>
    %c0_i32_5 = arith.constant 0 : i32
    %27 = vector.broadcast %c0_i32_5 : i32 to vector<1x256xi32>
    %28 = arith.cmpi ne, %18, %27 : vector<1x256xi32>
    %29 = vector.shape_cast %28 : vector<1x256xi1> to vector<1x256xi1>
    %30 = vector.broadcast %29 : vector<1x256xi1> to vector<32x256xi1>
    %31 = arith.select %30, %1, %19 : vector<32x256xi1>, vector<32x256xf32>
    %32 = arith.truncf %31 : vector<32x256xf32> to vector<32x256xbf16>
    %cst_6 = arith.constant 0.000000e+00 : bf16
    %33 = vector.broadcast %cst_6 : bf16 to vector<32x17xbf16>
    %34 = vector.extract_strided_slice %25 {offsets = [0, 0], sizes = [32, 239], strides = [1, 1]} : vector<32x256xbf16> to vector<32x239xbf16>
    %35 = tpu.concatenate %33, %34 in 1 : vector<32x17xbf16>, vector<32x239xbf16> -> vector<32x256xbf16>
    %c0_7 = arith.constant 0 : index
    %c0_8 = arith.constant 0 : index
    %c0_9 = arith.constant 0 : index
    %36 = vector.load %arg2[%c0_7, %c0_8, %c0_9] : memref<9x8x32xbf16, #tpu.memory_space<vmem>>, vector<1x8x32xbf16>
    %37 = vector.shape_cast %36 : vector<1x8x32xbf16> to vector<8x32xbf16>
    %cst_10 = arith.constant dense<0.000000e+00> : vector<8x256xf32>
    %38 = tpu.matmul %37, %35, %cst_10 {dimension_numbers = #tpu.dot_dimension_numbers<[1], [0], [0], [1], [0, 0, 1, 1], [], []>} : vector<8x32xbf16>, vector<32x256xbf16>, vector<8x256xf32> -> vector<8x256xf32>
    %cst_11 = arith.constant 0.000000e+00 : bf16
    %39 = vector.broadcast %cst_11 : bf16 to vector<32x16xbf16>
    %40 = vector.extract_strided_slice %26 {offsets = [0, 0], sizes = [32, 240], strides = [1, 1]} : vector<32x256xbf16> to vector<32x240xbf16>
    %41 = tpu.concatenate %39, %40 in 1 : vector<32x16xbf16>, vector<32x240xbf16> -> vector<32x256xbf16>
    %c1 = arith.constant 1 : index
    %c0_12 = arith.constant 0 : index
    %c0_13 = arith.constant 0 : index
    %42 = vector.load %arg2[%c1, %c0_12, %c0_13] : memref<9x8x32xbf16, #tpu.memory_space<vmem>>, vector<1x8x32xbf16>
    %43 = vector.shape_cast %42 : vector<1x8x32xbf16> to vector<8x32xbf16>
    %cst_14 = arith.constant dense<0.000000e+00> : vector<8x256xf32>
    %44 = tpu.matmul %43, %41, %cst_14 {dimension_numbers = #tpu.dot_dimension_numbers<[1], [0], [0], [1], [0, 0, 1, 1], [], []>} : vector<8x32xbf16>, vector<32x256xbf16>, vector<8x256xf32> -> vector<8x256xf32>
    %45 = arith.addf %38, %44 : vector<8x256xf32>
    %cst_15 = arith.constant 0.000000e+00 : bf16
    %46 = vector.broadcast %cst_15 : bf16 to vector<32x15xbf16>
    %47 = vector.extract_strided_slice %32 {offsets = [0, 0], sizes = [32, 241], strides = [1, 1]} : vector<32x256xbf16> to vector<32x241xbf16>
    %48 = tpu.concatenate %46, %47 in 1 : vector<32x15xbf16>, vector<32x241xbf16> -> vector<32x256xbf16>
    %c2 = arith.constant 2 : index
    %c0_16 = arith.constant 0 : index
    %c0_17 = arith.constant 0 : index
    %49 = vector.load %arg2[%c2, %c0_16, %c0_17] : memref<9x8x32xbf16, #tpu.memory_space<vmem>>, vector<1x8x32xbf16>
    %50 = vector.shape_cast %49 : vector<1x8x32xbf16> to vector<8x32xbf16>
    %cst_18 = arith.constant dense<0.000000e+00> : vector<8x256xf32>
    %51 = tpu.matmul %50, %48, %cst_18 {dimension_numbers = #tpu.dot_dimension_numbers<[1], [0], [0], [1], [0, 0, 1, 1], [], []>} : vector<8x32xbf16>, vector<32x256xbf16>, vector<8x256xf32> -> vector<8x256xf32>
    %52 = arith.addf %45, %51 : vector<8x256xf32>
    %cst_19 = arith.constant 0.000000e+00 : bf16
    %53 = vector.broadcast %cst_19 : bf16 to vector<32x1xbf16>
    %54 = vector.extract_strided_slice %25 {offsets = [0, 0], sizes = [32, 255], strides = [1, 1]} : vector<32x256xbf16> to vector<32x255xbf16>
    %55 = tpu.concatenate %53, %54 in 1 : vector<32x1xbf16>, vector<32x255xbf16> -> vector<32x256xbf16>
    %c3 = arith.constant 3 : index
    %c0_20 = arith.constant 0 : index
    %c0_21 = arith.constant 0 : index
    %56 = vector.load %arg2[%c3, %c0_20, %c0_21] : memref<9x8x32xbf16, #tpu.memory_space<vmem>>, vector<1x8x32xbf16>
    %57 = vector.shape_cast %56 : vector<1x8x32xbf16> to vector<8x32xbf16>
    %cst_22 = arith.constant dense<0.000000e+00> : vector<8x256xf32>
    %58 = tpu.matmul %57, %55, %cst_22 {dimension_numbers = #tpu.dot_dimension_numbers<[1], [0], [0], [1], [0, 0, 1, 1], [], []>} : vector<8x32xbf16>, vector<32x256xbf16>, vector<8x256xf32> -> vector<8x256xf32>
    %59 = arith.addf %52, %58 : vector<8x256xf32>
    %c4 = arith.constant 4 : index
    %c0_23 = arith.constant 0 : index
    %c0_24 = arith.constant 0 : index
    %60 = vector.load %arg2[%c4, %c0_23, %c0_24] : memref<9x8x32xbf16, #tpu.memory_space<vmem>>, vector<1x8x32xbf16>
    %61 = vector.shape_cast %60 : vector<1x8x32xbf16> to vector<8x32xbf16>
    %cst_25 = arith.constant dense<0.000000e+00> : vector<8x256xf32>
    %62 = tpu.matmul %61, %26, %cst_25 {dimension_numbers = #tpu.dot_dimension_numbers<[1], [0], [0], [1], [0, 0, 1, 1], [], []>} : vector<8x32xbf16>, vector<32x256xbf16>, vector<8x256xf32> -> vector<8x256xf32>
    %63 = arith.addf %59, %62 : vector<8x256xf32>
    %64 = vector.extract_strided_slice %32 {offsets = [0, 1], sizes = [32, 255], strides = [1, 1]} : vector<32x256xbf16> to vector<32x255xbf16>
    %cst_26 = arith.constant 0.000000e+00 : bf16
    %65 = vector.broadcast %cst_26 : bf16 to vector<32x1xbf16>
    %66 = tpu.concatenate %64, %65 in 1 : vector<32x255xbf16>, vector<32x1xbf16> -> vector<32x256xbf16>
    %c5 = arith.constant 5 : index
    %c0_27 = arith.constant 0 : index
    %c0_28 = arith.constant 0 : index
    %67 = vector.load %arg2[%c5, %c0_27, %c0_28] : memref<9x8x32xbf16, #tpu.memory_space<vmem>>, vector<1x8x32xbf16>
    %68 = vector.shape_cast %67 : vector<1x8x32xbf16> to vector<8x32xbf16>
    %cst_29 = arith.constant dense<0.000000e+00> : vector<8x256xf32>
    %69 = tpu.matmul %68, %66, %cst_29 {dimension_numbers = #tpu.dot_dimension_numbers<[1], [0], [0], [1], [0, 0, 1, 1], [], []>} : vector<8x32xbf16>, vector<32x256xbf16>, vector<8x256xf32> -> vector<8x256xf32>
    %70 = arith.addf %63, %69 : vector<8x256xf32>
    %71 = vector.extract_strided_slice %25 {offsets = [0, 15], sizes = [32, 241], strides = [1, 1]} : vector<32x256xbf16> to vector<32x241xbf16>
    %cst_30 = arith.constant 0.000000e+00 : bf16
    %72 = vector.broadcast %cst_30 : bf16 to vector<32x15xbf16>
    %73 = tpu.concatenate %71, %72 in 1 : vector<32x241xbf16>, vector<32x15xbf16> -> vector<32x256xbf16>
    %c6 = arith.constant 6 : index
    %c0_31 = arith.constant 0 : index
    %c0_32 = arith.constant 0 : index
    %74 = vector.load %arg2[%c6, %c0_31, %c0_32] : memref<9x8x32xbf16, #tpu.memory_space<vmem>>, vector<1x8x32xbf16>
    %75 = vector.shape_cast %74 : vector<1x8x32xbf16> to vector<8x32xbf16>
    %cst_33 = arith.constant dense<0.000000e+00> : vector<8x256xf32>
    %76 = tpu.matmul %75, %73, %cst_33 {dimension_numbers = #tpu.dot_dimension_numbers<[1], [0], [0], [1], [0, 0, 1, 1], [], []>} : vector<8x32xbf16>, vector<32x256xbf16>, vector<8x256xf32> -> vector<8x256xf32>
    %77 = arith.addf %70, %76 : vector<8x256xf32>
    %78 = vector.extract_strided_slice %26 {offsets = [0, 16], sizes = [32, 240], strides = [1, 1]} : vector<32x256xbf16> to vector<32x240xbf16>
    %cst_34 = arith.constant 0.000000e+00 : bf16
    %79 = vector.broadcast %cst_34 : bf16 to vector<32x16xbf16>
    %80 = tpu.concatenate %78, %79 in 1 : vector<32x240xbf16>, vector<32x16xbf16> -> vector<32x256xbf16>
    %c7 = arith.constant 7 : index
    %c0_35 = arith.constant 0 : index
    %c0_36 = arith.constant 0 : index
    %81 = vector.load %arg2[%c7, %c0_35, %c0_36] : memref<9x8x32xbf16, #tpu.memory_space<vmem>>, vector<1x8x32xbf16>
    %82 = vector.shape_cast %81 : vector<1x8x32xbf16> to vector<8x32xbf16>
    %cst_37 = arith.constant dense<0.000000e+00> : vector<8x256xf32>
    %83 = tpu.matmul %82, %80, %cst_37 {dimension_numbers = #tpu.dot_dimension_numbers<[1], [0], [0], [1], [0, 0, 1, 1], [], []>} : vector<8x32xbf16>, vector<32x256xbf16>, vector<8x256xf32> -> vector<8x256xf32>
    %84 = arith.addf %77, %83 : vector<8x256xf32>
    %85 = vector.extract_strided_slice %32 {offsets = [0, 17], sizes = [32, 239], strides = [1, 1]} : vector<32x256xbf16> to vector<32x239xbf16>
    %cst_38 = arith.constant 0.000000e+00 : bf16
    %86 = vector.broadcast %cst_38 : bf16 to vector<32x17xbf16>
    %87 = tpu.concatenate %85, %86 in 1 : vector<32x239xbf16>, vector<32x17xbf16> -> vector<32x256xbf16>
    %c8 = arith.constant 8 : index
    %c0_39 = arith.constant 0 : index
    %c0_40 = arith.constant 0 : index
    %88 = vector.load %arg2[%c8, %c0_39, %c0_40] : memref<9x8x32xbf16, #tpu.memory_space<vmem>>, vector<1x8x32xbf16>
    %89 = vector.shape_cast %88 : vector<1x8x32xbf16> to vector<8x32xbf16>
    %cst_41 = arith.constant dense<0.000000e+00> : vector<8x256xf32>
    %90 = tpu.matmul %89, %87, %cst_41 {dimension_numbers = #tpu.dot_dimension_numbers<[1], [0], [0], [1], [0, 0, 1, 1], [], []>} : vector<8x32xbf16>, vector<32x256xbf16>, vector<8x256xf32> -> vector<8x256xf32>
    %91 = arith.addf %84, %90 : vector<8x256xf32>
    %c0_42 = arith.constant 0 : index
    %c0_43 = arith.constant 0 : index
    %92 = vector.load %arg3[%c0_42, %c0_43] : memref<8x1xf32, #tpu.memory_space<vmem>>, vector<8x1xf32>
    %93 = vector.broadcast %92 : vector<8x1xf32> to vector<8x256xf32>
    %94 = arith.addf %91, %93 : vector<8x256xf32>
    %c0_44 = arith.constant 0 : index
    %c0_45 = arith.constant 0 : index
    %c0_46 = arith.constant 0 : index
    %95 = vector.load %arg4[%c0_44, %c0_45, %c0_46] : memref<1x8x256xf32, #tpu.memory_space<vmem>>, vector<1x8x256xf32>
    %96 = vector.shape_cast %95 : vector<1x8x256xf32> to vector<8x256xf32>
    %97 = vector.shape_cast %94 : vector<8x256xf32> to vector<1x8x256xf32>
    tpu.vector_store %arg4[%c0_44, %c0_45, %c0_46], %97 {strides = array<i32>} : memref<1x8x256xf32, #tpu.memory_space<vmem>>, vector<1x8x256xf32>,
    return
  }
  func.func @transform_0(%arg0: i32) -> (i32, i32, i32) {
    %c0_i32 = arith.constant 0 : i32
    %c0_i32_0 = arith.constant 0 : i32
    %c0_i32_1 = arith.constant 0 : i32
    return %arg0, %c0_i32, %c0_i32_0 : i32, i32, i32
  }
  func.func @transform_1(%arg0: i32) -> (i32, i32, i32) {
    %c0_i32 = arith.constant 0 : i32
    %c0_i32_0 = arith.constant 0 : i32
    %c0_i32_1 = arith.constant 0 : i32
    %c0_i32_2 = arith.constant 0 : i32
    return %c0_i32, %c0_i32_0, %c0_i32_1 : i32, i32, i32
  }
  func.func @transform_2(%arg0: i32) -> (i32, i32) {
    %c0_i32 = arith.constant 0 : i32
    %c0_i32_0 = arith.constant 0 : i32
    %c0_i32_1 = arith.constant 0 : i32
    return %c0_i32, %c0_i32_0 : i32, i32
  }
  func.func @transform_3(%arg0: i32) -> (i32, i32, i32) {
    %c0_i32 = arith.constant 0 : i32
    %c0_i32_0 = arith.constant 0 : i32
    %c0_i32_1 = arith.constant 0 : i32
    return %arg0, %c0_i32, %c0_i32_0 : i32, i32, i32
  }
}

module attributes {stable_mosaic.version = 11 : i64} {
  func.func @_bn_var_kernel(%arg0: i32, %arg1: memref<1x4x256xf32, #tpu.memory_space<vmem>>, %arg2: memref<4x1xf32, #tpu.memory_space<vmem>>, %arg3: memref<4x1xf32, #tpu.memory_space<vmem>>, %arg4: memref<4x1xf32, #tpu.memory_space<vmem>>, %arg5: memref<4x1xf32, #tpu.memory_space<vmem>>, %arg6: memref<4x1xf32, #tpu.memory_space<vmem>>, %arg7: memref<4x1xf32, #tpu.memory_space<vmem>>) attributes {dimension_semantics = [#tpu.dimension_semantics<arbitrary>], iteration_bounds = array<i64: 2>, scalar_prefetch = 0 : i64, scratch_operands = 1 : i64, tpu.core_type = #tpu.core_type<tc>, window_params = [{transform_indices = @transform_0, window_bounds = array<i64: 1, 4, 256>}, {pipeline_mode = #tpu.pipeline_mode<synchronous>, transform_indices = @transform_1, window_bounds = array<i64: 4, 1>}, {pipeline_mode = #tpu.pipeline_mode<synchronous>, transform_indices = @transform_2, window_bounds = array<i64: 4, 1>}, {pipeline_mode = #tpu.pipeline_mode<synchronous>, transform_indices = @transform_3, window_bounds = array<i64: 4, 1>}, {pipeline_mode = #tpu.pipeline_mode<synchronous>, transform_indices = @transform_4, window_bounds = array<i64: 4, 1>}, {pipeline_mode = #tpu.pipeline_mode<synchronous>, transform_indices = @transform_5, window_bounds = array<i64: 4, 1>}]} {
    %c0 = arith.constant 0 : index
    %c0_0 = arith.constant 0 : index
    %0 = vector.load %arg2[%c0, %c0_0] : memref<4x1xf32, #tpu.memory_space<vmem>>, vector<4x1xf32>
    %cst = arith.constant 0.001953125 : f32
    %1 = vector.broadcast %cst : f32 to vector<4x1xf32>
    %2 = arith.mulf %0, %1 : vector<4x1xf32>
    %c0_1 = arith.constant 0 : index
    %c0_2 = arith.constant 0 : index
    %c0_3 = arith.constant 0 : index
    %3 = vector.load %arg1[%c0_1, %c0_2, %c0_3] : memref<1x4x256xf32, #tpu.memory_space<vmem>>, vector<1x4x256xf32>
    %4 = vector.shape_cast %3 : vector<1x4x256xf32> to vector<4x256xf32>
    %c0_i32 = arith.constant 0 : i32
    %5 = arith.cmpi eq, %arg0, %c0_i32 : i32
    %6 = arith.extui %5 : i1 to i32
    %c0_i32_4 = arith.constant 0 : i32
    %7 = arith.cmpi ne, %6, %c0_i32_4 : i32
    scf.if %7 {
      %cst_11 = arith.constant 0.000000e+00 : f32
      %19 = vector.broadcast %cst_11 : f32 to vector<4x1xf32>
      %c0_12 = arith.constant 0 : index
      %c0_13 = arith.constant 0 : index
      %20 = vector.load %arg7[%c0_12, %c0_13] : memref<4x1xf32, #tpu.memory_space<vmem>>, vector<4x1xf32>
      tpu.vector_store %arg7[%c0_12, %c0_13], %19 {strides = array<i32>} : memref<4x1xf32, #tpu.memory_space<vmem>>, vector<4x1xf32>,
    } else {
    }
    %8 = vector.broadcast %2 : vector<4x1xf32> to vector<4x256xf32>
    %9 = arith.subf %4, %8 : vector<4x256xf32>
    %c0_5 = arith.constant 0 : index
    %c0_6 = arith.constant 0 : index
    %10 = vector.load %arg7[%c0_5, %c0_6] : memref<4x1xf32, #tpu.memory_space<vmem>>, vector<4x1xf32>
    %11 = arith.mulf %9, %9 : vector<4x256xf32>
    %cst_7 = arith.constant dense<0.000000e+00> : vector<4xf32>
    %12 = vector.multi_reduction <add>, %11, %cst_7 [1] : vector<4x256xf32> to vector<4xf32>
    %13 = vector.shape_cast %12 : vector<4xf32> to vector<4x1xf32>
    %14 = arith.addf %10, %13 : vector<4x1xf32>
    %c0_8 = arith.constant 0 : index
    %c0_9 = arith.constant 0 : index
    %15 = vector.load %arg7[%c0_8, %c0_9] : memref<4x1xf32, #tpu.memory_space<vmem>>, vector<4x1xf32>
    tpu.vector_store %arg7[%c0_8, %c0_9], %14 {strides = array<i32>} : memref<4x1xf32, #tpu.memory_space<vmem>>, vector<4x1xf32>,
    %c1_i32 = arith.constant 1 : i32
    %16 = arith.cmpi eq, %arg0, %c1_i32 : i32
    %17 = arith.extui %16 : i1 to i32
    %c0_i32_10 = arith.constant 0 : i32
    %18 = arith.cmpi ne, %17, %c0_i32_10 : i32
    scf.if %18 {
      %c0_11 = arith.constant 0 : index
      %c0_12 = arith.constant 0 : index
      %19 = vector.load %arg7[%c0_11, %c0_12] : memref<4x1xf32, #tpu.memory_space<vmem>>, vector<4x1xf32>
      %cst_13 = arith.constant 0.001953125 : f32
      %20 = vector.broadcast %cst_13 : f32 to vector<4x1xf32>
      %21 = arith.mulf %19, %20 : vector<4x1xf32>
      %c0_14 = arith.constant 0 : index
      %c0_15 = arith.constant 0 : index
      %22 = vector.load %arg3[%c0_14, %c0_15] : memref<4x1xf32, #tpu.memory_space<vmem>>, vector<4x1xf32>
      %cst_16 = arith.constant 9.99999974E-6 : f32
      %23 = vector.broadcast %cst_16 : f32 to vector<4x1xf32>
      %24 = arith.addf %21, %23 : vector<4x1xf32>
      %25 = math.rsqrt %24 : vector<4x1xf32>
      %26 = arith.mulf %22, %25 : vector<4x1xf32>
      %c0_17 = arith.constant 0 : index
      %c0_18 = arith.constant 0 : index
      %27 = vector.load %arg5[%c0_17, %c0_18] : memref<4x1xf32, #tpu.memory_space<vmem>>, vector<4x1xf32>
      tpu.vector_store %arg5[%c0_17, %c0_18], %26 {strides = array<i32>} : memref<4x1xf32, #tpu.memory_space<vmem>>, vector<4x1xf32>,
      %c0_19 = arith.constant 0 : index
      %c0_20 = arith.constant 0 : index
      %28 = vector.load %arg4[%c0_19, %c0_20] : memref<4x1xf32, #tpu.memory_space<vmem>>, vector<4x1xf32>
      %29 = arith.mulf %2, %26 : vector<4x1xf32>
      %30 = arith.subf %28, %29 : vector<4x1xf32>
      %c0_21 = arith.constant 0 : index
      %c0_22 = arith.constant 0 : index
      %31 = vector.load %arg6[%c0_21, %c0_22] : memref<4x1xf32, #tpu.memory_space<vmem>>, vector<4x1xf32>
      tpu.vector_store %arg6[%c0_21, %c0_22], %30 {strides = array<i32>} : memref<4x1xf32, #tpu.memory_space<vmem>>, vector<4x1xf32>,
    } else {
    }
    return
  }
  func.func @transform_0(%arg0: i32) -> (i32, i32, i32) {
    %c0_i32 = arith.constant 0 : i32
    %c0_i32_0 = arith.constant 0 : i32
    %c0_i32_1 = arith.constant 0 : i32
    return %arg0, %c0_i32, %c0_i32_0 : i32, i32, i32
  }
  func.func @transform_1(%arg0: i32) -> (i32, i32) {
    %c0_i32 = arith.constant 0 : i32
    %c0_i32_0 = arith.constant 0 : i32
    %c0_i32_1 = arith.constant 0 : i32
    return %c0_i32, %c0_i32_0 : i32, i32
  }
  func.func @transform_2(%arg0: i32) -> (i32, i32) {
    %c0_i32 = arith.constant 0 : i32
    %c0_i32_0 = arith.constant 0 : i32
    %c0_i32_1 = arith.constant 0 : i32
    return %c0_i32, %c0_i32_0 : i32, i32
  }
  func.func @transform_3(%arg0: i32) -> (i32, i32) {
    %c0_i32 = arith.constant 0 : i32
    %c0_i32_0 = arith.constant 0 : i32
    %c0_i32_1 = arith.constant 0 : i32
    return %c0_i32, %c0_i32_0 : i32, i32
  }
  func.func @transform_4(%arg0: i32) -> (i32, i32) {
    %c0_i32 = arith.constant 0 : i32
    %c0_i32_0 = arith.constant 0 : i32
    %c0_i32_1 = arith.constant 0 : i32
    return %c0_i32, %c0_i32_0 : i32, i32
  }
  func.func @transform_5(%arg0: i32) -> (i32, i32) {
    %c0_i32 = arith.constant 0 : i32
    %c0_i32_0 = arith.constant 0 : i32
    %c0_i32_1 = arith.constant 0 : i32
    return %c0_i32, %c0_i32_0 : i32, i32
  }
}

module attributes {stable_mosaic.version = 11 : i64} {
  func.func @_conv3x3_kernel(%arg0: i32, %arg1: memref<4x1xf32, #tpu.memory_space<vmem>>, %arg2: memref<4x1xf32, #tpu.memory_space<vmem>>, %arg3: memref<1x8x256xf32, #tpu.memory_space<vmem>>, %arg4: memref<1x4x256xf32, #tpu.memory_space<vmem>>, %arg5: memref<9x4x4xbf16, #tpu.memory_space<vmem>>, %arg6: memref<4x1xf32, #tpu.memory_space<vmem>>, %arg7: memref<1x4x256xf32, #tpu.memory_space<vmem>>, %arg8: memref<4x1xf32, #tpu.memory_space<vmem>>, %arg9: memref<4x1xf32, #tpu.memory_space<vmem>>) attributes {dimension_semantics = [#tpu.dimension_semantics<arbitrary>], iteration_bounds = array<i64: 2>, scalar_prefetch = 0 : i64, scratch_operands = 1 : i64, tpu.core_type = #tpu.core_type<tc>, window_params = [{pipeline_mode = #tpu.pipeline_mode<synchronous>, transform_indices = @transform_0, window_bounds = array<i64: 4, 1>}, {pipeline_mode = #tpu.pipeline_mode<synchronous>, transform_indices = @transform_1, window_bounds = array<i64: 4, 1>}, {transform_indices = @transform_2, window_bounds = array<i64: 1, 8, 256>}, {transform_indices = @transform_3, window_bounds = array<i64: 1, 4, 256>}, {pipeline_mode = #tpu.pipeline_mode<synchronous>, transform_indices = @transform_4, window_bounds = array<i64: 9, 4, 4>}, {pipeline_mode = #tpu.pipeline_mode<synchronous>, transform_indices = @transform_5, window_bounds = array<i64: 4, 1>}, {transform_indices = @transform_6, window_bounds = array<i64: 1, 4, 256>}, {pipeline_mode = #tpu.pipeline_mode<synchronous>, transform_indices = @transform_7, window_bounds = array<i64: 4, 1>}]} {
    %c0 = arith.constant 0 : index
    %c0_0 = arith.constant 0 : index
    %c0_1 = arith.constant 0 : index
    %0 = vector.load %arg4[%c0, %c0_0, %c0_1] : memref<1x4x256xf32, #tpu.memory_space<vmem>>, vector<1x4x256xf32>
    %1 = vector.shape_cast %0 : vector<1x4x256xf32> to vector<4x256xf32>
    %c0_2 = arith.constant 0 : index
    %c0_3 = arith.constant 0 : index
    %2 = vector.load %arg1[%c0_2, %c0_3] : memref<4x1xf32, #tpu.memory_space<vmem>>, vector<4x1xf32>
    %3 = vector.broadcast %2 : vector<4x1xf32> to vector<4x256xf32>
    %4 = arith.mulf %1, %3 : vector<4x256xf32>
    %c0_4 = arith.constant 0 : index
    %c0_5 = arith.constant 0 : index
    %5 = vector.load %arg2[%c0_4, %c0_5] : memref<4x1xf32, #tpu.memory_space<vmem>>, vector<4x1xf32>
    %6 = vector.broadcast %5 : vector<4x1xf32> to vector<4x256xf32>
    %7 = arith.addf %4, %6 : vector<4x256xf32>
    %c0_6 = arith.constant 0 : index
    %c0_7 = arith.constant 0 : index
    %c0_8 = arith.constant 0 : index
    %8 = vector.load %arg3[%c0_6, %c0_7, %c0_8] : memref<1x8x256xf32, #tpu.memory_space<vmem>>, vector<1x8x256xf32>
    %9 = vector.shape_cast %8 : vector<1x8x256xf32> to vector<8x256xf32>
    %10 = vector.extract_strided_slice %9 {offsets = [0, 0], sizes = [4, 256], strides = [1, 1]} : vector<8x256xf32> to vector<4x256xf32>
    %cst = arith.constant 1.000000e+00 : f32
    %11 = vector.broadcast %cst : f32 to vector<4x256xf32>
    %12 = arith.addf %11, %10 : vector<4x256xf32>
    %13 = arith.mulf %7, %12 : vector<4x256xf32>
    %14 = vector.extract_strided_slice %9 {offsets = [4, 0], sizes = [4, 256], strides = [1, 1]} : vector<8x256xf32> to vector<4x256xf32>
    %15 = arith.addf %13, %14 : vector<4x256xf32>
    %cst_9 = arith.constant 0.000000e+00 : f32
    %16 = vector.broadcast %cst_9 : f32 to vector<4x256xf32>
    %17 = arith.maximumf %15, %16 : vector<4x256xf32>
    %18 = tpu.iota {dimensions = array<i32: 1>} : vector<1x256xi32>
    %c16_i32 = arith.constant 16 : i32
    %c0_i32 = arith.constant 0 : i32
    %19 = arith.cmpi eq, %c16_i32, %c0_i32 : i32
    %c1_i32 = arith.constant 1 : i32
    %20 = arith.select %19, %c1_i32, %c16_i32 : i32
    %21 = vector.broadcast %20 : i32 to vector<1x256xi32>
    %22 = arith.remsi %18, %21 : vector<1x256xi32>
    %c0_i32_10 = arith.constant 0 : i32
    %23 = vector.broadcast %c0_i32_10 : i32 to vector<1x256xi32>
    %24 = arith.cmpi ne, %22, %23 : vector<1x256xi32>
    %c0_i32_11 = arith.constant 0 : i32
    %25 = vector.broadcast %c0_i32_11 : i32 to vector<1x256xi32>
    %26 = arith.cmpi slt, %22, %25 : vector<1x256xi32>
    %c0_i32_12 = arith.constant 0 : i32
    %27 = arith.cmpi slt, %20, %c0_i32_12 : i32
    %28 = vector.broadcast %27 : i1 to vector<1x256xi1>
    %29 = vector.broadcast %28 : vector<1x256xi1> to vector<1x256xi1>
    %30 = arith.xori %26, %29 : vector<1x256xi1>
    %31 = arith.andi %30, %24 : vector<1x256xi1>
    %32 = vector.broadcast %20 : i32 to vector<1x256xi32>
    %33 = arith.addi %22, %32 : vector<1x256xi32>
    %34 = arith.select %31, %33, %22 : vector<1x256xi1>, vector<1x256xi32>
    %cst_13 = arith.constant 0.000000e+00 : f32
    %35 = vector.broadcast %cst_13 : f32 to vector<4x256xf32>
    %c15_i32 = arith.constant 15 : i32
    %36 = vector.broadcast %c15_i32 : i32 to vector<1x256xi32>
    %37 = arith.cmpi ne, %34, %36 : vector<1x256xi32>
    %38 = vector.shape_cast %37 : vector<1x256xi1> to vector<1x256xi1>
    %39 = vector.broadcast %38 : vector<1x256xi1> to vector<4x256xi1>
    %40 = arith.select %39, %17, %35 : vector<4x256xi1>, vector<4x256xf32>
    %41 = arith.truncf %40 : vector<4x256xf32> to vector<4x256xbf16>
    %42 = arith.truncf %17 : vector<4x256xf32> to vector<4x256xbf16>
    %c0_i32_14 = arith.constant 0 : i32
    %43 = vector.broadcast %c0_i32_14 : i32 to vector<1x256xi32>
    %44 = arith.cmpi ne, %34, %43 : vector<1x256xi32>
    %45 = vector.shape_cast %44 : vector<1x256xi1> to vector<1x256xi1>
    %46 = vector.broadcast %45 : vector<1x256xi1> to vector<4x256xi1>
    %47 = arith.select %46, %17, %35 : vector<4x256xi1>, vector<4x256xf32>
    %48 = arith.truncf %47 : vector<4x256xf32> to vector<4x256xbf16>
    %cst_15 = arith.constant 0.000000e+00 : bf16
    %49 = vector.broadcast %cst_15 : bf16 to vector<4x17xbf16>
    %50 = vector.extract_strided_slice %41 {offsets = [0, 0], sizes = [4, 239], strides = [1, 1]} : vector<4x256xbf16> to vector<4x239xbf16>
    %51 = tpu.concatenate %49, %50 in 1 : vector<4x17xbf16>, vector<4x239xbf16> -> vector<4x256xbf16>
    %c0_16 = arith.constant 0 : index
    %c0_17 = arith.constant 0 : index
    %c0_18 = arith.constant 0 : index
    %52 = vector.load %arg5[%c0_16, %c0_17, %c0_18] : memref<9x4x4xbf16, #tpu.memory_space<vmem>>, vector<1x4x4xbf16>
    %53 = vector.shape_cast %52 : vector<1x4x4xbf16> to vector<4x4xbf16>
    %cst_19 = arith.constant dense<0.000000e+00> : vector<4x256xf32>
    %54 = tpu.matmul %53, %51, %cst_19 {dimension_numbers = #tpu.dot_dimension_numbers<[1], [0], [0], [1], [0, 0, 1, 1], [], []>} : vector<4x4xbf16>, vector<4x256xbf16>, vector<4x256xf32> -> vector<4x256xf32>
    %cst_20 = arith.constant 0.000000e+00 : bf16
    %55 = vector.broadcast %cst_20 : bf16 to vector<4x16xbf16>
    %56 = vector.extract_strided_slice %42 {offsets = [0, 0], sizes = [4, 240], strides = [1, 1]} : vector<4x256xbf16> to vector<4x240xbf16>
    %57 = tpu.concatenate %55, %56 in 1 : vector<4x16xbf16>, vector<4x240xbf16> -> vector<4x256xbf16>
    %c1 = arith.constant 1 : index
    %c0_21 = arith.constant 0 : index
    %c0_22 = arith.constant 0 : index
    %58 = vector.load %arg5[%c1, %c0_21, %c0_22] : memref<9x4x4xbf16, #tpu.memory_space<vmem>>, vector<1x4x4xbf16>
    %59 = vector.shape_cast %58 : vector<1x4x4xbf16> to vector<4x4xbf16>
    %cst_23 = arith.constant dense<0.000000e+00> : vector<4x256xf32>
    %60 = tpu.matmul %59, %57, %cst_23 {dimension_numbers = #tpu.dot_dimension_numbers<[1], [0], [0], [1], [0, 0, 1, 1], [], []>} : vector<4x4xbf16>, vector<4x256xbf16>, vector<4x256xf32> -> vector<4x256xf32>
    %61 = arith.addf %54, %60 : vector<4x256xf32>
    %cst_24 = arith.constant 0.000000e+00 : bf16
    %62 = vector.broadcast %cst_24 : bf16 to vector<4x15xbf16>
    %63 = vector.extract_strided_slice %48 {offsets = [0, 0], sizes = [4, 241], strides = [1, 1]} : vector<4x256xbf16> to vector<4x241xbf16>
    %64 = tpu.concatenate %62, %63 in 1 : vector<4x15xbf16>, vector<4x241xbf16> -> vector<4x256xbf16>
    %c2 = arith.constant 2 : index
    %c0_25 = arith.constant 0 : index
    %c0_26 = arith.constant 0 : index
    %65 = vector.load %arg5[%c2, %c0_25, %c0_26] : memref<9x4x4xbf16, #tpu.memory_space<vmem>>, vector<1x4x4xbf16>
    %66 = vector.shape_cast %65 : vector<1x4x4xbf16> to vector<4x4xbf16>
    %cst_27 = arith.constant dense<0.000000e+00> : vector<4x256xf32>
    %67 = tpu.matmul %66, %64, %cst_27 {dimension_numbers = #tpu.dot_dimension_numbers<[1], [0], [0], [1], [0, 0, 1, 1], [], []>} : vector<4x4xbf16>, vector<4x256xbf16>, vector<4x256xf32> -> vector<4x256xf32>
    %68 = arith.addf %61, %67 : vector<4x256xf32>
    %cst_28 = arith.constant 0.000000e+00 : bf16
    %69 = vector.broadcast %cst_28 : bf16 to vector<4x1xbf16>
    %70 = vector.extract_strided_slice %41 {offsets = [0, 0], sizes = [4, 255], strides = [1, 1]} : vector<4x256xbf16> to vector<4x255xbf16>
    %71 = tpu.concatenate %69, %70 in 1 : vector<4x1xbf16>, vector<4x255xbf16> -> vector<4x256xbf16>
    %c3 = arith.constant 3 : index
    %c0_29 = arith.constant 0 : index
    %c0_30 = arith.constant 0 : index
    %72 = vector.load %arg5[%c3, %c0_29, %c0_30] : memref<9x4x4xbf16, #tpu.memory_space<vmem>>, vector<1x4x4xbf16>
    %73 = vector.shape_cast %72 : vector<1x4x4xbf16> to vector<4x4xbf16>
    %cst_31 = arith.constant dense<0.000000e+00> : vector<4x256xf32>
    %74 = tpu.matmul %73, %71, %cst_31 {dimension_numbers = #tpu.dot_dimension_numbers<[1], [0], [0], [1], [0, 0, 1, 1], [], []>} : vector<4x4xbf16>, vector<4x256xbf16>, vector<4x256xf32> -> vector<4x256xf32>
    %75 = arith.addf %68, %74 : vector<4x256xf32>
    %c4 = arith.constant 4 : index
    %c0_32 = arith.constant 0 : index
    %c0_33 = arith.constant 0 : index
    %76 = vector.load %arg5[%c4, %c0_32, %c0_33] : memref<9x4x4xbf16, #tpu.memory_space<vmem>>, vector<1x4x4xbf16>
    %77 = vector.shape_cast %76 : vector<1x4x4xbf16> to vector<4x4xbf16>
    %cst_34 = arith.constant dense<0.000000e+00> : vector<4x256xf32>
    %78 = tpu.matmul %77, %42, %cst_34 {dimension_numbers = #tpu.dot_dimension_numbers<[1], [0], [0], [1], [0, 0, 1, 1], [], []>} : vector<4x4xbf16>, vector<4x256xbf16>, vector<4x256xf32> -> vector<4x256xf32>
    %79 = arith.addf %75, %78 : vector<4x256xf32>
    %80 = vector.extract_strided_slice %48 {offsets = [0, 1], sizes = [4, 255], strides = [1, 1]} : vector<4x256xbf16> to vector<4x255xbf16>
    %cst_35 = arith.constant 0.000000e+00 : bf16
    %81 = vector.broadcast %cst_35 : bf16 to vector<4x1xbf16>
    %82 = tpu.concatenate %80, %81 in 1 : vector<4x255xbf16>, vector<4x1xbf16> -> vector<4x256xbf16>
    %c5 = arith.constant 5 : index
    %c0_36 = arith.constant 0 : index
    %c0_37 = arith.constant 0 : index
    %83 = vector.load %arg5[%c5, %c0_36, %c0_37] : memref<9x4x4xbf16, #tpu.memory_space<vmem>>, vector<1x4x4xbf16>
    %84 = vector.shape_cast %83 : vector<1x4x4xbf16> to vector<4x4xbf16>
    %cst_38 = arith.constant dense<0.000000e+00> : vector<4x256xf32>
    %85 = tpu.matmul %84, %82, %cst_38 {dimension_numbers = #tpu.dot_dimension_numbers<[1], [0], [0], [1], [0, 0, 1, 1], [], []>} : vector<4x4xbf16>, vector<4x256xbf16>, vector<4x256xf32> -> vector<4x256xf32>
    %86 = arith.addf %79, %85 : vector<4x256xf32>
    %87 = vector.extract_strided_slice %41 {offsets = [0, 15], sizes = [4, 241], strides = [1, 1]} : vector<4x256xbf16> to vector<4x241xbf16>
    %cst_39 = arith.constant 0.000000e+00 : bf16
    %88 = vector.broadcast %cst_39 : bf16 to vector<4x15xbf16>
    %89 = tpu.concatenate %87, %88 in 1 : vector<4x241xbf16>, vector<4x15xbf16> -> vector<4x256xbf16>
    %c6 = arith.constant 6 : index
    %c0_40 = arith.constant 0 : index
    %c0_41 = arith.constant 0 : index
    %90 = vector.load %arg5[%c6, %c0_40, %c0_41] : memref<9x4x4xbf16, #tpu.memory_space<vmem>>, vector<1x4x4xbf16>
    %91 = vector.shape_cast %90 : vector<1x4x4xbf16> to vector<4x4xbf16>
    %cst_42 = arith.constant dense<0.000000e+00> : vector<4x256xf32>
    %92 = tpu.matmul %91, %89, %cst_42 {dimension_numbers = #tpu.dot_dimension_numbers<[1], [0], [0], [1], [0, 0, 1, 1], [], []>} : vector<4x4xbf16>, vector<4x256xbf16>, vector<4x256xf32> -> vector<4x256xf32>
    %93 = arith.addf %86, %92 : vector<4x256xf32>
    %94 = vector.extract_strided_slice %42 {offsets = [0, 16], sizes = [4, 240], strides = [1, 1]} : vector<4x256xbf16> to vector<4x240xbf16>
    %cst_43 = arith.constant 0.000000e+00 : bf16
    %95 = vector.broadcast %cst_43 : bf16 to vector<4x16xbf16>
    %96 = tpu.concatenate %94, %95 in 1 : vector<4x240xbf16>, vector<4x16xbf16> -> vector<4x256xbf16>
    %c7 = arith.constant 7 : index
    %c0_44 = arith.constant 0 : index
    %c0_45 = arith.constant 0 : index
    %97 = vector.load %arg5[%c7, %c0_44, %c0_45] : memref<9x4x4xbf16, #tpu.memory_space<vmem>>, vector<1x4x4xbf16>
    %98 = vector.shape_cast %97 : vector<1x4x4xbf16> to vector<4x4xbf16>
    %cst_46 = arith.constant dense<0.000000e+00> : vector<4x256xf32>
    %99 = tpu.matmul %98, %96, %cst_46 {dimension_numbers = #tpu.dot_dimension_numbers<[1], [0], [0], [1], [0, 0, 1, 1], [], []>} : vector<4x4xbf16>, vector<4x256xbf16>, vector<4x256xf32> -> vector<4x256xf32>
    %100 = arith.addf %93, %99 : vector<4x256xf32>
    %101 = vector.extract_strided_slice %48 {offsets = [0, 17], sizes = [4, 239], strides = [1, 1]} : vector<4x256xbf16> to vector<4x239xbf16>
    %cst_47 = arith.constant 0.000000e+00 : bf16
    %102 = vector.broadcast %cst_47 : bf16 to vector<4x17xbf16>
    %103 = tpu.concatenate %101, %102 in 1 : vector<4x239xbf16>, vector<4x17xbf16> -> vector<4x256xbf16>
    %c8 = arith.constant 8 : index
    %c0_48 = arith.constant 0 : index
    %c0_49 = arith.constant 0 : index
    %104 = vector.load %arg5[%c8, %c0_48, %c0_49] : memref<9x4x4xbf16, #tpu.memory_space<vmem>>, vector<1x4x4xbf16>
    %105 = vector.shape_cast %104 : vector<1x4x4xbf16> to vector<4x4xbf16>
    %cst_50 = arith.constant dense<0.000000e+00> : vector<4x256xf32>
    %106 = tpu.matmul %105, %103, %cst_50 {dimension_numbers = #tpu.dot_dimension_numbers<[1], [0], [0], [1], [0, 0, 1, 1], [], []>} : vector<4x4xbf16>, vector<4x256xbf16>, vector<4x256xf32> -> vector<4x256xf32>
    %107 = arith.addf %100, %106 : vector<4x256xf32>
    %c0_51 = arith.constant 0 : index
    %c0_52 = arith.constant 0 : index
    %108 = vector.load %arg6[%c0_51, %c0_52] : memref<4x1xf32, #tpu.memory_space<vmem>>, vector<4x1xf32>
    %109 = vector.broadcast %108 : vector<4x1xf32> to vector<4x256xf32>
    %110 = arith.addf %107, %109 : vector<4x256xf32>
    %c0_i32_53 = arith.constant 0 : i32
    %111 = arith.cmpi eq, %arg0, %c0_i32_53 : i32
    %112 = arith.extui %111 : i1 to i32
    %c0_i32_54 = arith.constant 0 : i32
    %113 = arith.cmpi ne, %112, %c0_i32_54 : i32
    scf.if %113 {
      %cst_65 = arith.constant 0.000000e+00 : f32
      %125 = vector.broadcast %cst_65 : f32 to vector<4x1xf32>
      %c0_66 = arith.constant 0 : index
      %c0_67 = arith.constant 0 : index
      %126 = vector.load %arg9[%c0_66, %c0_67] : memref<4x1xf32, #tpu.memory_space<vmem>>, vector<4x1xf32>
      tpu.vector_store %arg9[%c0_66, %c0_67], %125 {strides = array<i32>} : memref<4x1xf32, #tpu.memory_space<vmem>>, vector<4x1xf32>,
    } else {
    }
    %c0_55 = arith.constant 0 : index
    %c0_56 = arith.constant 0 : index
    %114 = vector.load %arg9[%c0_55, %c0_56] : memref<4x1xf32, #tpu.memory_space<vmem>>, vector<4x1xf32>
    %cst_57 = arith.constant dense<0.000000e+00> : vector<4xf32>
    %115 = vector.multi_reduction <add>, %110, %cst_57 [1] : vector<4x256xf32> to vector<4xf32>
    %116 = vector.shape_cast %115 : vector<4xf32> to vector<4x1xf32>
    %117 = arith.addf %114, %116 : vector<4x1xf32>
    %c0_58 = arith.constant 0 : index
    %c0_59 = arith.constant 0 : index
    %118 = vector.load %arg9[%c0_58, %c0_59] : memref<4x1xf32, #tpu.memory_space<vmem>>, vector<4x1xf32>
    tpu.vector_store %arg9[%c0_58, %c0_59], %117 {strides = array<i32>} : memref<4x1xf32, #tpu.memory_space<vmem>>, vector<4x1xf32>,
    %c1_i32_60 = arith.constant 1 : i32
    %119 = arith.cmpi eq, %arg0, %c1_i32_60 : i32
    %120 = arith.extui %119 : i1 to i32
    %c0_i32_61 = arith.constant 0 : i32
    %121 = arith.cmpi ne, %120, %c0_i32_61 : i32
    scf.if %121 {
      %c0_65 = arith.constant 0 : index
      %c0_66 = arith.constant 0 : index
      %125 = vector.load %arg9[%c0_65, %c0_66] : memref<4x1xf32, #tpu.memory_space<vmem>>, vector<4x1xf32>
      %c0_67 = arith.constant 0 : index
      %c0_68 = arith.constant 0 : index
      %126 = vector.load %arg8[%c0_67, %c0_68] : memref<4x1xf32, #tpu.memory_space<vmem>>, vector<4x1xf32>
      tpu.vector_store %arg8[%c0_67, %c0_68], %125 {strides = array<i32>} : memref<4x1xf32, #tpu.memory_space<vmem>>, vector<4x1xf32>,
    } else {
    }
    %c0_62 = arith.constant 0 : index
    %c0_63 = arith.constant 0 : index
    %c0_64 = arith.constant 0 : index
    %122 = vector.load %arg7[%c0_62, %c0_63, %c0_64] : memref<1x4x256xf32, #tpu.memory_space<vmem>>, vector<1x4x256xf32>
    %123 = vector.shape_cast %122 : vector<1x4x256xf32> to vector<4x256xf32>
    %124 = vector.shape_cast %110 : vector<4x256xf32> to vector<1x4x256xf32>
    tpu.vector_store %arg7[%c0_62, %c0_63, %c0_64], %124 {strides = array<i32>} : memref<1x4x256xf32, #tpu.memory_space<vmem>>, vector<1x4x256xf32>,
    return
  }
  func.func @transform_0(%arg0: i32) -> (i32, i32) {
    %c0_i32 = arith.constant 0 : i32
    %c0_i32_0 = arith.constant 0 : i32
    %c0_i32_1 = arith.constant 0 : i32
    return %c0_i32, %c0_i32_0 : i32, i32
  }
  func.func @transform_1(%arg0: i32) -> (i32, i32) {
    %c0_i32 = arith.constant 0 : i32
    %c0_i32_0 = arith.constant 0 : i32
    %c0_i32_1 = arith.constant 0 : i32
    return %c0_i32, %c0_i32_0 : i32, i32
  }
  func.func @transform_2(%arg0: i32) -> (i32, i32, i32) {
    %c0_i32 = arith.constant 0 : i32
    %c0_i32_0 = arith.constant 0 : i32
    %c0_i32_1 = arith.constant 0 : i32
    return %arg0, %c0_i32, %c0_i32_0 : i32, i32, i32
  }
  func.func @transform_3(%arg0: i32) -> (i32, i32, i32) {
    %c0_i32 = arith.constant 0 : i32
    %c0_i32_0 = arith.constant 0 : i32
    %c0_i32_1 = arith.constant 0 : i32
    return %arg0, %c0_i32, %c0_i32_0 : i32, i32, i32
  }
  func.func @transform_4(%arg0: i32) -> (i32, i32, i32) {
    %c0_i32 = arith.constant 0 : i32
    %c0_i32_0 = arith.constant 0 : i32
    %c0_i32_1 = arith.constant 0 : i32
    %c0_i32_2 = arith.constant 0 : i32
    return %c0_i32, %c0_i32_0, %c0_i32_1 : i32, i32, i32
  }
  func.func @transform_5(%arg0: i32) -> (i32, i32) {
    %c0_i32 = arith.constant 0 : i32
    %c0_i32_0 = arith.constant 0 : i32
    %c0_i32_1 = arith.constant 0 : i32
    return %c0_i32, %c0_i32_0 : i32, i32
  }
  func.func @transform_6(%arg0: i32) -> (i32, i32, i32) {
    %c0_i32 = arith.constant 0 : i32
    %c0_i32_0 = arith.constant 0 : i32
    %c0_i32_1 = arith.constant 0 : i32
    return %arg0, %c0_i32, %c0_i32_0 : i32, i32, i32
  }
  func.func @transform_7(%arg0: i32) -> (i32, i32) {
    %c0_i32 = arith.constant 0 : i32
    %c0_i32_0 = arith.constant 0 : i32
    %c0_i32_1 = arith.constant 0 : i32
    return %c0_i32, %c0_i32_0 : i32, i32
  }
}

module attributes {stable_mosaic.version = 11 : i64} {
  func.func @_conv3x3_kernel(%arg0: i32, %arg1: memref<4x1xf32, #tpu.memory_space<vmem>>, %arg2: memref<4x1xf32, #tpu.memory_space<vmem>>, %arg3: memref<1x8x256xf32, #tpu.memory_space<vmem>>, %arg4: memref<1x4x256xf32, #tpu.memory_space<vmem>>, %arg5: memref<9x4x4xbf16, #tpu.memory_space<vmem>>, %arg6: memref<4x1xf32, #tpu.memory_space<vmem>>, %arg7: memref<2xf32, #tpu.memory_space<smem>>, %arg8: memref<1x1x256xf32, #tpu.memory_space<vmem>>, %arg9: memref<1x4x256xf32, #tpu.memory_space<vmem>>, %arg10: memref<1x4x256xf32, #tpu.memory_space<vmem>>) attributes {dimension_semantics = [#tpu.dimension_semantics<parallel>], iteration_bounds = array<i64: 2>, scalar_prefetch = 0 : i64, scratch_operands = 0 : i64, tpu.core_type = #tpu.core_type<tc>, window_params = [{pipeline_mode = #tpu.pipeline_mode<synchronous>, transform_indices = @transform_0, window_bounds = array<i64: 4, 1>}, {pipeline_mode = #tpu.pipeline_mode<synchronous>, transform_indices = @transform_1, window_bounds = array<i64: 4, 1>}, {transform_indices = @transform_2, window_bounds = array<i64: 1, 8, 256>}, {transform_indices = @transform_3, window_bounds = array<i64: 1, 4, 256>}, {pipeline_mode = #tpu.pipeline_mode<synchronous>, transform_indices = @transform_4, window_bounds = array<i64: 9, 4, 4>}, {pipeline_mode = #tpu.pipeline_mode<synchronous>, transform_indices = @transform_5, window_bounds = array<i64: 4, 1>}, {transform_indices = @transform_6, window_bounds = array<i64: 2>}, {transform_indices = @transform_7, window_bounds = array<i64: 1, 1, 256>}, {transform_indices = @transform_8, window_bounds = array<i64: 1, 4, 256>}, {transform_indices = @transform_9, window_bounds = array<i64: 1, 4, 256>}]} {
    %c0 = arith.constant 0 : index
    %c0_0 = arith.constant 0 : index
    %c0_1 = arith.constant 0 : index
    %0 = vector.load %arg4[%c0, %c0_0, %c0_1] : memref<1x4x256xf32, #tpu.memory_space<vmem>>, vector<1x4x256xf32>
    %1 = vector.shape_cast %0 : vector<1x4x256xf32> to vector<4x256xf32>
    %c0_2 = arith.constant 0 : index
    %c0_3 = arith.constant 0 : index
    %2 = vector.load %arg1[%c0_2, %c0_3] : memref<4x1xf32, #tpu.memory_space<vmem>>, vector<4x1xf32>
    %3 = vector.broadcast %2 : vector<4x1xf32> to vector<4x256xf32>
    %4 = arith.mulf %1, %3 : vector<4x256xf32>
    %c0_4 = arith.constant 0 : index
    %c0_5 = arith.constant 0 : index
    %5 = vector.load %arg2[%c0_4, %c0_5] : memref<4x1xf32, #tpu.memory_space<vmem>>, vector<4x1xf32>
    %6 = vector.broadcast %5 : vector<4x1xf32> to vector<4x256xf32>
    %7 = arith.addf %4, %6 : vector<4x256xf32>
    %c0_6 = arith.constant 0 : index
    %c0_7 = arith.constant 0 : index
    %c0_8 = arith.constant 0 : index
    %8 = vector.load %arg3[%c0_6, %c0_7, %c0_8] : memref<1x8x256xf32, #tpu.memory_space<vmem>>, vector<1x8x256xf32>
    %9 = vector.shape_cast %8 : vector<1x8x256xf32> to vector<8x256xf32>
    %10 = vector.extract_strided_slice %9 {offsets = [0, 0], sizes = [4, 256], strides = [1, 1]} : vector<8x256xf32> to vector<4x256xf32>
    %cst = arith.constant 1.000000e+00 : f32
    %11 = vector.broadcast %cst : f32 to vector<4x256xf32>
    %12 = arith.addf %11, %10 : vector<4x256xf32>
    %13 = arith.mulf %7, %12 : vector<4x256xf32>
    %14 = vector.extract_strided_slice %9 {offsets = [4, 0], sizes = [4, 256], strides = [1, 1]} : vector<8x256xf32> to vector<4x256xf32>
    %15 = arith.addf %13, %14 : vector<4x256xf32>
    %cst_9 = arith.constant 0.000000e+00 : f32
    %16 = vector.broadcast %cst_9 : f32 to vector<4x256xf32>
    %17 = arith.maximumf %15, %16 : vector<4x256xf32>
    %18 = tpu.iota {dimensions = array<i32: 1>} : vector<1x256xi32>
    %c16_i32 = arith.constant 16 : i32
    %c0_i32 = arith.constant 0 : i32
    %19 = arith.cmpi eq, %c16_i32, %c0_i32 : i32
    %c1_i32 = arith.constant 1 : i32
    %20 = arith.select %19, %c1_i32, %c16_i32 : i32
    %21 = vector.broadcast %20 : i32 to vector<1x256xi32>
    %22 = arith.remsi %18, %21 : vector<1x256xi32>
    %c0_i32_10 = arith.constant 0 : i32
    %23 = vector.broadcast %c0_i32_10 : i32 to vector<1x256xi32>
    %24 = arith.cmpi ne, %22, %23 : vector<1x256xi32>
    %c0_i32_11 = arith.constant 0 : i32
    %25 = vector.broadcast %c0_i32_11 : i32 to vector<1x256xi32>
    %26 = arith.cmpi slt, %22, %25 : vector<1x256xi32>
    %c0_i32_12 = arith.constant 0 : i32
    %27 = arith.cmpi slt, %20, %c0_i32_12 : i32
    %28 = vector.broadcast %27 : i1 to vector<1x256xi1>
    %29 = vector.broadcast %28 : vector<1x256xi1> to vector<1x256xi1>
    %30 = arith.xori %26, %29 : vector<1x256xi1>
    %31 = arith.andi %30, %24 : vector<1x256xi1>
    %32 = vector.broadcast %20 : i32 to vector<1x256xi32>
    %33 = arith.addi %22, %32 : vector<1x256xi32>
    %34 = arith.select %31, %33, %22 : vector<1x256xi1>, vector<1x256xi32>
    %cst_13 = arith.constant 0.000000e+00 : f32
    %35 = vector.broadcast %cst_13 : f32 to vector<4x256xf32>
    %c15_i32 = arith.constant 15 : i32
    %36 = vector.broadcast %c15_i32 : i32 to vector<1x256xi32>
    %37 = arith.cmpi ne, %34, %36 : vector<1x256xi32>
    %38 = vector.shape_cast %37 : vector<1x256xi1> to vector<1x256xi1>
    %39 = vector.broadcast %38 : vector<1x256xi1> to vector<4x256xi1>
    %40 = arith.select %39, %17, %35 : vector<4x256xi1>, vector<4x256xf32>
    %41 = arith.truncf %40 : vector<4x256xf32> to vector<4x256xbf16>
    %42 = arith.truncf %17 : vector<4x256xf32> to vector<4x256xbf16>
    %c0_i32_14 = arith.constant 0 : i32
    %43 = vector.broadcast %c0_i32_14 : i32 to vector<1x256xi32>
    %44 = arith.cmpi ne, %34, %43 : vector<1x256xi32>
    %45 = vector.shape_cast %44 : vector<1x256xi1> to vector<1x256xi1>
    %46 = vector.broadcast %45 : vector<1x256xi1> to vector<4x256xi1>
    %47 = arith.select %46, %17, %35 : vector<4x256xi1>, vector<4x256xf32>
    %48 = arith.truncf %47 : vector<4x256xf32> to vector<4x256xbf16>
    %cst_15 = arith.constant 0.000000e+00 : bf16
    %49 = vector.broadcast %cst_15 : bf16 to vector<4x17xbf16>
    %50 = vector.extract_strided_slice %41 {offsets = [0, 0], sizes = [4, 239], strides = [1, 1]} : vector<4x256xbf16> to vector<4x239xbf16>
    %51 = tpu.concatenate %49, %50 in 1 : vector<4x17xbf16>, vector<4x239xbf16> -> vector<4x256xbf16>
    %c0_16 = arith.constant 0 : index
    %c0_17 = arith.constant 0 : index
    %c0_18 = arith.constant 0 : index
    %52 = vector.load %arg5[%c0_16, %c0_17, %c0_18] : memref<9x4x4xbf16, #tpu.memory_space<vmem>>, vector<1x4x4xbf16>
    %53 = vector.shape_cast %52 : vector<1x4x4xbf16> to vector<4x4xbf16>
    %cst_19 = arith.constant dense<0.000000e+00> : vector<4x256xf32>
    %54 = tpu.matmul %53, %51, %cst_19 {dimension_numbers = #tpu.dot_dimension_numbers<[1], [0], [0], [1], [0, 0, 1, 1], [], []>} : vector<4x4xbf16>, vector<4x256xbf16>, vector<4x256xf32> -> vector<4x256xf32>
    %cst_20 = arith.constant 0.000000e+00 : bf16
    %55 = vector.broadcast %cst_20 : bf16 to vector<4x16xbf16>
    %56 = vector.extract_strided_slice %42 {offsets = [0, 0], sizes = [4, 240], strides = [1, 1]} : vector<4x256xbf16> to vector<4x240xbf16>
    %57 = tpu.concatenate %55, %56 in 1 : vector<4x16xbf16>, vector<4x240xbf16> -> vector<4x256xbf16>
    %c1 = arith.constant 1 : index
    %c0_21 = arith.constant 0 : index
    %c0_22 = arith.constant 0 : index
    %58 = vector.load %arg5[%c1, %c0_21, %c0_22] : memref<9x4x4xbf16, #tpu.memory_space<vmem>>, vector<1x4x4xbf16>
    %59 = vector.shape_cast %58 : vector<1x4x4xbf16> to vector<4x4xbf16>
    %cst_23 = arith.constant dense<0.000000e+00> : vector<4x256xf32>
    %60 = tpu.matmul %59, %57, %cst_23 {dimension_numbers = #tpu.dot_dimension_numbers<[1], [0], [0], [1], [0, 0, 1, 1], [], []>} : vector<4x4xbf16>, vector<4x256xbf16>, vector<4x256xf32> -> vector<4x256xf32>
    %61 = arith.addf %54, %60 : vector<4x256xf32>
    %cst_24 = arith.constant 0.000000e+00 : bf16
    %62 = vector.broadcast %cst_24 : bf16 to vector<4x15xbf16>
    %63 = vector.extract_strided_slice %48 {offsets = [0, 0], sizes = [4, 241], strides = [1, 1]} : vector<4x256xbf16> to vector<4x241xbf16>
    %64 = tpu.concatenate %62, %63 in 1 : vector<4x15xbf16>, vector<4x241xbf16> -> vector<4x256xbf16>
    %c2 = arith.constant 2 : index
    %c0_25 = arith.constant 0 : index
    %c0_26 = arith.constant 0 : index
    %65 = vector.load %arg5[%c2, %c0_25, %c0_26] : memref<9x4x4xbf16, #tpu.memory_space<vmem>>, vector<1x4x4xbf16>
    %66 = vector.shape_cast %65 : vector<1x4x4xbf16> to vector<4x4xbf16>
    %cst_27 = arith.constant dense<0.000000e+00> : vector<4x256xf32>
    %67 = tpu.matmul %66, %64, %cst_27 {dimension_numbers = #tpu.dot_dimension_numbers<[1], [0], [0], [1], [0, 0, 1, 1], [], []>} : vector<4x4xbf16>, vector<4x256xbf16>, vector<4x256xf32> -> vector<4x256xf32>
    %68 = arith.addf %61, %67 : vector<4x256xf32>
    %cst_28 = arith.constant 0.000000e+00 : bf16
    %69 = vector.broadcast %cst_28 : bf16 to vector<4x1xbf16>
    %70 = vector.extract_strided_slice %41 {offsets = [0, 0], sizes = [4, 255], strides = [1, 1]} : vector<4x256xbf16> to vector<4x255xbf16>
    %71 = tpu.concatenate %69, %70 in 1 : vector<4x1xbf16>, vector<4x255xbf16> -> vector<4x256xbf16>
    %c3 = arith.constant 3 : index
    %c0_29 = arith.constant 0 : index
    %c0_30 = arith.constant 0 : index
    %72 = vector.load %arg5[%c3, %c0_29, %c0_30] : memref<9x4x4xbf16, #tpu.memory_space<vmem>>, vector<1x4x4xbf16>
    %73 = vector.shape_cast %72 : vector<1x4x4xbf16> to vector<4x4xbf16>
    %cst_31 = arith.constant dense<0.000000e+00> : vector<4x256xf32>
    %74 = tpu.matmul %73, %71, %cst_31 {dimension_numbers = #tpu.dot_dimension_numbers<[1], [0], [0], [1], [0, 0, 1, 1], [], []>} : vector<4x4xbf16>, vector<4x256xbf16>, vector<4x256xf32> -> vector<4x256xf32>
    %75 = arith.addf %68, %74 : vector<4x256xf32>
    %c4 = arith.constant 4 : index
    %c0_32 = arith.constant 0 : index
    %c0_33 = arith.constant 0 : index
    %76 = vector.load %arg5[%c4, %c0_32, %c0_33] : memref<9x4x4xbf16, #tpu.memory_space<vmem>>, vector<1x4x4xbf16>
    %77 = vector.shape_cast %76 : vector<1x4x4xbf16> to vector<4x4xbf16>
    %cst_34 = arith.constant dense<0.000000e+00> : vector<4x256xf32>
    %78 = tpu.matmul %77, %42, %cst_34 {dimension_numbers = #tpu.dot_dimension_numbers<[1], [0], [0], [1], [0, 0, 1, 1], [], []>} : vector<4x4xbf16>, vector<4x256xbf16>, vector<4x256xf32> -> vector<4x256xf32>
    %79 = arith.addf %75, %78 : vector<4x256xf32>
    %80 = vector.extract_strided_slice %48 {offsets = [0, 1], sizes = [4, 255], strides = [1, 1]} : vector<4x256xbf16> to vector<4x255xbf16>
    %cst_35 = arith.constant 0.000000e+00 : bf16
    %81 = vector.broadcast %cst_35 : bf16 to vector<4x1xbf16>
    %82 = tpu.concatenate %80, %81 in 1 : vector<4x255xbf16>, vector<4x1xbf16> -> vector<4x256xbf16>
    %c5 = arith.constant 5 : index
    %c0_36 = arith.constant 0 : index
    %c0_37 = arith.constant 0 : index
    %83 = vector.load %arg5[%c5, %c0_36, %c0_37] : memref<9x4x4xbf16, #tpu.memory_space<vmem>>, vector<1x4x4xbf16>
    %84 = vector.shape_cast %83 : vector<1x4x4xbf16> to vector<4x4xbf16>
    %cst_38 = arith.constant dense<0.000000e+00> : vector<4x256xf32>
    %85 = tpu.matmul %84, %82, %cst_38 {dimension_numbers = #tpu.dot_dimension_numbers<[1], [0], [0], [1], [0, 0, 1, 1], [], []>} : vector<4x4xbf16>, vector<4x256xbf16>, vector<4x256xf32> -> vector<4x256xf32>
    %86 = arith.addf %79, %85 : vector<4x256xf32>
    %87 = vector.extract_strided_slice %41 {offsets = [0, 15], sizes = [4, 241], strides = [1, 1]} : vector<4x256xbf16> to vector<4x241xbf16>
    %cst_39 = arith.constant 0.000000e+00 : bf16
    %88 = vector.broadcast %cst_39 : bf16 to vector<4x15xbf16>
    %89 = tpu.concatenate %87, %88 in 1 : vector<4x241xbf16>, vector<4x15xbf16> -> vector<4x256xbf16>
    %c6 = arith.constant 6 : index
    %c0_40 = arith.constant 0 : index
    %c0_41 = arith.constant 0 : index
    %90 = vector.load %arg5[%c6, %c0_40, %c0_41] : memref<9x4x4xbf16, #tpu.memory_space<vmem>>, vector<1x4x4xbf16>
    %91 = vector.shape_cast %90 : vector<1x4x4xbf16> to vector<4x4xbf16>
    %cst_42 = arith.constant dense<0.000000e+00> : vector<4x256xf32>
    %92 = tpu.matmul %91, %89, %cst_42 {dimension_numbers = #tpu.dot_dimension_numbers<[1], [0], [0], [1], [0, 0, 1, 1], [], []>} : vector<4x4xbf16>, vector<4x256xbf16>, vector<4x256xf32> -> vector<4x256xf32>
    %93 = arith.addf %86, %92 : vector<4x256xf32>
    %94 = vector.extract_strided_slice %42 {offsets = [0, 16], sizes = [4, 240], strides = [1, 1]} : vector<4x256xbf16> to vector<4x240xbf16>
    %cst_43 = arith.constant 0.000000e+00 : bf16
    %95 = vector.broadcast %cst_43 : bf16 to vector<4x16xbf16>
    %96 = tpu.concatenate %94, %95 in 1 : vector<4x240xbf16>, vector<4x16xbf16> -> vector<4x256xbf16>
    %c7 = arith.constant 7 : index
    %c0_44 = arith.constant 0 : index
    %c0_45 = arith.constant 0 : index
    %97 = vector.load %arg5[%c7, %c0_44, %c0_45] : memref<9x4x4xbf16, #tpu.memory_space<vmem>>, vector<1x4x4xbf16>
    %98 = vector.shape_cast %97 : vector<1x4x4xbf16> to vector<4x4xbf16>
    %cst_46 = arith.constant dense<0.000000e+00> : vector<4x256xf32>
    %99 = tpu.matmul %98, %96, %cst_46 {dimension_numbers = #tpu.dot_dimension_numbers<[1], [0], [0], [1], [0, 0, 1, 1], [], []>} : vector<4x4xbf16>, vector<4x256xbf16>, vector<4x256xf32> -> vector<4x256xf32>
    %100 = arith.addf %93, %99 : vector<4x256xf32>
    %101 = vector.extract_strided_slice %48 {offsets = [0, 17], sizes = [4, 239], strides = [1, 1]} : vector<4x256xbf16> to vector<4x239xbf16>
    %cst_47 = arith.constant 0.000000e+00 : bf16
    %102 = vector.broadcast %cst_47 : bf16 to vector<4x17xbf16>
    %103 = tpu.concatenate %101, %102 in 1 : vector<4x239xbf16>, vector<4x17xbf16> -> vector<4x256xbf16>
    %c8 = arith.constant 8 : index
    %c0_48 = arith.constant 0 : index
    %c0_49 = arith.constant 0 : index
    %104 = vector.load %arg5[%c8, %c0_48, %c0_49] : memref<9x4x4xbf16, #tpu.memory_space<vmem>>, vector<1x4x4xbf16>
    %105 = vector.shape_cast %104 : vector<1x4x4xbf16> to vector<4x4xbf16>
    %cst_50 = arith.constant dense<0.000000e+00> : vector<4x256xf32>
    %106 = tpu.matmul %105, %103, %cst_50 {dimension_numbers = #tpu.dot_dimension_numbers<[1], [0], [0], [1], [0, 0, 1, 1], [], []>} : vector<4x4xbf16>, vector<4x256xbf16>, vector<4x256xf32> -> vector<4x256xf32>
    %107 = arith.addf %100, %106 : vector<4x256xf32>
    %c0_51 = arith.constant 0 : index
    %c0_52 = arith.constant 0 : index
    %108 = vector.load %arg6[%c0_51, %c0_52] : memref<4x1xf32, #tpu.memory_space<vmem>>, vector<4x1xf32>
    %109 = vector.broadcast %108 : vector<4x1xf32> to vector<4x256xf32>
    %110 = arith.addf %107, %109 : vector<4x256xf32>
    %c0_53 = arith.constant 0 : index
    %111 = memref.load %arg7[%c0_53] : memref<2xf32, #tpu.memory_space<smem>>
    %c0_54 = arith.constant 0 : index
    %c0_55 = arith.constant 0 : index
    %c0_56 = arith.constant 0 : index
    %112 = vector.load %arg8[%c0_54, %c0_55, %c0_56] : memref<1x1x256xf32, #tpu.memory_space<vmem>>, vector<1x1x256xf32>
    %113 = vector.shape_cast %112 : vector<1x1x256xf32> to vector<1x256xf32>
    %c0_57 = arith.constant 0 : index
    %c0_58 = arith.constant 0 : index
    %c0_59 = arith.constant 0 : index
    %114 = vector.load %arg9[%c0_57, %c0_58, %c0_59] : memref<1x4x256xf32, #tpu.memory_space<vmem>>, vector<1x4x256xf32>
    %115 = vector.shape_cast %114 : vector<1x4x256xf32> to vector<4x256xf32>
    %116 = vector.broadcast %113 : vector<1x256xf32> to vector<4x256xf32>
    %117 = arith.mulf %116, %115 : vector<4x256xf32>
    %118 = vector.broadcast %111 : f32 to vector<4x256xf32>
    %119 = arith.mulf %118, %117 : vector<4x256xf32>
    %c1_60 = arith.constant 1 : index
    %120 = memref.load %arg7[%c1_60] : memref<2xf32, #tpu.memory_space<smem>>
    %121 = vector.broadcast %120 : f32 to vector<4x256xf32>
    %122 = arith.mulf %121, %110 : vector<4x256xf32>
    %123 = arith.addf %119, %122 : vector<4x256xf32>
    %c0_61 = arith.constant 0 : index
    %c0_62 = arith.constant 0 : index
    %c0_63 = arith.constant 0 : index
    %124 = vector.load %arg10[%c0_61, %c0_62, %c0_63] : memref<1x4x256xf32, #tpu.memory_space<vmem>>, vector<1x4x256xf32>
    %125 = vector.shape_cast %124 : vector<1x4x256xf32> to vector<4x256xf32>
    %126 = vector.shape_cast %123 : vector<4x256xf32> to vector<1x4x256xf32>
    tpu.vector_store %arg10[%c0_61, %c0_62, %c0_63], %126 {strides = array<i32>} : memref<1x4x256xf32, #tpu.memory_space<vmem>>, vector<1x4x256xf32>,
    return
  }
  func.func @transform_0(%arg0: i32) -> (i32, i32) {
    %c0_i32 = arith.constant 0 : i32
    %c0_i32_0 = arith.constant 0 : i32
    %c0_i32_1 = arith.constant 0 : i32
    return %c0_i32, %c0_i32_0 : i32, i32
  }
  func.func @transform_1(%arg0: i32) -> (i32, i32) {
    %c0_i32 = arith.constant 0 : i32
    %c0_i32_0 = arith.constant 0 : i32
    %c0_i32_1 = arith.constant 0 : i32
    return %c0_i32, %c0_i32_0 : i32, i32
  }
  func.func @transform_2(%arg0: i32) -> (i32, i32, i32) {
    %c0_i32 = arith.constant 0 : i32
    %c0_i32_0 = arith.constant 0 : i32
    %c0_i32_1 = arith.constant 0 : i32
    return %arg0, %c0_i32, %c0_i32_0 : i32, i32, i32
  }
  func.func @transform_3(%arg0: i32) -> (i32, i32, i32) {
    %c0_i32 = arith.constant 0 : i32
    %c0_i32_0 = arith.constant 0 : i32
    %c0_i32_1 = arith.constant 0 : i32
    return %arg0, %c0_i32, %c0_i32_0 : i32, i32, i32
  }
  func.func @transform_4(%arg0: i32) -> (i32, i32, i32) {
    %c0_i32 = arith.constant 0 : i32
    %c0_i32_0 = arith.constant 0 : i32
    %c0_i32_1 = arith.constant 0 : i32
    %c0_i32_2 = arith.constant 0 : i32
    return %c0_i32, %c0_i32_0, %c0_i32_1 : i32, i32, i32
  }
  func.func @transform_5(%arg0: i32) -> (i32, i32) {
    %c0_i32 = arith.constant 0 : i32
    %c0_i32_0 = arith.constant 0 : i32
    %c0_i32_1 = arith.constant 0 : i32
    return %c0_i32, %c0_i32_0 : i32, i32
  }
  func.func @transform_6(%arg0: i32) -> i32 {
    %c0_i32 = arith.constant 0 : i32
    %c0_i32_0 = arith.constant 0 : i32
    return %c0_i32 : i32
  }
  func.func @transform_7(%arg0: i32) -> (i32, i32, i32) {
    %c0_i32 = arith.constant 0 : i32
    %c0_i32_0 = arith.constant 0 : i32
    %c0_i32_1 = arith.constant 0 : i32
    return %arg0, %c0_i32, %c0_i32_0 : i32, i32, i32
  }
  func.func @transform_8(%arg0: i32) -> (i32, i32, i32) {
    %c0_i32 = arith.constant 0 : i32
    %c0_i32_0 = arith.constant 0 : i32
    %c0_i32_1 = arith.constant 0 : i32
    return %arg0, %c0_i32, %c0_i32_0 : i32, i32, i32
  }
  func.func @transform_9(%arg0: i32) -> (i32, i32, i32) {
    %c0_i32 = arith.constant 0 : i32
    %c0_i32_0 = arith.constant 0 : i32
    %c0_i32_1 = arith.constant 0 : i32
    return %arg0, %c0_i32, %c0_i32_0 : i32, i32, i32
  }
}

</mosaic_0001>

<bundles_post_ra>
// kernel: tirg_spade_forward.11
= control target key start
LH: loop header
LB: loop body
LE: loop exit
PB: predicated region body
PF: predicated region fallthrough
CT: control target
= control target key end

     0   :  { %s502_s21 = smov 0   ;;  %s504_s22 = smov 0   ;;  %s584_s0 = inlined_call_operand.vmem [shape: f32[2,8,256], index: 0, kind: input, shape index: {}]   ;;  %s585_s1 = inlined_call_operand.vmem [shape: f32[8,1], index: 1, kind: input, shape index: {}]   ;;  %s586_s2 = inlined_call_operand.vmem [shape: f32[8,1], index: 2, kind: input, shape index: {}]   ;;  %s587_s3 = inlined_call_operand.vmem [shape: f32[8,1], index: 3, kind: output, shape index: {0}]   ;;  %s588_s4 = inlined_call_operand.vmem [shape: f32[8,1], index: 4, kind: output, shape index: {1}]   ;;  %s589_s5 = inlined_call_operand.vmem [shape: f32[8,1], index: 5, kind: output, shape index: {2}]   ;;  %s590_s6 = inlined_call_operand.vmem [shape: f32[8,1], index: 6, kind: output, shape index: {3}]  }
   0x1   :  { %s506_s23 = smov 0   ;;  %s508_s24 = smov 0  }
   0x2   :  { %s510_s25 = smov 0  }
   0x3 LB: > { %s26_s26 = sadd.s32 1, %s455_s23  ;;  %s29_s27 = sadd.s32 1, %s459_s24  ;;  %s463_s25 = sphi %s510_s25, %s17_s25   ;;  %s459_s24 = sphi %s508_s24, %s594_s24   ;;  %s455_s23 = sphi %s506_s23, %s593_s23   ;;  %s451_s22 = sphi %s504_s22, %s592_s22   ;;  %s447_s21 = sphi %s502_s21, %s591_s21  }
   0x4   : > { %p27_p0 = scmp.ge.s32.totalorder %s26_s26, 2  ;;  %p371_p1 = scmp.ge.s32.totalorder %s463_s25, 1 }
   0x5   : > { %p211_p2 = scmp.lt.s32.totalorder %s463_s25, 5 }
   0x6   : > { %s596_s26 = smov (%p27_p0, %s26_s26), 0  ;;  %s598_s27 = smov (!%p27_p0, %s29_s27), %s459_s24 }
   0x7   : > { %p212_p3 = pnand %p371_p1, %p211_p2  ;;  %p31_p4 = scmp.ge.s32.totalorder %s598_s27, 2 }
   0x8   : > { %p236_p5 = scmp.lt.s32.totalorder (!%p212_p3), %s447_s21, 1  ;;  %p374_p6 = scmp.ne.s32.totalorder (!%p212_p3), %s447_s21, 0 }
   0x9   : > { %s600_s27 = smov (%p31_p4, %s598_s27), 0  ;;  %215 = sbr.rel (%p212_p3) target bundleno = 489 (0x1e9), region = 32 }
  0x10   : > { %s237_s28 = scalar_select %p236_p5, %s447_s21, 1 }
  0x11   : > { %246 = sbr.rel (%p374_p6) target bundleno = 24 (0x18), region = 36  ;;  %vm247_vm0 = vcmask (!%p374_p6), 7168   ;;  %v465_v2 = vmov (!%p374_p6), 0.0  }
  0x12   : > { %s379_s29 = sshll.u32 %s237_s28, 4  ;;  %248 = vst.msk [vmem:[#allocation2] sm:$0xff] (!%p374_p6), %vm247_vm0, %v465_v2 }
  0x13   : > { %s240_s8 = scalar_lea.vmem %s584_s0, %s379_s29 }
  0x14   : > { %v241_v0 = vld [vmem:[%s240_s8] sm:$0xff]  ;;  %v242_v1 = vld [vmem:[%s240_s8 + $0x8] sm:$0xff] }
  0x18 PF: > { %p249_p7 = scmp.eq.s32.totalorder %s451_s22, 0  ;;  %p375_p8 = scmp.ne.s32.totalorder %s451_s22, 0 }
  0x19   : > { %v254_v3 = vadd.f32 (!%p375_p8), %v242_v1, %v241_v0  ;;  %v253_v4 = vld [vmem:[#allocation2] sm:$0xff] (!%p375_p8)  ;;  %vm258_vm1 = vcmask (!%p375_p8), 7168  }
  0x1a   : > { %252 = sbr.rel (%p375_p8) target bundleno = 172 (0xac), region = 40 }
  0x1b   : > { %255 = vadd.xlane.f32.xlu0 (!%p375_p8), %v254_v3 }
  0xa8   : > { %v256_v5 = vpop.xlane.xlu0 %255 }
  0xa9   : > { %v257_v6 = vadd.f32 %v256_v5, %v253_v4 }
  0xab   : > { %259 = vst.msk [vmem:[#allocation2] sm:$0xff] %vm258_vm1, %v257_v6 }
  0xac PF: > { %p260_p9 = scmp.eq.s32.totalorder %s451_s22, 1  ;;  %p376_p10 = scmp.ne.s32.totalorder %s451_s22, 1 }
  0xad   : > { %v264_v7 = vld [vmem:[#allocation3] sm:$0xff] (!%p376_p10)  ;;  %v466_v8 = vmov (!%p376_p10), 0   ;;  %vm279_vm2 = vcmask (!%p376_p10), 7168  }
  0xae   : > { %263 = sbr.rel (%p376_p10) target bundleno = 454 (0x1c6), region = 44  ;;  %422 = vset.pattern.permute.xlu0 (!%p376_p10), %v466_v8 }
  0xaf   : > { %267 = vperm.xlu0 (!%p376_p10), %422, %v264_v7  }
  0xb2   : > { %v272_v15 = vld [vmem:[#allocation2] sm:$0xff] (!%p376_p10) }
 0x12e   : > { %v268_v9 = vpop.permute.xlu0 %267 }
 0x12f   : > { %v270_v10 = vsub.f32 %v241_v0, %v268_v9  ;;  %v271_v11 = vsub.f32 %v242_v1, %v268_v9 }
 0x131   : > { %v273_v12 = vmul.f32 %v270_v10, %v270_v10  ;;  %v274_v13 = vmul.f32 %v271_v11, %v271_v11 }
 0x133   : > { %v275_v14 = vadd.f32 %v274_v13, %v273_v12 }
 0x135   : > { %276 = vadd.xlane.f32.xlu0 %v275_v14 }
 0x1c2   : > { %v277_v16 = vpop.xlane.xlu0 %276 }
 0x1c3   : > { %v278_v17 = vadd.f32 %v277_v16, %v272_v15 }
 0x1c5   : > { %280 = vst.msk [vmem:[#allocation2] sm:$0xff] %vm279_vm2, %v278_v17 }
 0x1c6 PF: > { %p281_p11 = scmp.eq.s32.totalorder %s447_s21, 1 }
 0x1c8   : > { %p282_p12 = pnand %p281_p11, %p249_p7 }
 0x1c9   : > { %vm288_vm3 = vcmask (!%p282_p12), 7168  }
 0x1ca   : > { %285 = sbr.rel (%p282_p12) target bundleno = 465 (0x1d1), region = 48 }
 0x1cc   : > { %v286_v18 = vld [vmem:[#allocation2] sm:$0xff] (!%p282_p12) }
 0x1cd   : > { %v287_v19 = vmul.f32 (!%p282_p12), 0.001953125, %v286_v18 }
 0x1cf   : > { %289 = vst.msk [vmem:[#allocation3] sm:$0xff] (!%p282_p12), %vm288_vm3, %v287_v19 }
 0x1d1 PF: > { %p290_p13 = pnand %p281_p11, %p260_p9 }
 0x1d2   : > { %v294_v20 = vld [vmem:[#allocation2] sm:$0xff] (!%p290_p13)  ;;  %vm299_vm4 = vcmask (!%p290_p13), 7168  }
 0x1d3   : > { %293 = sbr.rel (%p290_p13) target bundleno = 489 (0x1e9), region = 52  ;;  %v295_v21 = vmul.f32 (!%p290_p13), 0.001953125, %v294_v20  ;;  %v304_v25 = vld [vmem:[%s585_s1] sm:$0xff] (!%p290_p13) }
 0x1d4   : > { %v307_v29 = vld [vmem:[%s586_s2] sm:$0xff] (!%p290_p13) }
 0x1d5   : > { %v296_v22 = vadd.f32 (!%p290_p13), 1e-05, %v295_v21 }
 0x1d6   : > { %v298_v23 = vld [vmem:[#allocation3] sm:$0xff] (!%p290_p13) }
 0x1d7   : > { %423 = vrsqrt.f32 (!%p290_p13), %v296_v22  ;;  %v301_v24 = vsub.f32 (!%p290_p13), 0.0, %v298_v23 }
 0x1e1   : > { %v424_v26 = vpop.eup %423 }
 0x1e2   : > { %300 = vst.msk [vmem:[%s589_s5] sm:$0xff] %vm299_vm4, %v424_v26  ;;  %v302_v27 = vmul.f32 %v424_v26, %v301_v24  ;;  %v305_v28 = vmul.f32 %v424_v26, %v304_v25 }
 0x1e4   : > { %303 = vst.msk [vmem:[%s590_s6] sm:$0xff] %vm299_vm4, %v302_v27  ;;  %306 = vst.msk [vmem:[%s587_s3] sm:$0xff] %vm299_vm4, %v305_v28  ;;  %v308_v30 = vmul.f32 %v305_v28, %v298_v23 }
 0x1e6   : > { %v309_v31 = vsub.f32 %v307_v29, %v308_v30 }
 0x1e8   : > { %310 = vst.msk [vmem:[%s588_s4] sm:$0xff] %vm299_vm4, %v309_v31 }
 0x1e9 PF: > { %s17_s25 = sadd.s32 1, %s463_s25   ;;  %s591_s21 = smov %s455_s23 }
 0x1ea   : > { %p14_p0 = scmp.ge.s32.totalorder %s17_s25, 6   ;;  %s592_s22 = smov %s459_s24 }
 0x1eb   : > { %s593_s23 = smov %s596_s26  ;;  %s594_s24 = smov %s600_s27 }
 0x1ec   :  { %16 = sbr.rel (!%p14_p0) target bundleno = 3 (0x3), region = 102 }

// kernel: tirg_spade_forward.13
= control target key start
LH: loop header
LB: loop body
LE: loop exit
PB: predicated region body
PF: predicated region fallthrough
CT: control target
= control target key end

     0   :  { %s447_s18 = smov 0   ;;  %s555_s0 = inlined_call_operand.vmem [shape: f32[2,32,256], index: 0, kind: input, shape index: {}]   ;;  %s556_s1 = inlined_call_operand.vmem [shape: f32[32,1], index: 1, kind: input, shape index: {}]   ;;  %s557_s2 = inlined_call_operand.vmem [shape: f32[32,1], index: 2, kind: input, shape index: {}]   ;;  %s558_s3 = inlined_call_operand.vmem [shape: f32[32,1], index: 3, kind: input, shape index: {}]   ;;  %s559_s4 = inlined_call_operand.vmem [shape: f32[32,1], index: 4, kind: output, shape index: {0}]   ;;  %s560_s5 = inlined_call_operand.vmem [shape: f32[32,1], index: 5, kind: output, shape index: {1}]  }
   0x1 LB: > { %s453_s19 = sadd.s32 4294967295, %s413_s18   ;;  %p379_p0 = scmp.ge.s32.totalorder %s413_s18, 1  ;;  %s413_s18 = sphi %s447_s18, %s16_s18  }
   0x2   : > { %p180_p1 = scmp.lt.s32.totalorder %s413_s18, 3 }
   0x4   : > { %p181_p2 = pnand %p379_p0, %p180_p1 }
   0x5   : > { %p203_p3 = scmp.lt.s32.totalorder (!%p181_p2), %s453_s19, 1  ;;  %v208_v0 = vld [vmem:[%s556_s1] sm:$0xff] (!%p181_p2)  ;;  %v209_v1 = vld [vmem:[%s556_s1 + $0x8] sm:$0xff] (!%p181_p2)  ;;  %v210_v2 = vld [vmem:[%s556_s1 + $0x10] sm:$0xff] (!%p181_p2)  ;;  %p382_p4 = scmp.ne.s32.totalorder (!%p181_p2), %s453_s19, 0 }
   0x6   : > { %184 = sbr.rel (%p181_p2) target bundleno = 340 (0x154), region = 36  ;;  %v211_v3 = vld [vmem:[%s556_s1 + $0x18] sm:$0xff] (!%p181_p2)  ;;  %v470_v4 = vmul.f32 (!%p181_p2), 0.001953125, %v208_v0  ;;  %v472_v5 = vmul.f32 (!%p181_p2), 0.001953125, %v209_v1  ;;  %v474_v6 = vmul.f32 (!%p181_p2), 0.001953125, %v210_v2 }
   0x7   : > { %v477_v7 = vmul.f32 (!%p181_p2), 0.001953125, %v211_v3 }
   0xd   : > { %s204_s28 = scalar_select %p203_p3, %s453_s19, 1 }
   0xe   : > { %227 = sbr.rel (%p382_p4) target bundleno = 21 (0x15), region = 40  ;;  %vm228_vm0 = vcmask (!%p382_p4), 7168   ;;  %v415_v16 = vmov (!%p382_p4), 0.0  }
   0xf   : > { %s386_s29 = sshll.u32 %s204_s28, 6  ;;  %229 = vst.msk [vmem:[#allocation2] sm:$0xff] (!%p382_p4), %vm228_vm0, %v415_v16  ;;  %230 = vst.msk [vmem:[#allocation2 + $0x8] sm:$0xff] (!%p382_p4), %vm228_vm0, %v415_v16 }
  0x10   : > { %s207_s7 = scalar_lea.vmem %s555_s0, %s386_s29  ;;  %231 = vst.msk [vmem:[#allocation2 + $0x10] sm:$0xff] (!%p382_p4), %vm228_vm0, %v415_v16  ;;  %232 = vst.msk [vmem:[#allocation2 + $0x18] sm:$0xff] (!%p382_p4), %vm228_vm0, %v415_v16 }
  0x11   : > { %v216_v8 = vld [vmem:[%s207_s7] sm:$0xff]  ;;  %v217_v9 = vld [vmem:[%s207_s7 + $0x8] sm:$0xff]  ;;  %v218_v10 = vld [vmem:[%s207_s7 + $0x10] sm:$0xff] }
  0x12   : > { %v219_v11 = vld [vmem:[%s207_s7 + $0x18] sm:$0xff]  ;;  %v220_v12 = vld [vmem:[%s207_s7 + $0x20] sm:$0xff]  ;;  %v221_v13 = vld [vmem:[%s207_s7 + $0x28] sm:$0xff] }
  0x13   : > { %v222_v14 = vld [vmem:[%s207_s7 + $0x30] sm:$0xff]  ;;  %v223_v15 = vld [vmem:[%s207_s7 + $0x38] sm:$0xff] }
  0x15 PF: > { %v416_v17 = vmov 0   ;;  %vm289_vm1 = vcmask 7168   ;;  %p383_p5 = scmp.ne.s32.totalorder %s453_s19, 1 }
  0x16   : > { %398 = vset.pattern.permute.xlu1 %v416_v17  ;;  %397 = vset.pattern.permute.xlu0 %v416_v17  ;;  %v261_v42 = vld [vmem:[#allocation2] sm:$0xff]  ;;  %v262_v45 = vld [vmem:[#allocation2 + $0x8] sm:$0xff] }
  0x17   : > { %245 = vperm.xlu1 %398, %v474_v6   ;;  %235 = vperm.xlu0 %397, %v470_v4   ;;  %v263_v46 = vld [vmem:[#allocation2 + $0x10] sm:$0xff]  ;;  %v264_v51 = vld [vmem:[#allocation2 + $0x18] sm:$0xff]  ;;  %v306_v2 = vld [vmem:[%s557_s2] sm:$0xff] (!%p383_p5) }
  0x18   : > { %v307_v3 = vld [vmem:[%s557_s2 + $0x8] sm:$0xff] (!%p383_p5) }
  0x1b   : > { %250 = vperm.xlu1 %398, %v477_v7   ;;  %240 = vperm.xlu0 %397, %v472_v5  }
  0x96   : > { %v246_v18 = vpop.permute.xlu1 %245  ;;  %v236_v19 = vpop.permute.xlu0 %235 }
  0x97   : > { %v257_v20 = vsub.f32 %v220_v12, %v246_v18  ;;  %v258_v21 = vsub.f32 %v221_v13, %v246_v18  ;;  %v253_v22 = vsub.f32 %v216_v8, %v236_v19  ;;  %v254_v23 = vsub.f32 %v217_v9, %v236_v19  ;;  %v308_v9 = vld [vmem:[%s557_s2 + $0x10] sm:$0xff] (!%p383_p5)  ;;  %v309_v12 = vld [vmem:[%s557_s2 + $0x18] sm:$0xff] (!%p383_p5)  ;;  %v327_v19 = vld [vmem:[%s558_s3 + $0x8] sm:$0xff] (!%p383_p5) }
  0x99   : > { %v265_v24 = vmul.f32 %v253_v22, %v253_v22  ;;  %v266_v25 = vmul.f32 %v254_v23, %v254_v23  ;;  %v269_v26 = vmul.f32 %v257_v20, %v257_v20  ;;  %v270_v27 = vmul.f32 %v258_v21, %v258_v21  ;;  %v328_v22 = vld [vmem:[%s558_s3 + $0x10] sm:$0xff] (!%p383_p5) }
  0x9a   : > { %v251_v28 = vpop.permute.xlu1 %250  ;;  %v241_v29 = vpop.permute.xlu0 %240 }
  0x9b   : > { %v255_v30 = vsub.f32 %v218_v10, %v241_v29  ;;  %v256_v31 = vsub.f32 %v219_v11, %v241_v29  ;;  %v259_v32 = vsub.f32 %v222_v14, %v251_v28  ;;  %v260_v33 = vsub.f32 %v223_v15, %v251_v28  ;;  %v326_v15 = vld [vmem:[%s558_s3] sm:$0xff] (!%p383_p5) }
  0x9c   : > { %v273_v34 = vadd.f32 %v266_v25, %v265_v24  ;;  %v279_v37 = vadd.f32 %v270_v27, %v269_v26  ;;  %v329_v24 = vld [vmem:[%s558_s3 + $0x18] sm:$0xff] (!%p383_p5) }
  0x9d   : > { %v267_v35 = vmul.f32 %v255_v30, %v255_v30  ;;  %v268_v36 = vmul.f32 %v256_v31, %v256_v31  ;;  %v271_v39 = vmul.f32 %v259_v32, %v259_v32  ;;  %v272_v40 = vmul.f32 %v260_v33, %v260_v33 }
  0x9e   : > { %274 = vadd.xlane.f32.xlu0 %v273_v34 }
  0x9f   : > { %v276_v38 = vadd.f32 %v268_v36, %v267_v35  ;;  %v282_v41 = vadd.f32 %v272_v40, %v271_v39 }
  0xa1   : > { %277 = vadd.xlane.f32.xlu1 %v276_v38 }
  0xa2   : > { %280 = vadd.xlane.f32.xlu0 %v279_v37 }
  0xa6   : > { %283 = vadd.xlane.f32.xlu0 %v282_v41 }
 0x12b   : > { %v275_v43 = vpop.xlane.xlu0 %274 }
 0x12c   : > { %v285_v44 = vadd.f32 %v275_v43, %v261_v42 }
 0x12e   : > { %290 = vst.msk [vmem:[#allocation2] sm:$0xff] %vm289_vm1, %v285_v44  ;;  %v278_v47 = vpop.xlane.xlu1 %277 }
 0x12f   : > { %v286_v48 = vadd.f32 %v278_v47, %v262_v45  ;;  %v281_v49 = vpop.xlane.xlu0 %280 }
 0x130   : > { %v287_v50 = vadd.f32 %v281_v49, %v263_v46  ;;  %297 = sbr.rel (%p383_p5) target bundleno = 340 (0x154), region = 44 }
 0x131   : > { %291 = vst.msk [vmem:[#allocation2 + $0x8] sm:$0xff] %vm289_vm1, %v286_v48 }
 0x132   : > { %292 = vst.msk [vmem:[#allocation2 + $0x10] sm:$0xff] %vm289_vm1, %v287_v50 }
 0x133   : > { %v284_v52 = vpop.xlane.xlu0 %283 }
 0x134   : > { %v288_v53 = vadd.f32 %v284_v52, %v264_v51 }
 0x135   : > { %v298_v54 = vld [vmem:[#allocation2] sm:$0xff] (!%p383_p5) }
 0x136   : > { %293 = vst.msk [vmem:[#allocation2 + $0x18] sm:$0xff] %vm289_vm1, %v288_v53  ;;  %v302_v56 = vmul.f32 (!%p383_p5), 0.001953125, %v298_v54 }
 0x138   : > { %v299_v55 = vld [vmem:[#allocation2 + $0x8] sm:$0xff]  ;;  %v310_v61 = vadd.f32 1e-05, %v302_v56 }
 0x139   : > { %v303_v57 = vmul.f32 0.001953125, %v299_v55  ;;  %v300_v58 = vld [vmem:[#allocation2 + $0x10] sm:$0xff] }
 0x13a   : > { %v304_v59 = vmul.f32 0.001953125, %v300_v58  ;;  %399 = vrsqrt.f32 %v310_v61 }
 0x13b   : > { %v311_v62 = vadd.f32 1e-05, %v303_v57 }
 0x13c   : > { %v312_v0 = vadd.f32 1e-05, %v304_v59 }
 0x13d   : > { %v301_v60 = vld [vmem:[#allocation2 + $0x18] sm:$0xff]  ;;  %401 = vrsqrt.f32 %v311_v62 }
 0x13e   : > { %v305_v63 = vmul.f32 0.001953125, %v301_v60  ;;  %403 = vrsqrt.f32 %v312_v0 }
 0x140   : > { %v313_v1 = vadd.f32 1e-05, %v305_v63 }
 0x142   : > { %405 = vrsqrt.f32 %v313_v1 }
 0x144   : > { %v400_v8 = vpop.eup %399 }
 0x145   : > { %v318_v11 = vmul.f32 %v400_v8, %v306_v2 }
 0x147   : > { %v402_v10 = vpop.eup %401  ;;  %322 = vst.msk [vmem:[%s559_s4] sm:$0xff] %vm289_vm1, %v318_v11  ;;  %v330_v18 = vmul.f32 %v318_v11, %v470_v4 }
 0x148   : > { %v404_v13 = vpop.eup %403  ;;  %v319_v14 = vmul.f32 %v402_v10, %v307_v3 }
 0x149   : > { %v320_v17 = vmul.f32 %v404_v13, %v308_v9  ;;  %v334_v4 = vsub.f32 %v326_v15, %v330_v18 }
 0x14a   : > { %323 = vst.msk [vmem:[%s559_s4 + $0x8] sm:$0xff] %vm289_vm1, %v319_v14  ;;  %v331_v21 = vmul.f32 %v319_v14, %v472_v5 }
 0x14b   : > { %324 = vst.msk [vmem:[%s559_s4 + $0x10] sm:$0xff] %vm289_vm1, %v320_v17  ;;  %v332_v23 = vmul.f32 %v320_v17, %v474_v6  ;;  %338 = vst.msk [vmem:[%s560_s5] sm:$0xff] %vm289_vm1, %v334_v4 }
 0x14c   : > { %v406_v16 = vpop.eup %405  ;;  %v335_v5 = vsub.f32 %v327_v19, %v331_v21 }
 0x14d   : > { %v321_v20 = vmul.f32 %v406_v16, %v309_v12  ;;  %v336_v26 = vsub.f32 %v328_v22, %v332_v23 }
 0x14e   : > { %339 = vst.msk [vmem:[%s560_s5 + $0x8] sm:$0xff] %vm289_vm1, %v335_v5 }
 0x14f   : > { %325 = vst.msk [vmem:[%s559_s4 + $0x18] sm:$0xff] %vm289_vm1, %v321_v20  ;;  %v333_v25 = vmul.f32 %v321_v20, %v477_v7  ;;  %340 = vst.msk [vmem:[%s560_s5 + $0x10] sm:$0xff] %vm289_vm1, %v336_v26 }
 0x151   : > { %v337_v6 = vsub.f32 %v329_v24, %v333_v25 }
 0x153   : > { %341 = vst.msk [vmem:[%s560_s5 + $0x18] sm:$0xff] %vm289_vm1, %v337_v6 }
 0x154 PF: > { %s16_s18 = sadd.s32 1, %s413_s18  }
 0x155   : > { %p13_p6 = scmp.ge.s32.totalorder %s16_s18, 4  }
 0x157   :  { %15 = sbr.rel (!%p13_p6) target bundleno = 1 (0x1), region = 78 }

// kernel: tirg_spade_forward.14
= control target key start
LH: loop header
LB: loop body
LE: loop exit
PB: predicated region body
PF: predicated region fallthrough
CT: control target
= control target key end

     0   :  { %s1207_s20 = smov 0   ;;  %s1417_s0 = inlined_call_operand.vmem [shape: f32[32,1], index: 0, kind: input, shape index: {}]   ;;  %s1418_s1 = inlined_call_operand.vmem [shape: f32[32,1], index: 1, kind: input, shape index: {}]   ;;  %s1419_s2 = inlined_call_operand.vmem [shape: f32[2,32,256], index: 2, kind: input, shape index: {}]   ;;  %s1420_s3 = inlined_call_operand.vmem [shape: bf16[9,1,32], index: 3, kind: input, shape index: {}]   ;;  %s1421_s4 = inlined_call_operand.<no memory space> [shape: f32[1,1], index: 4, kind: input, shape index: {}]   ;;  %s1422_s5 = inlined_call_operand.vmem [shape: f32[2,1,256], index: 5, kind: output, shape index: {}]  }
   0x1   :  { %v10_v0 = vstv %s1421_s4 }
   0x2   :  { %11 = vst [vmem:[#allocation2] sm:$0x1] %v10_v0 }
   0x3 LB: > { %s1074_s21 = sadd.s32 4294967295, %s1162_s20   ;;  %p1078_p0 = scmp.ge.s32.totalorder %s1162_s20, 1  ;;  %s1162_s20 = sphi %s1207_s20, %s17_s20  }
   0x4   : > { %p189_p1 = scmp.lt.s32.totalorder %s1162_s20, 3 }
   0x6   : > { %p190_p2 = pnand %p1078_p0, %p189_p1 }
   0x7   : > { %v266_v1 = vld [vmem:[%s1418_s1] sm:$0xff] (!%p190_p2)  ;;  %v1164_v3 = vmov (!%p190_p2), 0   ;;  %v267_v4 = vld [vmem:[%s1418_s1 + $0x8] sm:$0xff] (!%p190_p2)  ;;  %v237_v6 = vld [vmem:[%s1417_s0 + $0x18] sm:$0xff] (!%p190_p2)  ;;  %p216_p3 = scmp.lt.s32.totalorder (!%p190_p2), %s1074_s21, 1  ;;  %v306_v32 = vlaneseq (!%p190_p2)  ;;  %s1165_s16 = smov (!%p190_p2), 16  }
   0x8   : > { %193 = sbr.rel (%p190_p2) target bundleno = 580 (0x244), region = 40  ;;  %v234_v2 = vld [vmem:[%s1417_s0] sm:$0xff] (!%p190_p2)  ;;  %1147 = vset.pattern.permute.xlu1 (!%p190_p2), %v1164_v3  ;;  %1146 = vset.pattern.permute.xlu0 (!%p190_p2), %v1164_v3  ;;  %v235_v5 = vld [vmem:[%s1417_s0 + $0x8] sm:$0xff] (!%p190_p2)  ;;  %v236_v7 = vld [vmem:[%s1417_s0 + $0x10] sm:$0xff] (!%p190_p2)  ;;  %s1166_s17 = smov (!%p190_p2), 112   ;;  %vm411_vm4 = vcmask (!%p190_p2), 130048  }
   0x9   : > { %272 = vperm.xlu1 (!%p190_p2), %1147, %v266_v1   ;;  %240 = vperm.xlu0 (!%p190_p2), %1146, %v234_v2   ;;  %v269_v8 = vld [vmem:[%s1418_s1 + $0x18] sm:$0xff] (!%p190_p2)  ;;  %v268_v9 = vld [vmem:[%s1418_s1 + $0x10] sm:$0xff] (!%p190_p2)  ;;  %v307_v45 = vand.u32 (!%p190_p2), 127, %v306_v32  ;;  %s1167_s18 = smov (!%p190_p2), 17   ;;  %s1168_s19 = smov (!%p190_p2), 15   ;;  %vm1083_vm5 = vmneg (!%p190_p2), %vm411_vm4  ;;  %vm425_vm6 = vcmask (!%p190_p2), 261120  }
   0xa   : > { %461 = vmatprep.mubr.bf16.mxu0 (!%p190_p2), %v1164_v3  ;;  %505 = vmatprep.mubr.bf16.mxu1 (!%p190_p2), %v1164_v3  ;;  %s1169_s22 = smov (!%p190_p2), 1   ;;  %s1170_s23 = smov (!%p190_p2), 127   ;;  %vm385_vm7 = vcmask (!%p190_p2), 138240   ;;  %vm526_vm9 = vcmask (!%p190_p2), 121856   ;;  %vm594_vm11 = vcmask (!%p190_p2), 7168   ;;  %vm710_vm13 = vcmask (!%p190_p2), 1039360  }
   0xb   : > { %v308_v56 = vadd.s32 (!%p190_p2), 128, %v307_v45  ;;  %v313_v58 = vand.u32 (!%p190_p2), 15, %v307_v45  ;;  %s1171_s4 = smov (!%p190_p2), 113   ;;  %s1172_s24 = smov (!%p190_p2), 111   ;;  %vm1088_vm8 = vmneg (!%p190_p2), %vm385_vm7  ;;  %vm778_vm14 = vcmask (!%p190_p2), 924672   ;;  %vm846_vm15 = vcmask (!%p190_p2), 916480  }
   0xc   : > { %vm1330_vm10 = vmneg (!%p190_p2), %vm526_vm9 }
   0xd   : > { %277 = vperm.xlu1 (!%p190_p2), %1147, %v267_v4   ;;  %245 = vperm.xlu0 (!%p190_p2), %1146, %v235_v5   ;;  %v320_v57 = vand.u32 (!%p190_p2), 15, %v308_v56  ;;  %vm1268_vm1 = vcmp.ne.s32.totalorder (!%p190_p2), %v313_v58, 15  ;;  %vm1286_vm3 = vcmp.ne.s32.totalorder (!%p190_p2), %v313_v58, 0  ;;  %vm1100_vm12 = vmneg (!%p190_p2), %vm594_vm11 }
   0xf   : > { %s1434_s21 = smov (!%p216_p3, %s1074_s21), 1  ;;  %vm1264_vm0 = vcmp.ne.s32.totalorder %v320_v57, 15  ;;  %vm1282_vm2 = vcmp.ne.s32.totalorder %v320_v57, 0 }
  0x10   : > { %s1127_s12 = sshll.u32 %s1434_s21, 6 }
  0x11   : > { %255 = vperm.xlu1 %1147, %v237_v6   ;;  %250 = vperm.xlu0 %1146, %v236_v7   ;;  %s220_s15 = scalar_lea.vmem %s1419_s2, %s1127_s12 }
  0x12   : > { %v226_v10 = vld [vmem:[%s220_s15] sm:$0xff]  ;;  %v227_v11 = vld [vmem:[%s220_s15 + $0x8] sm:$0xff]  ;;  %v228_v16 = vld [vmem:[%s220_s15 + $0x10] sm:$0xff] }
  0x13   : > { %v229_v17 = vld [vmem:[%s220_s15 + $0x18] sm:$0xff]  ;;  %v232_v26 = vld [vmem:[%s220_s15 + $0x30] sm:$0xff]  ;;  %v230_v30 = vld [vmem:[%s220_s15 + $0x20] sm:$0xff] }
  0x14   : > { %v233_v27 = vld [vmem:[%s220_s15 + $0x38] sm:$0xff]  ;;  %v231_v31 = vld [vmem:[%s220_s15 + $0x28] sm:$0xff] }
  0x15   : > { %287 = vperm.xlu1 %1147, %v269_v8   ;;  %282 = vperm.xlu0 %1146, %v268_v9  }
  0x88   : > { %v273_v12 = vpop.permute.xlu1 %272  ;;  %v241_v13 = vpop.permute.xlu0 %240 }
  0x89   : > { %v258_v14 = vmul.f32 %v241_v13, %v226_v10  ;;  %v259_v15 = vmul.f32 %v241_v13, %v227_v11 }
  0x8b   : > { %v290_v20 = vadd.f32 %v273_v12, %v258_v14  ;;  %v291_v21 = vadd.f32 %v273_v12, %v259_v15 }
  0x8c   : > { %v278_v18 = vpop.permute.xlu1 %277  ;;  %v246_v19 = vpop.permute.xlu0 %245 }
  0x8d   : > { %v260_v22 = vmul.f32 %v246_v19, %v228_v16  ;;  %v261_v23 = vmul.f32 %v246_v19, %v229_v17  ;;  %v298_v33 = vmax.f32 %v290_v20, 0.0  ;;  %v299_v34 = vmax.f32 %v291_v21, 0.0 }
  0x8f   : > { %v292_v24 = vadd.f32 %v278_v18, %v260_v22  ;;  %v293_v25 = vadd.f32 %v278_v18, %v261_v23  ;;  %v340_v63 = vsel %vm1264_vm0, %v299_v34, 0.0  ;;  %v339_v0 = vsel %vm1268_vm1, %v298_v33, 0.0 }
  0x90   : > { %v256_v28 = vpop.permute.xlu1 %255  ;;  %v251_v29 = vpop.permute.xlu0 %250  ;;  %v362_v8 = vsel %vm1282_vm2, %v299_v34, 0.0  ;;  %v361_v9 = vsel %vm1286_vm3, %v298_v33, 0.0 }
  0x91   : > { %v300_v35 = vmax.f32 %v292_v24, 0.0  ;;  %v301_v36 = vmax.f32 %v293_v25, 0.0  ;;  %v264_v37 = vmul.f32 %v256_v28, %v232_v26  ;;  %v265_v38 = vmul.f32 %v256_v28, %v233_v27  ;;  %v974_v24 = vld [vmem:[#allocation2] sm:$0x1] }
  0x92   : > { %v262_v39 = vmul.f32 %v251_v29, %v230_v30  ;;  %v263_v40 = vmul.f32 %v251_v29, %v231_v31  ;;  %v1082_v31 = vld [vmem:[%s1420_s3 + $0x1] sm:$0x1] }
  0x93   : > { %v1249_v41 = vpack.c.bf16 %v301_v36, %v299_v34  ;;  %v1251_v42 = vpack.c.bf16 %v300_v35, %v298_v33  ;;  %v342_v61 = vsel %vm1264_vm0, %v301_v36, 0.0  ;;  %v341_v62 = vsel %vm1268_vm1, %v300_v35, 0.0 }
  0x94   : > { %v288_v43 = vpop.permute.xlu1 %287  ;;  %v283_v44 = vpop.permute.xlu0 %282  ;;  %v348_v1 = vpack.c.bf16 %v342_v61, %v340_v63  ;;  %v347_v2 = vpack.c.bf16 %v341_v62, %v339_v0  ;;  %v364_v6 = vsel %vm1282_vm2, %v301_v36, 0.0  ;;  %v363_v7 = vsel %vm1286_vm3, %v300_v35, 0.0 }
  0x95   : > { %v296_v46 = vadd.f32 %v288_v43, %v264_v37  ;;  %v297_v47 = vadd.f32 %v288_v43, %v265_v38  ;;  %v294_v48 = vadd.f32 %v283_v44, %v262_v39  ;;  %v295_v49 = vadd.f32 %v283_v44, %v263_v40  ;;  %405 = vrot.lane.b32.xlu1 %v1249_v41, %s1165_s16 }
  0x96   : > { %403 = vrot.lane.b32.xlu0 %v1251_v42, %s1165_s16  ;;  %v370_v10 = vpack.c.bf16 %v364_v6, %v362_v8  ;;  %v369_v11 = vpack.c.bf16 %v363_v7, %v361_v9  ;;  %v1107_v6 = vld [vmem:[%s1420_s3 + $0x5] sm:$0x1] }
  0x97   : > { %v304_v50 = vmax.f32 %v296_v46, 0.0  ;;  %v305_v51 = vmax.f32 %v297_v47, 0.0  ;;  %v302_v52 = vmax.f32 %v294_v48, 0.0  ;;  %v303_v53 = vmax.f32 %v295_v49, 0.0  ;;  %v398_v49 = vld [vmem:[%s1420_s3] sm:$0x1] }
  0x99   : > { %v1256_v54 = vpack.c.bf16 %v305_v51, %v303_v53  ;;  %v1258_v55 = vpack.c.bf16 %v304_v50, %v302_v52  ;;  %v344_v12 = vsel %vm1264_vm0, %v303_v53, 0.0  ;;  %v346_v13 = vsel %vm1264_vm0, %v305_v51, 0.0 }
  0x9a   : > { %v343_v14 = vsel %vm1268_vm1, %v302_v52, 0.0  ;;  %v345_v15 = vsel %vm1268_vm1, %v304_v50, 0.0  ;;  %v350_v16 = vpack.c.bf16 %v346_v13, %v344_v12  ;;  %v366_v18 = vsel %vm1282_vm2, %v303_v53, 0.0  ;;  %v1093_v53 = vld [vmem:[%s1420_s3 + $0x2] sm:$0x1] }
  0x9b   : > { %409 = vrot.lane.b32.xlu1 %v1256_v54, %s1165_s16  ;;  %407 = vrot.lane.b32.xlu0 %v1258_v55, %s1165_s16  ;;  %v349_v17 = vpack.c.bf16 %v345_v15, %v343_v14  ;;  %v368_v19 = vsel %vm1282_vm2, %v305_v51, 0.0  ;;  %v365_v20 = vsel %vm1286_vm3, %v302_v52, 0.0  ;;  %v367_v21 = vsel %vm1286_vm3, %v304_v50, 0.0 }
  0x9c   : > { %v372_v22 = vpack.c.bf16 %v368_v19, %v366_v18  ;;  %v371_v23 = vpack.c.bf16 %v367_v21, %v365_v20  ;;  %vm914_vm0 = vcmask 908288   ;;  %v1119_v20 = vld [vmem:[%s1420_s3 + $0x8] sm:$0x1]  ;;  %vm1018_vm1 = vcmp.lt.s32.totalorder %v306_v32, 256 }
  0x9f   : > { %840 = vrot.lane.b32.xlu1 %v1249_v41, %s1166_s17  ;;  %838 = vrot.lane.b32.xlu0 %v1251_v42, %s1166_s17 }
  0xa3   : > { %844 = vrot.lane.b32.xlu1 %v1256_v54, %s1166_s17  ;;  %842 = vrot.lane.b32.xlu0 %v1258_v55, %s1166_s17 }
  0xa7   : > { %379 = vrot.lane.b32.xlu1 %v348_v1, %s1167_s18  ;;  %377 = vrot.lane.b32.xlu0 %v347_v2, %s1167_s18 }
  0xab   : > { %520 = vrot.lane.b32.xlu1 %v370_v10, %s1168_s19  ;;  %518 = vrot.lane.b32.xlu0 %v369_v11, %s1168_s19 }
  0xaf   : > { %383 = vrot.lane.b32.xlu1 %v350_v16, %s1167_s18  ;;  %381 = vrot.lane.b32.xlu0 %v349_v17, %s1167_s18  ;;  %s1081_s18 = sshll.u32 %s1434_s21, 1 }
  0xb3   : > { %524 = vrot.lane.b32.xlu1 %v372_v22, %s1168_s19  ;;  %522 = vrot.lane.b32.xlu0 %v371_v23, %s1168_s19 }
  0xb7   : > { %588 = vrot.lane.b32.xlu1 %v348_v1, %s1169_s22  ;;  %586 = vrot.lane.b32.xlu0 %v347_v2, %s1169_s22 }
  0xbb   : > { %592 = vrot.lane.b32.xlu1 %v350_v16, %s1169_s22  ;;  %590 = vrot.lane.b32.xlu0 %v349_v17, %s1169_s22 }
  0xbf   : > { %704 = vrot.lane.b32.xlu1 %v370_v10, %s1170_s23  ;;  %702 = vrot.lane.b32.xlu0 %v369_v11, %s1170_s23 }
  0xc3   : > { %772 = vrot.lane.b32.xlu1 %v348_v1, %s1171_s4  ;;  %770 = vrot.lane.b32.xlu0 %v347_v2, %s1171_s4 }
  0xc7   : > { %708 = vrot.lane.b32.xlu1 %v372_v22, %s1170_s23  ;;  %706 = vrot.lane.b32.xlu0 %v371_v23, %s1170_s23  ;;  %s224_s23 = scalar_lea.vmem %s1422_s5, %s1081_s18 }
  0xcb   : > { %776 = vrot.lane.b32.xlu1 %v350_v16, %s1171_s4  ;;  %774 = vrot.lane.b32.xlu0 %v349_v17, %s1171_s4  ;;  %v1115_v16 = vld [vmem:[%s1420_s3 + $0x7] sm:$0x1] }
  0xcf   : > { %908 = vrot.lane.b32.xlu1 %v370_v10, %s1172_s24  ;;  %906 = vrot.lane.b32.xlu0 %v369_v11, %s1172_s24  ;;  %v1111_v11 = vld [vmem:[%s1420_s3 + $0x6] sm:$0x1] }
  0xd3   : > { %912 = vrot.lane.b32.xlu1 %v372_v22, %s1172_s24  ;;  %910 = vrot.lane.b32.xlu0 %v371_v23, %s1172_s24 }
  0xd7   : > { %977 = vperm.xlu0 %1146, %v974_v24  }
 0x107   : > { %v406_v25 = vpop.permute.xlu1 %405 }
 0x108   : > { %v404_v26 = vpop.permute.xlu0 %403 }
 0x109   : > { %v412_v27 = vsel %vm411_vm4, %v404_v26, %v406_v25 }
 0x10a   : > { %429 = vmatprep.subr.bf16.mxu0 %v412_v27 }
 0x10b   : > { %1084 = vmatpush1.bf16.msk.msra.mxu0 %vm1083_vm5, %v404_v26 }
 0x10d   : > { %v410_v28 = vpop.permute.xlu1 %409  ;;  %v408_v29 = vpop.permute.xlu0 %407 }
 0x10e   : > { %v413_v30 = vsel %vm411_vm4, %v408_v29, %v410_v28 }
 0x10f   : > { %431 = vmatprep.subr.bf16.mxu0 %v413_v30 }
 0x110   : > { %1086 = vmatpush1.bf16.msk.msra.mxu0 %vm1083_vm5, %v408_v29 }
 0x111   : > { %v1317_v33 = vpop.permute.xlu1 %840  ;;  %v1319_v34 = vpop.permute.xlu0 %838 }
 0x112   : > { %v847_v9 = vsel %vm846_vm15, %v1319_v34, %v1317_v33 }
 0x113   : > { %1087 = vmatmul.mubr.msk.bf16.vlgmr.msra.gmra.mrb[0].mxu0 %vm425_vm6, %v1082_v31 }
 0x114   : > { %575 = vmatprep.mubr.bf16.mxu0 %v1164_v3 }
 0x115   : > { %v1323_v35 = vpop.permute.xlu1 %844  ;;  %v1325_v36 = vpop.permute.xlu0 %842 }
 0x116   : > { %v848_v14 = vsel %vm846_vm15, %v1325_v36, %v1323_v35 }
 0x119   : > { %v380_v37 = vpop.permute.xlu1 %379  ;;  %v378_v38 = vpop.permute.xlu0 %377 }
 0x11a   : > { %v386_v39 = vsel %vm385_vm7, %v378_v38, %v380_v37 }
 0x11b   : > { %473 = vmatprep.subr.bf16.mxu1 %v386_v39 }
 0x11c   : > { %1089 = vmatpush1.bf16.msk.msra.mxu1 %vm1088_vm8, %v378_v38 }
 0x11d   : > { %v521_v40 = vpop.permute.xlu1 %520  ;;  %v519_v43 = vpop.permute.xlu0 %518 }
 0x11e   : > { %v527_v45 = vsel %vm526_vm9, %v519_v43, %v521_v40 }
 0x11f   : > { %543 = vmatprep.subr.bf16.mxu0 %v527_v45 }
 0x120   : > { %1095 = vmatpush1.bf16.msk.msra.mxu0 %vm1330_vm10, %v519_v43 }
 0x121   : > { %v384_v46 = vpop.permute.xlu1 %383  ;;  %v382_v47 = vpop.permute.xlu0 %381 }
 0x122   : > { %v387_v48 = vsel %vm385_vm7, %v382_v47, %v384_v46 }
 0x123   : > { %475 = vmatprep.subr.bf16.mxu1 %v387_v48 }
 0x124   : > { %1091 = vmatpush1.bf16.msk.msra.mxu1 %vm1088_vm8, %v382_v47 }
 0x125   : > { %v525_v50 = vpop.permute.xlu1 %524  ;;  %v523_v51 = vpop.permute.xlu0 %522 }
 0x126   : > { %v528_v52 = vsel %vm526_vm9, %v523_v51, %v525_v50 }
 0x127   : > { %545 = vmatprep.subr.bf16.mxu0 %v528_v52  ;;  %1092 = vmatmul.mubr.msk.bf16.vlgmr.msra.gmra.mrb[0].mxu1 %vm425_vm6, %v398_v49 }
 0x128   : > { %1097 = vmatpush1.bf16.msk.msra.mxu0 %vm1330_vm10, %v523_v51  ;;  %643 = vmatprep.mubr.bf16.mxu1 %v1164_v3 }
 0x129   : > { %v589_v56 = vpop.permute.xlu1 %588  ;;  %659 = vmatprep.subr.bf16.mxu0 %v1249_v41  ;;  %v587_v57 = vpop.permute.xlu0 %586  ;;  %v1099_v41 = vld [vmem:[%s1420_s3 + $0x3] sm:$0x1] }
 0x12a   : > { %v595_v58 = vsel %vm594_vm11, %v587_v57, %v589_v56 }
 0x12b   : > { %611 = vmatprep.subr.bf16.mxu1 %v595_v58  ;;  %1098 = vmatmul.mubr.msk.bf16.vlgmr.msra.gmra.mrb[4].mxu0 %vm425_vm6, %v1093_v53 }
 0x12c   : > { %1101 = vmatpush1.bf16.msk.msra.mxu1 %vm1100_vm12, %v587_v57  ;;  %660 = vmatpush1.bf16.msra.mxu0 %v1251_v42  ;;  %v1105_v42 = vld [vmem:[%s1420_s3 + $0x4] sm:$0x1] }
 0x12d   : > { %v593_v59 = vpop.permute.xlu1 %592  ;;  %661 = vmatprep.subr.bf16.mxu0 %v1256_v54  ;;  %v591_v60 = vpop.permute.xlu0 %590  ;;  %691 = vmatprep.mubr.bf16.mxu0 %v1164_v3 }
 0x12e   : > { %v596_v61 = vsel %vm594_vm11, %v591_v60, %v593_v59 }
 0x12f   : > { %613 = vmatprep.subr.bf16.mxu1 %v596_v61 }
 0x130   : > { %1103 = vmatpush1.bf16.msk.msra.mxu1 %vm1100_vm12, %v591_v60  ;;  %662 = vmatpush1.bf16.msra.mxu0 %v1258_v55  ;;  %v981_v60 = vshrl.u32 %v306_v32, 7 }
 0x131   : > { %v705_v62 = vpop.permute.xlu1 %704  ;;  %v703_v54 = vpop.permute.xlu0 %702 }
 0x132   : > { %v711_v63 = vsel %vm710_vm13, %v703_v54, %v705_v62  ;;  %1108 = vmatprep.subr.msk.bf16.mxu1 %vm710_vm13, %v705_v62 }
 0x133   : > { %1104 = vmatmul.mubr.msk.bf16.vlgmr.msra.gmra.mrb[4].mxu1 %vm425_vm6, %v1099_v41  ;;  %1106 = vmatmul.mubr.msk.bf16.vlgmr.msra.gmra.mrb[8].mxu0 %vm425_vm6, %v1105_v42 }
 0x134   : > { %728 = vmatpush1.bf16.msra.mxu1 %v711_v63  ;;  %759 = vmatprep.mubr.bf16.mxu1 %v1164_v3 }
 0x135   : > { %v773_v55 = vpop.permute.xlu1 %772  ;;  %v771_v0 = vpop.permute.xlu0 %770  ;;  %827 = vmatprep.mubr.bf16.mxu0 %v1164_v3 }
 0x136   : > { %v779_v1 = vsel %vm778_vm14, %v771_v0, %v773_v55  ;;  %1112 = vmatprep.subr.msk.bf16.mxu0 %vm778_vm14, %v773_v55  ;;  %v982_v55 = vsub.s32 0, %v981_v60 }
 0x137   : > { %796 = vmatpush1.bf16.msra.mxu0 %v779_v1 }
 0x139   : > { %v709_v2 = vpop.permute.xlu1 %708  ;;  %v707_v4 = vpop.permute.xlu0 %706 }
 0x13a   : > { %v712_v5 = vsel %vm710_vm13, %v707_v4, %v709_v2  ;;  %1109 = vmatprep.subr.msk.bf16.mxu1 %vm710_vm13, %v709_v2 }
 0x13b   : > { %730 = vmatpush1.bf16.msra.mxu1 %v712_v5 }
 0x13c   : > { %1116 = vmatprep.subr.msk.bf16.mxu1 %vm846_vm15, %v1317_v33 }
 0x13d   : > { %v777_v7 = vpop.permute.xlu1 %776  ;;  %v775_v8 = vpop.permute.xlu0 %774 }
 0x13e   : > { %v780_v10 = vsel %vm778_vm14, %v775_v8, %v777_v7  ;;  %1110 = vmatmul.mubr.msk.bf16.vlgmr.msra.gmra.mrb[8].mxu1 %vm425_vm6, %v1107_v6  ;;  %1113 = vmatprep.subr.msk.bf16.mxu0 %vm778_vm14, %v777_v7 }
 0x13f   : > { %798 = vmatpush1.bf16.msra.mxu0 %v780_v10  ;;  %864 = vmatpush1.bf16.msra.mxu1 %v847_v9 }
 0x140   : > { %1117 = vmatprep.subr.msk.bf16.mxu1 %vm846_vm15, %v1323_v35  ;;  %895 = vmatprep.mubr.bf16.mxu1 %v1164_v3 }
 0x141   : > { %v909_v12 = vpop.permute.xlu1 %908  ;;  %v907_v13 = vpop.permute.xlu0 %906 }
 0x142   : > { %v915_v15 = vsel %vm914_vm0, %v907_v13, %v909_v12  ;;  %1114 = vmatmul.mubr.msk.bf16.vlgmr.msra.gmra.mrb[12].mxu0 %vm425_vm6, %v1111_v11  ;;  %1120 = vmatprep.subr.msk.bf16.mxu0 %vm914_vm0, %v909_v12 }
 0x143   : > { %866 = vmatpush1.bf16.msra.mxu1 %v848_v14  ;;  %932 = vmatpush1.bf16.msra.mxu0 %v915_v15 }
 0x144   : > { %963 = vmatprep.mubr.bf16.mxu0 %v1164_v3 }
 0x145   : > { %v913_v17 = vpop.permute.xlu1 %912  ;;  %v911_v18 = vpop.permute.xlu0 %910 }
 0x146   : > { %v916_v19 = vsel %vm914_vm0, %v911_v18, %v913_v17  ;;  %1118 = vmatmul.mubr.msk.bf16.vlgmr.msra.gmra.mrb[12].mxu1 %vm425_vm6, %v1115_v16  ;;  %1121 = vmatprep.subr.msk.bf16.mxu0 %vm914_vm0, %v913_v17 }
 0x147   : > { %934 = vmatpush1.bf16.msra.mxu0 %v916_v19 }
 0x14a   : > { %1122 = vmatmul.mubr.msk.bf16.vlgmr.msra.gmra.mrb[16].mxu0 %vm425_vm6, %v1119_v20 }
 0x156   : > { %v978_v2 = vpop.permute.xlu0 %977 }
 0x157   : > { %v983_v8 = vrot.slane %v978_v2, %v982_v55 }
 0x1e6   : > { %v463_v21 = vpop.f32.mrb[0].mxu0 }
 0x1e7   : > { %v465_v22 = vpop.f32.mrb[1].mxu0 }
 0x1e8   : > { %v467_v23 = vpop.f32.mrb[2].mxu0 }
 0x1e9   : > { %v468_v24 = vpop.f32.mrb[3].mxu0 }
 0x1fa   : > { %v507_v3 = vpop.f32.mrb[0].mxu1 }
 0x1fb   : > { %v508_v25 = vadd.f32 %v507_v3, %v463_v21  ;;  %v509_v26 = vpop.f32.mrb[1].mxu1 }
 0x1fc   : > { %v510_v27 = vadd.f32 %v509_v26, %v465_v22  ;;  %v511_v28 = vpop.f32.mrb[2].mxu1  ;;  %v1173_v22 = vmov 1966171168  }
 0x1fd   : > { %v512_v29 = vpop.f32.mrb[3].mxu1  ;;  %v1002_v23 = vunpack.c.l.s4 %v1173_v22 }
 0x1fe   : > { %v577_v30 = vpop.f32.mrb[4].mxu0 }
 0x1ff   : > { %v584_v31 = vadd.f32 %v577_v30, %v508_v25  ;;  %v579_v33 = vpop.f32.mrb[5].mxu0  ;;  %v1003_v24 = vunpack.c.0.s8 %v1002_v23 }
 0x200   : > { %v585_v34 = vadd.f32 %v579_v33, %v510_v27  ;;  %v581_v35 = vpop.f32.mrb[6].mxu0 }
 0x201   : > { %v582_v36 = vpop.f32.mrb[7].mxu0  ;;  %v1006_v25 = vsub.s32 %v1003_v24, %v981_v60 }
 0x206   : > { %v645_v37 = vpop.f32.mrb[4].mxu1  ;;  %v693_v38 = vpop.f32.mrb[8].mxu0 }
 0x207   : > { %v652_v39 = vadd.f32 %v645_v37, %v584_v31  ;;  %v647_v40 = vpop.f32.mrb[5].mxu1  ;;  %v695_v43 = vpop.f32.mrb[9].mxu0 }
 0x208   : > { %v653_v44 = vadd.f32 %v647_v40, %v585_v34  ;;  %v649_v45 = vpop.f32.mrb[6].mxu1  ;;  %v697_v46 = vpop.f32.mrb[10].mxu0 }
 0x209   : > { %v700_v47 = vadd.f32 %v693_v38, %v652_v39  ;;  %v650_v48 = vpop.f32.mrb[7].mxu1  ;;  %v698_v49 = vpop.f32.mrb[11].mxu0 }
 0x20a   : > { %v701_v50 = vadd.f32 %v695_v43, %v653_v44 }
 0x211   : > { %v761_v51 = vpop.f32.mrb[8].mxu1 }
 0x212   : > { %v768_v52 = vadd.f32 %v761_v51, %v700_v47  ;;  %v763_v53 = vpop.f32.mrb[9].mxu1 }
 0x213   : > { %v769_v56 = vadd.f32 %v763_v53, %v701_v50  ;;  %v765_v57 = vpop.f32.mrb[10].mxu1 }
 0x214   : > { %v766_v58 = vpop.f32.mrb[11].mxu1 }
 0x215   : > { %v829_v59 = vpop.f32.mrb[12].mxu0 }
 0x216   : > { %v836_v61 = vadd.f32 %v829_v59, %v768_v52  ;;  %v831_v41 = vpop.f32.mrb[13].mxu0 }
 0x217   : > { %v837_v42 = vadd.f32 %v831_v41, %v769_v56  ;;  %v833_v62 = vpop.f32.mrb[14].mxu0 }
 0x218   : > { %v834_v54 = vpop.f32.mrb[15].mxu0 }
 0x219   : > { %v897_v63 = vpop.f32.mrb[12].mxu1 }
 0x21a   : > { %v904_v0 = vadd.f32 %v897_v63, %v836_v61  ;;  %v899_v1 = vpop.f32.mrb[13].mxu1 }
 0x21b   : > { %v905_v4 = vadd.f32 %v899_v1, %v837_v42  ;;  %v901_v5 = vpop.f32.mrb[14].mxu1 }
 0x21c   : > { %v902_v6 = vpop.f32.mrb[15].mxu1 }
 0x21d   : > { %v965_v7 = vpop.f32.mrb[16].mxu0 }
 0x21e   : > { %v972_v9 = vadd.f32 %v965_v7, %v904_v0  ;;  %v967_v10 = vpop.f32.mrb[17].mxu0 }
 0x21f   : > { %v973_v11 = vadd.f32 %v967_v10, %v905_v4  ;;  %v969_v12 = vpop.f32.mrb[18].mxu0 }
 0x220   : > { %v984_v13 = vadd.f32 %v983_v8, %v972_v9  ;;  %v970_v14 = vpop.f32.mrb[19].mxu0 }
 0x221   : > { %v985_v15 = vadd.f32 %v983_v8, %v973_v11 }
 0x222   : > { %v1123_v16 = vmul.f32 -1.442695, %v984_v13 }
 0x223   : > { %v1124_v17 = vmul.f32 -1.442695, %v985_v15 }
 0x224   : > { %1148 = vpow2.f32 %v1123_v16 }
 0x225   : > { %1150 = vpow2.f32 %v1124_v17 }
 0x22e   : > { %v1149_v18 = vpop.eup %1148 }
 0x22f   : > { %v1151_v19 = vpop.eup %1150  ;;  %v992_v20 = vadd.f32 1.0, %v1149_v18 }
 0x230   : > { %v993_v21 = vadd.f32 1.0, %v1151_v19 }
 0x231   : > { %1152 = vrcp.f32 %v992_v20 }
 0x232   : > { %1154 = vrcp.f32 %v993_v21 }
 0x23b   : > { %v1153_v3 = vpop.eup %1152 }
 0x23c   : > { %v1155_v26 = vpop.eup %1154 }
 0x23d   : > { %v1000_v27 = vcombine.low %v1153_v3, %v1155_v26 }
 0x23f   : > { %v1007_v28 = vrot.slane %v1000_v27, %v1006_v25 }
 0x241   : > { %v1014_v29 = vrot.slane %v1007_v28, %v1006_v25 }
 0x243   : > { %1020 = vst.msk [vmem:[%s224_s23] sm:$0x3] %vm1018_vm1, %v1014_v29 }
 0x244 PF: > { %s17_s20 = sadd.s32 1, %s1162_s20  }
 0x245   : > { %p14_p4 = scmp.ge.s32.totalorder %s17_s20, 4  }
 0x247   :  { %16 = sbr.rel (!%p14_p4) target bundleno = 3 (0x3), region = 78 }

// kernel: tirg_spade_forward.12
= control target key start
LH: loop header
LB: loop body
LE: loop exit
PB: predicated region body
PF: predicated region fallthrough
CT: control target
= control target key end

     0   :  { %s1562_s21 = smov 0   ;;  %s1778_s0 = inlined_call_operand.vmem [shape: f32[8,1], index: 0, kind: input, shape index: {}]   ;;  %s1779_s1 = inlined_call_operand.vmem [shape: f32[8,1], index: 1, kind: input, shape index: {}]   ;;  %s1780_s2 = inlined_call_operand.vmem [shape: f32[2,8,256], index: 2, kind: input, shape index: {}]   ;;  %s1781_s3 = inlined_call_operand.vmem [shape: bf16[9,32,8], index: 3, kind: input, shape index: {}]   ;;  %s1782_s4 = inlined_call_operand.vmem [shape: f32[32,1], index: 4, kind: input, shape index: {}]   ;;  %s1783_s5 = inlined_call_operand.vmem [shape: f32[2,32,256], index: 5, kind: output, shape index: {0}]   ;;  %s1784_s6 = inlined_call_operand.vmem [shape: f32[32,1], index: 6, kind: output, shape index: {1}]  }
   0x1 LB: > { %s1568_s22 = sadd.s32 4294967295, %s1515_s21   ;;  %p1317_p0 = scmp.ge.s32.totalorder %s1515_s21, 1  ;;  %s1515_s21 = sphi %s1562_s21, %s17_s21  }
   0x2   : > { %p210_p1 = scmp.lt.s32.totalorder %s1515_s21, 3 }
   0x4   : > { %p211_p2 = pnand %p1317_p0, %p210_p1 }
   0x5   : > { %v253_v0 = vld [vmem:[%s1778_s0] sm:$0xff] (!%p211_p2)  ;;  %p240_p3 = scmp.lt.s32.totalorder (!%p211_p2), %s1568_s22, 1  ;;  %v1517_v1 = vmov (!%p211_p2), 0   ;;  %v271_v3 = vlaneseq (!%p211_p2)  ;;  %vm369_vm1 = vcmask (!%p211_p2), 1043456   ;;  %s1518_s12 = smov (!%p211_p2), 16   ;;  %vm362_vm4 = vcmask (!%p211_p2), 64512  }
   0x6   : > { %214 = sbr.rel (%p211_p2) target bundleno = 718 (0x2ce), region = 40  ;;  %1489 = vset.pattern.permute.xlu0 (!%p211_p2), %v1517_v1  ;;  %755 = vmatprep.mubr.bf16.mxu0 (!%p211_p2), %v1517_v1  ;;  %v261_v2 = vld [vmem:[%s1779_s1] sm:$0xff] (!%p211_p2)  ;;  %s1519_s15 = smov (!%p211_p2), 127   ;;  %v1170_v31 = vld [vmem:[%s1782_s4 + $0x10] sm:$0xff] (!%p211_p2)  ;;  %v1169_v32 = vld [vmem:[%s1782_s4 + $0x8] sm:$0xff] (!%p211_p2)  ;;  %vm342_vm6 = vcmask (!%p211_p2), 130048  }
   0x7   : > { %256 = vperm.xlu0 (!%p211_p2), %1489, %v253_v0   ;;  %407 = vmatprep.mubr.bf16.mxu1 (!%p211_p2), %v1517_v1  ;;  %v272_v4 = vand.u32 (!%p211_p2), 127, %v271_v3  ;;  %v1491_v24 = vld [vmem:[%s1781_s3 + $0x40] sm:$0xff] (!%p211_p2)   ;;  %s1520_s16 = smov (!%p211_p2), 17   ;;  %s1521_s17 = smov (!%p211_p2), 113   ;;  %v1171_v33 = vld [vmem:[%s1782_s4 + $0x18] sm:$0xff] (!%p211_p2)  ;;  %vm788_vm7 = vcmask (!%p211_p2), 1039360  }
   0x8   : > { %1490 = vset.pattern.permute.xlu1 (!%p211_p2), %v1517_v1  ;;  %s1522_s18 = smov (!%p211_p2), 15   ;;  %s1523_s19 = smov (!%p211_p2), 112   ;;  %v1168_v30 = vld [vmem:[%s1782_s4] sm:$0xff] (!%p211_p2)  ;;  %v1492_v41 = vld [vmem:[%s1781_s3 + $0x10] sm:$0xff] (!%p211_p2)   ;;  %vm326_vm8 = vcmask (!%p211_p2), 138240   ;;  %vm884_vm9 = vcmask (!%p211_p2), 924672  }
   0x9   : > { %v278_v8 = vand.u32 (!%p211_p2), 15, %v272_v4  ;;  %v273_v11 = vadd.s32 (!%p211_p2), 128, %v272_v4  ;;  %s1524_s20 = smov (!%p211_p2), 1   ;;  %s1525_s23 = smov (!%p211_p2), 111   ;;  %v1493_v47 = vld [vmem:[%s1781_s3 + $0x50] sm:$0xff] (!%p211_p2)   ;;  %v1494_v52 = vld [vmem:[%s1781_s3 + $0x18] sm:$0xff] (!%p211_p2)  }
   0xa   : > { %v1495_v58 = vld [vmem:[%s1781_s3 + $0x58] sm:$0xff] (!%p211_p2)   ;;  %vm508_vm10 = vcmask (!%p211_p2), 121856   ;;  %vm980_vm11 = vcmask (!%p211_p2), 916480   ;;  %v1496_v62 = vld [vmem:[%s1781_s3] sm:$0xff] (!%p211_p2)   ;;  %vm604_vm12 = vcmask (!%p211_p2), 7168   ;;  %vm1076_vm13 = vcmask (!%p211_p2), 908288  }
   0xb   : > { %264 = vperm.xlu0 (!%p211_p2), %1489, %v261_v2   ;;  %vm310_vm0 = vcmp.ne.s32.totalorder (!%p211_p2), %v278_v8, 0  ;;  %v285_v17 = vand.u32 (!%p211_p2), 15, %v273_v11  ;;  %vm298_vm2 = vcmp.ne.s32.totalorder (!%p211_p2), %v278_v8, 15  ;;  %v1497_v4 = vld [vmem:[%s1781_s3 + $0x60] sm:$0xff] (!%p211_p2)   ;;  %p1399_p4 = scmp.ne.s32.totalorder (!%p211_p2), %s1568_s22, 0 }
   0xd   : > { %s241_s25 = scalar_select %p240_p3, %s1568_s22, 1  ;;  %vm311_vm3 = vcmp.ne.s32.totalorder %v285_v17, 0  ;;  %vm299_vm5 = vcmp.ne.s32.totalorder %v285_v17, 15 }
   0xf   : > { %s1404_s28 = sshll.u32 %s241_s25, 6  ;;  %s1403_s8 = sshll.u32 %s241_s25, 4 }
  0x10   : > { %s1587_s7 = scalar_lea.vmem %s1783_s5, %s1404_s28  ;;  %s244_s11 = scalar_lea.vmem %s1780_s2, %s1403_s8 }
  0x11   : > { %v251_v6 = vld [vmem:[%s244_s11] sm:$0xff]  ;;  %v252_v7 = vld [vmem:[%s244_s11 + $0x8] sm:$0xff] }
  0x86   : > { %v257_v5 = vpop.permute.xlu0 %256 }
  0x87   : > { %v259_v9 = vmul.f32 %v257_v5, %v251_v6  ;;  %v260_v10 = vmul.f32 %v257_v5, %v252_v7 }
  0x8a   : > { %v265_v12 = vpop.permute.xlu0 %264 }
  0x8b   : > { %v267_v13 = vadd.f32 %v265_v12, %v259_v9  ;;  %v268_v14 = vadd.f32 %v265_v12, %v260_v10  ;;  %v1498_v10 = vld [vmem:[%s1781_s3 + $0x8] sm:$0xff]  }
  0x8d   : > { %v269_v15 = vmax.f32 %v267_v13, 0.0  ;;  %v270_v16 = vmax.f32 %v268_v14, 0.0  ;;  %v1499_v13 = vld [vmem:[%s1781_s3 + $0x68] sm:$0xff]   ;;  %v1500_v14 = vld [vmem:[%s1781_s3 + $0x20] sm:$0xff]  }
  0x8f   : > { %v1592_v18 = vpack.c.bf16 %v270_v16, %v270_v16  ;;  %v308_v19 = vpack.c.bf16 %v269_v15, %v269_v15  ;;  %v316_v20 = vsel %vm310_vm0, %v269_v15, 0.0  ;;  %v304_v23 = vsel %vm298_vm2, %v269_v15, 0.0 }
  0x90   : > { %v318_v21 = vpack.c.bf16 %v316_v20, %v316_v20  ;;  %v306_v25 = vpack.c.bf16 %v304_v23, %v304_v23  ;;  %v317_v26 = vsel %vm311_vm3, %v270_v16, 0.0  ;;  %v305_v28 = vsel %vm299_vm5, %v270_v16, 0.0  ;;  %v1502_v23 = vld [vmem:[%s1781_s3 + $0x28] sm:$0xff]  }
  0x91   : > { %1360 = vmatprep.subr.msk.bf16.mxu0 %vm369_vm1, %v1592_v18  ;;  %338 = vrot.lane.b32.xlu1 %v308_v19, %s1518_s12  ;;  %v1597_v22 = vsel %vm369_vm1, %v308_v19, 0  ;;  %v319_v27 = vpack.c.bf16 %v317_v26, %v317_v26  ;;  %v307_v29 = vpack.c.bf16 %v305_v28, %v305_v28  ;;  %v1506_v26 = vld [vmem:[%s1781_s3 + $0x38] sm:$0xff]  }
  0x92   : > { %784 = vrot.lane.b32.xlu0 %v318_v21, %s1519_s15  ;;  %724 = vmatpush1.bf16.msra.mxu0 %v1597_v22 }
  0x95   : > { %340 = vrot.lane.b32.xlu1 %v1592_v18, %s1518_s12  ;;  %1361 = vmatmul.mubr.msk.bf16.vlgmr.msra.gmra.mrb[0].mxu0 %vm362_vm4, %v1491_v24  ;;  %v1503_v24 = vld [vmem:[%s1781_s3 + $0x78] sm:$0xff]  }
  0x96   : > { %322 = vrot.lane.b32.xlu0 %v306_v25, %s1520_s16  ;;  %851 = vmatprep.mubr.bf16.mxu0 %v1517_v1 }
  0x99   : > { %786 = vrot.lane.b32.xlu1 %v319_v27, %s1519_s15 }
  0x9a   : > { %880 = vrot.lane.b32.xlu0 %v306_v25, %s1521_s17 }
  0x9d   : > { %324 = vrot.lane.b32.xlu1 %v307_v29, %s1520_s16 }
  0x9e   : > { %504 = vrot.lane.b32.xlu0 %v318_v21, %s1522_s18 }
  0xa1   : > { %882 = vrot.lane.b32.xlu1 %v307_v29, %s1521_s17 }
  0xa2   : > { %976 = vrot.lane.b32.xlu0 %v308_v19, %s1523_s19  ;;  %v1501_v19 = vld [vmem:[%s1781_s3 + $0x70] sm:$0xff]  }
  0xa5   : > { %506 = vrot.lane.b32.xlu1 %v319_v27, %s1522_s18 }
  0xa6   : > { %600 = vrot.lane.b32.xlu0 %v306_v25, %s1524_s20  ;;  %v1505_v25 = vld [vmem:[%s1781_s3 + $0x80] sm:$0xff]  }
  0xa9   : > { %978 = vrot.lane.b32.xlu1 %v1592_v18, %s1523_s19 }
  0xaa   : > { %1072 = vrot.lane.b32.xlu0 %v318_v21, %s1525_s23 }
  0xad   : > { %602 = vrot.lane.b32.xlu1 %v307_v29, %s1524_s20 }
  0xae   : > { %1174 = vperm.xlu0 %1489, %v1168_v30  }
  0xb1   : > { %1074 = vrot.lane.b32.xlu1 %v319_v27, %s1525_s23  ;;  %v1507_v27 = vld [vmem:[%s1781_s3 + $0x88] sm:$0xff]  }
  0xb2   : > { %1184 = vperm.xlu0 %1489, %v1170_v31  }
  0xb5   : > { %1179 = vperm.xlu1 %1490, %v1169_v32  }
  0xb9   : > { %1189 = vperm.xlu1 %1490, %v1171_v33  }
 0x103   : > { %v339_v34 = vpop.permute.xlu1 %338 }
 0x104   : > { %v785_v35 = vpop.permute.xlu0 %784  ;;  %v346_v36 = vsel %vm342_vm6, 0, %v339_v34 }
 0x105   : > { %v370_v40 = vsel %vm369_vm1, %v346_v36, 0 }
 0x107   : > { %v341_v37 = vpop.permute.xlu1 %340 }
 0x108   : > { %v323_v38 = vpop.permute.xlu0 %322  ;;  %v343_v39 = vsel %vm342_vm6, %v339_v34, %v341_v37 }
 0x109   : > { %1328 = vmatprep.subr.msk.bf16.mxu1 %vm369_vm1, %v343_v39  ;;  %v331_v48 = vsel %vm326_vm8, 0, %v323_v38 }
 0x10a   : > { %376 = vmatpush1.bf16.msra.mxu1 %v370_v40  ;;  %v444_v51 = vsel %vm369_vm1, %v331_v48, 0 }
 0x10b   : > { %v787_v42 = vpop.permute.xlu1 %786 }
 0x10c   : > { %v789_v43 = vsel %vm788_vm7, %v785_v35, %v787_v42  ;;  %v792_v44 = vsel %vm788_vm7, %v787_v42, 0  ;;  %v881_v46 = vpop.permute.xlu0 %880 }
 0x10d   : > { %v815_v45 = vsel %vm369_vm1, %v789_v43, 0  ;;  %1329 = vmatmul.mubr.msk.bf16.vlgmr.msra.gmra.mrb[0].mxu1 %vm362_vm4, %v1492_v41  ;;  %1369 = vmatprep.subr.msk.bf16.mxu0 %vm369_vm1, %v792_v44 }
 0x10e   : > { %820 = vmatpush1.bf16.msra.mxu0 %v815_v45  ;;  %417 = vmatprep.mubr.bf16.mxu1 %v1517_v1 }
 0x10f   : > { %v325_v49 = vpop.permute.xlu1 %324 }
 0x110   : > { %v327_v50 = vsel %vm326_vm8, %v323_v38, %v325_v49  ;;  %v505_v53 = vpop.permute.xlu0 %504 }
 0x111   : > { %1333 = vmatprep.subr.msk.bf16.mxu1 %vm369_vm1, %v327_v50  ;;  %1370 = vmatmul.mubr.msk.bf16.vlgmr.msra.gmra.mrb[0].mxu0 %vm362_vm4, %v1493_v47  ;;  %v512_v63 = vsel %vm508_vm10, 0, %v505_v53 }
 0x112   : > { %450 = vmatpush1.bf16.msra.mxu1 %v444_v51  ;;  %861 = vmatprep.mubr.bf16.mxu0 %v1517_v1  ;;  %v534_v3 = vsel %vm369_vm1, %v512_v63, 0  ;;  %v1526_v63 = vmov (!%p1399_p4), 0.0  }
 0x113   : > { %v883_v54 = vpop.permute.xlu1 %882  ;;  %1204 = vst.msk [vmem:[#allocation2] sm:$0xff] (!%p1399_p4), %vm604_vm12, %v1526_v63  ;;  %1205 = vst.msk [vmem:[#allocation2 + $0x8] sm:$0xff] (!%p1399_p4), %vm604_vm12, %v1526_v63 }
 0x114   : > { %v885_v55 = vsel %vm884_vm9, %v881_v46, %v883_v54  ;;  %v888_v56 = vsel %vm884_vm9, %v883_v54, 0  ;;  %v977_v61 = vpop.permute.xlu0 %976  ;;  %1206 = vst.msk [vmem:[#allocation2 + $0x10] sm:$0xff] (!%p1399_p4), %vm604_vm12, %v1526_v63  ;;  %1207 = vst.msk [vmem:[#allocation2 + $0x18] sm:$0xff] (!%p1399_p4), %vm604_vm12, %v1526_v63 }
 0x115   : > { %v911_v57 = vsel %vm369_vm1, %v885_v55, 0  ;;  %1330 = vmatmul.mubr.msk.bf16.gmra.mrb[4].mxu1 %vm362_vm4, %v1494_v52  ;;  %1378 = vmatprep.subr.msk.bf16.mxu0 %vm369_vm1, %v888_v56 }
 0x116   : > { %916 = vmatpush1.bf16.msra.mxu0 %v911_v57  ;;  %481 = vmatprep.mubr.bf16.mxu1 %v1517_v1 }
 0x117   : > { %v507_v59 = vpop.permute.xlu1 %506 }
 0x118   : > { %v509_v60 = vsel %vm508_vm10, %v505_v53, %v507_v59  ;;  %v601_v6 = vpop.permute.xlu0 %600 }
 0x119   : > { %1342 = vmatprep.subr.msk.bf16.mxu1 %vm369_vm1, %v509_v60  ;;  %1371 = vmatmul.mubr.msk.bf16.gmra.mrb[4].mxu0 %vm362_vm4, %v1495_v58  ;;  %v608_v15 = vsel %vm604_vm12, 0, %v601_v6 }
 0x11a   : > { %947 = vmatprep.mubr.bf16.mxu0 %v1517_v1  ;;  %v630_v16 = vsel %vm369_vm1, %v608_v15, 0 }
 0x11b   : > { %v979_v0 = vpop.permute.xlu1 %978 }
 0x11c   : > { %v984_v2 = vsel %vm980_vm11, %v979_v0, 0  ;;  %v981_v5 = vsel %vm980_vm11, %v977_v61, %v979_v0  ;;  %v1073_v17 = vpop.permute.xlu0 %1072 }
 0x11d   : > { %1334 = vmatmul.mubr.msk.bf16.vlgmr.msra.gmra.mrb[0].mxu1 %vm362_vm4, %v1496_v62  ;;  %1387 = vmatprep.subr.msk.bf16.mxu0 %vm369_vm1, %v984_v2  ;;  %v1007_v9 = vsel %vm369_vm1, %v981_v5, 0 }
 0x11e   : > { %540 = vmatpush1.bf16.msra.mxu1 %v534_v3  ;;  %491 = vmatprep.mubr.bf16.mxu1 %v1517_v1 }
 0x11f   : > { %v603_v7 = vpop.permute.xlu1 %602 }
 0x120   : > { %v605_v8 = vsel %vm604_vm12, %v601_v6, %v603_v7 }
 0x121   : > { %1351 = vmatprep.subr.msk.bf16.mxu1 %vm369_vm1, %v605_v8  ;;  %1379 = vmatmul.mubr.msk.bf16.vlgmr.msra.gmra.mrb[0].mxu0 %vm362_vm4, %v1497_v4 }
 0x122   : > { %1012 = vmatpush1.bf16.msra.mxu0 %v1007_v9  ;;  %957 = vmatprep.mubr.bf16.mxu0 %v1517_v1 }
 0x123   : > { %v1075_v11 = vpop.permute.xlu1 %1074 }
 0x124   : > { %v1080_v12 = vsel %vm1076_vm13, %v1075_v11, 0  ;;  %v1077_v20 = vsel %vm1076_vm13, %v1073_v17, %v1075_v11 }
 0x125   : > { %1335 = vmatmul.mubr.msk.bf16.gmra.mrb[4].mxu1 %vm362_vm4, %v1498_v10  ;;  %1396 = vmatprep.subr.msk.bf16.mxu0 %vm369_vm1, %v1080_v12  ;;  %v1103_v21 = vsel %vm369_vm1, %v1077_v20, 0 }
 0x126   : > { %571 = vmatprep.mubr.bf16.mxu1 %v1517_v1 }
 0x129   : > { %1380 = vmatmul.mubr.msk.bf16.gmra.mrb[4].mxu0 %vm362_vm4, %v1499_v13 }
 0x12a   : > { %1043 = vmatprep.mubr.bf16.mxu0 %v1517_v1 }
 0x12d   : > { %1343 = vmatmul.mubr.msk.bf16.vlgmr.msra.gmra.mrb[0].mxu1 %vm362_vm4, %v1500_v14  ;;  %v1175_v33 = vpop.permute.xlu0 %1174 }
 0x12e   : > { %636 = vmatpush1.bf16.msra.mxu1 %v630_v16  ;;  %581 = vmatprep.mubr.bf16.mxu1 %v1517_v1 }
 0x12f   : > { %1405 = vmatprep.subr.msk.bf16.mxu1 %vm369_vm1, %v1592_v18  ;;  %v1504_v18 = vld [vmem:[%s1781_s3 + $0x30] sm:$0xff]  }
 0x131   : > { %1388 = vmatmul.mubr.msk.bf16.vlgmr.msra.gmra.mrb[0].mxu0 %vm362_vm4, %v1501_v19  ;;  %v1185_v52 = vpop.permute.xlu0 %1184 }
 0x132   : > { %1108 = vmatpush1.bf16.msra.mxu0 %v1103_v21  ;;  %1053 = vmatprep.mubr.bf16.mxu0 %v1517_v1 }
 0x134   : > { %v1180_v38 = vpop.permute.xlu1 %1179 }
 0x135   : > { %1344 = vmatmul.mubr.msk.bf16.gmra.mrb[4].mxu1 %vm362_vm4, %v1502_v23 }
 0x136   : > { %667 = vmatprep.mubr.bf16.mxu1 %v1517_v1 }
 0x138   : > { %v1190_v60 = vpop.permute.xlu1 %1189 }
 0x139   : > { %1389 = vmatmul.mubr.msk.bf16.gmra.mrb[4].mxu0 %vm362_vm4, %v1503_v24 }
 0x13a   : > { %1139 = vmatprep.mubr.bf16.mxu0 %v1517_v1 }
 0x13d   : > { %1352 = vmatmul.mubr.msk.bf16.vlgmr.msra.gmra.mrb[0].mxu1 %vm362_vm4, %v1504_v18 }
 0x13e   : > { %1406 = vmatpush1.bf16.msra.mxu1 %v1597_v22  ;;  %677 = vmatprep.mubr.bf16.mxu1 %v1517_v1  ;;  %v1508_v22 = vld [vmem:[%s1781_s3 + $0x48] sm:$0xff]  }
 0x141   : > { %1397 = vmatmul.mubr.msk.bf16.vlgmr.msra.gmra.mrb[0].mxu0 %vm362_vm4, %v1505_v25 }
 0x142   : > { %1149 = vmatprep.mubr.bf16.mxu0 %v1517_v1 }
 0x145   : > { %1353 = vmatmul.mubr.msk.bf16.gmra.mrb[4].mxu1 %vm362_vm4, %v1506_v26 }
 0x146   : > { %765 = vmatprep.mubr.bf16.mxu1 %v1517_v1 }
 0x149   : > { %1398 = vmatmul.mubr.msk.bf16.gmra.mrb[4].mxu0 %vm362_vm4, %v1507_v27 }
 0x151   : > { %1362 = vmatmul.mubr.msk.bf16.vlgmr.msra.gmra.mrb[4].mxu1 %vm362_vm4, %v1508_v22 }
 0x210   : > { %v669_v28 = vpop.f32.mrb[0].mxu1 }
 0x211   : > { %v671_v29 = vpop.f32.mrb[1].mxu1 }
 0x212   : > { %v673_v30 = vpop.f32.mrb[2].mxu1 }
 0x213   : > { %v675_v31 = vpop.f32.mrb[3].mxu1 }
 0x214   : > { %v1141_v32 = vpop.f32.mrb[0].mxu0 }
 0x215   : > { %v1407_v34 = vadd.f32 %v1141_v32, %v669_v28  ;;  %v1143_v35 = vpop.f32.mrb[1].mxu0 }
 0x216   : > { %v1408_v36 = vadd.f32 %v1143_v35, %v671_v29  ;;  %v1145_v37 = vpop.f32.mrb[2].mxu0 }
 0x217   : > { %v1725_v1 = vadd.f32 %v1407_v34, %v1175_v33  ;;  %v1409_v39 = vadd.f32 %v1145_v37, %v673_v30  ;;  %v1147_v40 = vpop.f32.mrb[3].mxu0 }
 0x218   : > { %v1727_v41 = vadd.f32 %v1408_v36, %v1175_v33  ;;  %v1410_v42 = vadd.f32 %v1147_v40, %v675_v31 }
 0x219   : > { %v1729_v43 = vadd.f32 %v1409_v39, %v1180_v38 }
 0x21a   : > { %v1731_v44 = vadd.f32 %v1410_v42, %v1180_v38 }
 0x21c   : > { %v1151_v45 = vpop.f32.mrb[4].mxu0 }
 0x21d   : > { %v1153_v46 = vpop.f32.mrb[5].mxu0 }
 0x21e   : > { %v1155_v47 = vpop.f32.mrb[6].mxu0 }
 0x21f   : > { %v1157_v48 = vpop.f32.mrb[7].mxu0 }
 0x224   : > { %v767_v49 = vpop.f32.mrb[4].mxu1  ;;  %1203 = sbr.rel (%p1399_p4) target bundleno = 555 (0x22b), region = 44 }
 0x225   : > { %v1411_v50 = vadd.f32 %v1151_v45, %v767_v49  ;;  %v769_v51 = vpop.f32.mrb[5].mxu1 }
 0x226   : > { %v1412_v53 = vadd.f32 %v1153_v46, %v769_v51  ;;  %v771_v54 = vpop.f32.mrb[6].mxu1 }
 0x227   : > { %v1196_v55 = vadd.f32 %v1411_v50, %v1185_v52  ;;  %v1413_v56 = vadd.f32 %v1155_v47, %v771_v54  ;;  %v773_v57 = vpop.f32.mrb[7].mxu1 }
 0x228   : > { %v1197_v58 = vadd.f32 %v1412_v53, %v1185_v52  ;;  %v1414_v59 = vadd.f32 %v1157_v48, %v773_v57 }
 0x229   : > { %v1198_v61 = vadd.f32 %v1413_v56, %v1190_v60 }
 0x22a   : > { %v1199_v62 = vadd.f32 %v1414_v59, %v1190_v60 }
 0x22b PF: > { %v1218_v0 = vadd.f32 %v1197_v58, %v1196_v55  ;;  %v1212_v2 = vadd.f32 %v1727_v41, %v1725_v1  ;;  %v1215_v4 = vadd.f32 %v1731_v44, %v1729_v43  ;;  %v1210_v5 = vld [vmem:[#allocation2 + $0x10] sm:$0xff]  ;;  %v1208_v6 = vld [vmem:[#allocation2] sm:$0xff]  ;;  %v1211_v11 = vld [vmem:[#allocation2 + $0x18] sm:$0xff]  ;;  %p1400_p5 = scmp.ne.s32.totalorder %s1568_s22, 1 }
 0x22c   : > { %v1221_v3 = vadd.f32 %v1199_v62, %v1198_v61  ;;  %v1209_v12 = vld [vmem:[#allocation2 + $0x8] sm:$0xff] }
 0x22d   : > { %1219 = vadd.xlane.f32.xlu1 %v1218_v0  ;;  %1213 = vadd.xlane.f32.xlu0 %v1212_v2 }
 0x231   : > { %1222 = vadd.xlane.f32.xlu1 %v1221_v3  ;;  %1216 = vadd.xlane.f32.xlu0 %v1215_v4 }
 0x2ba   : > { %v1220_v7 = vpop.xlane.xlu1 %1219  ;;  %v1214_v8 = vpop.xlane.xlu0 %1213 }
 0x2bb   : > { %v1226_v9 = vadd.f32 %v1220_v7, %v1210_v5  ;;  %v1224_v10 = vadd.f32 %v1214_v8, %v1208_v6  ;;  %1235 = sbr.rel (%p1400_p5) target bundleno = 714 (0x2ca), region = 48 }
 0x2bd   : > { %1230 = vst.msk [vmem:[#allocation2 + $0x10] sm:$0xff] %vm604_vm12, %v1226_v9  ;;  %1228 = vst.msk [vmem:[#allocation2] sm:$0xff] %vm604_vm12, %v1224_v10 }
 0x2be   : > { %v1223_v13 = vpop.xlane.xlu1 %1222  ;;  %v1217_v14 = vpop.xlane.xlu0 %1216 }
 0x2bf   : > { %v1227_v15 = vadd.f32 %v1223_v13, %v1211_v11  ;;  %v1225_v16 = vadd.f32 %v1217_v14, %v1209_v12 }
 0x2c1   : > { %1231 = vst.msk [vmem:[#allocation2 + $0x18] sm:$0xff] %vm604_vm12, %v1227_v15  ;;  %1229 = vst.msk [vmem:[#allocation2 + $0x8] sm:$0xff] %vm604_vm12, %v1225_v16 }
 0x2c4   : > { %v1236_v17 = vld [vmem:[#allocation2] sm:$0xff]  ;;  %v1238_v20 = vld [vmem:[#allocation2 + $0x10] sm:$0xff] }
 0x2c5   : > { %1240 = vst.msk [vmem:[%s1784_s6] sm:$0xff] %vm604_vm12, %v1236_v17  ;;  %1242 = vst.msk [vmem:[%s1784_s6 + $0x10] sm:$0xff] %vm604_vm12, %v1238_v20 }
 0x2c8   : > { %v1237_v19 = vld [vmem:[#allocation2 + $0x8] sm:$0xff]  ;;  %v1239_v21 = vld [vmem:[#allocation2 + $0x18] sm:$0xff] }
 0x2c9   : > { %1241 = vst.msk [vmem:[%s1784_s6 + $0x8] sm:$0xff] %vm604_vm12, %v1237_v19  ;;  %1243 = vst.msk [vmem:[%s1784_s6 + $0x18] sm:$0xff] %vm604_vm12, %v1239_v21 }
 0x2ca PF: > { %1244 = vst [vmem:[%s1587_s7] sm:$0xff] %v1725_v1  ;;  %1245 = vst [vmem:[%s1587_s7 + $0x8] sm:$0xff] %v1727_v41 }
 0x2cb   : > { %1246 = vst [vmem:[%s1587_s7 + $0x10] sm:$0xff] %v1729_v43  ;;  %1247 = vst [vmem:[%s1587_s7 + $0x18] sm:$0xff] %v1731_v44 }
 0x2cc   : > { %1248 = vst [vmem:[%s1587_s7 + $0x20] sm:$0xff] %v1196_v55  ;;  %1249 = vst [vmem:[%s1587_s7 + $0x28] sm:$0xff] %v1197_v58 }
 0x2cd   : > { %1250 = vst [vmem:[%s1587_s7 + $0x30] sm:$0xff] %v1198_v61  ;;  %1251 = vst [vmem:[%s1587_s7 + $0x38] sm:$0xff] %v1199_v62 }
 0x2ce PF: > { %s17_s21 = sadd.s32 1, %s1515_s21  }
 0x2cf   : > { %p14_p6 = scmp.ge.s32.totalorder %s17_s21, 4  }
 0x2d1   :  { %16 = sbr.rel (!%p14_p6) target bundleno = 1 (0x1), region = 94 }

// kernel: tirg_spade_forward.18
= control target key start
LH: loop header
LB: loop body
LE: loop exit
PB: predicated region body
PF: predicated region fallthrough
CT: control target
= control target key end

     0   :  { %s359_s18 = smov 0   ;;  %s397_s0 = inlined_call_operand.vmem [shape: f32[2,4,256], index: 0, kind: input, shape index: {}]   ;;  %s398_s1 = inlined_call_operand.vmem [shape: f32[4,1], index: 1, kind: input, shape index: {}]   ;;  %s399_s2 = inlined_call_operand.vmem [shape: f32[4,1], index: 2, kind: input, shape index: {}]   ;;  %s400_s3 = inlined_call_operand.vmem [shape: f32[4,1], index: 3, kind: input, shape index: {}]   ;;  %s401_s4 = inlined_call_operand.vmem [shape: f32[4,1], index: 4, kind: output, shape index: {0}]   ;;  %s402_s5 = inlined_call_operand.vmem [shape: f32[4,1], index: 5, kind: output, shape index: {1}]  }
   0x1 LB: > { %s365_s19 = sadd.s32 4294967295, %s324_s18   ;;  %p296_p0 = scmp.ge.s32.totalorder %s324_s18, 1  ;;  %s324_s18 = sphi %s359_s18, %s16_s18  }
   0x2   : > { %p180_p1 = scmp.lt.s32.totalorder %s324_s18, 3 }
   0x4   : > { %p181_p2 = pnand %p296_p0, %p180_p1 }
   0x5   : > { %p203_p3 = scmp.lt.s32.totalorder (!%p181_p2), %s365_s19, 1  ;;  %v208_v0 = vld [vmem:[%s398_s1] sm:$0xf] (!%p181_p2)  ;;  %p299_p4 = scmp.ne.s32.totalorder (!%p181_p2), %s365_s19, 0 }
   0x6   : > { %184 = sbr.rel (%p181_p2) target bundleno = 336 (0x150), region = 36  ;;  %v209_v1 = vmul.f32 (!%p181_p2), 0.001953125, %v208_v0 }
   0xd   : > { %s204_s22 = scalar_select %p203_p3, %s365_s19, 1 }
   0xe   : > { %214 = sbr.rel (%p299_p4) target bundleno = 21 (0x15), region = 40  ;;  %vm215_vm0 = vcmask (!%p299_p4), 3072   ;;  %v326_v3 = vmov (!%p299_p4), 0.0  }
   0xf   : > { %s303_s23 = sshll.u32 %s204_s22, 3  ;;  %216 = vst.msk [vmem:[#allocation2] sm:$0xf] (!%p299_p4), %vm215_vm0, %v326_v3 }
  0x10   : > { %s207_s26 = scalar_lea.vmem %s397_s0, %s303_s23 }
  0x11   : > { %v210_v2 = vld [vmem:[%s207_s26] sm:$0xff] }
  0x15 PF: > { %v327_v4 = vmov 0   ;;  %v328_v5 = vmov 839922192   ;;  %v224_v7 = vlaneseq  ;;  %vm235_vm1 = vcmask 1043456   ;;  %p300_p5 = scmp.ne.s32.totalorder %s365_s19, 1 }
  0x16   : > { %315 = vset.pattern.permute.xlu0 %v327_v4  ;;  %v222_v6 = vunpack.c.l.s4 %v328_v5  ;;  %v230_v19 = vld [vmem:[#allocation2] sm:$0xf]  ;;  %vm242_vm2 = vcmask 3072  }
  0x17   : > { %219 = vperm.xlu0 %315, %v209_v1   ;;  %v225_v9 = vshrl.u32 %v224_v7, 7  ;;  %v250_v25 = vld [vmem:[%s399_s2] sm:$0xf] (!%p300_p5) }
  0x18   : > { %v223_v8 = vunpack.c.0.s8 %v222_v6  ;;  %v255_v28 = vld [vmem:[%s400_s3] sm:$0xf] (!%p300_p5) }
  0x1a   : > { %v226_v10 = vsub.s32 %v223_v8, %v225_v9 }
  0x96   : > { %v220_v11 = vpop.permute.xlu0 %219 }
  0x97   : > { %v227_v12 = vrot.slane %v220_v11, %v226_v10 }
  0x99   : > { %v229_v13 = vsub.f32 %v210_v2, %v227_v12 }
  0x9b   : > { %v231_v14 = vmul.f32 %v229_v13, %v229_v13 }
  0x9d   : > { %v233_v15 = vcombine.high %v231_v14, %v231_v14  ;;  %v236_v16 = vsel %vm235_vm1, %v231_v14, 0.0 }
  0x9f   : > { %v237_v17 = vsel %vm235_vm1, %v233_v15, 0.0 }
  0xa0   : > { %v238_v18 = vadd.f32 %v237_v17, %v236_v16 }
  0xa2   : > { %239 = vadd.xlane.f32.xlu0 %v238_v18 }
 0x12c   : > { %247 = sbr.rel (%p300_p5) target bundleno = 336 (0x150), region = 44 }
 0x12f   : > { %v240_v20 = vpop.xlane.xlu0 %239 }
 0x130   : > { %v241_v21 = vadd.f32 %v240_v20, %v230_v19 }
 0x132   : > { %243 = vst.msk [vmem:[#allocation2] sm:$0xf] %vm242_vm2, %v241_v21 }
 0x139   : > { %v248_v22 = vld [vmem:[#allocation2] sm:$0xf] }
 0x13a   : > { %v249_v23 = vmul.f32 0.001953125, %v248_v22 }
 0x13c   : > { %v251_v24 = vadd.f32 1e-05, %v249_v23 }
 0x13e   : > { %316 = vrsqrt.f32 %v251_v24 }
 0x148   : > { %v317_v26 = vpop.eup %316 }
 0x149   : > { %v253_v27 = vmul.f32 %v317_v26, %v250_v25 }
 0x14b   : > { %254 = vst.msk [vmem:[%s401_s4] sm:$0xf] %vm242_vm2, %v253_v27  ;;  %v256_v29 = vmul.f32 %v253_v27, %v209_v1 }
 0x14d   : > { %v257_v30 = vsub.f32 %v255_v28, %v256_v29 }
 0x14f   : > { %258 = vst.msk [vmem:[%s402_s5] sm:$0xf] %vm242_vm2, %v257_v30 }
 0x150 PF: > { %s16_s18 = sadd.s32 1, %s324_s18  }
 0x151   : > { %p13_p6 = scmp.ge.s32.totalorder %s16_s18, 4  }
 0x153   :  { %15 = sbr.rel (!%p13_p6) target bundleno = 1 (0x1), region = 78 }

// kernel: tirg_spade_forward.15
= control target key start
LH: loop header
LB: loop body
LE: loop exit
PB: predicated region body
PF: predicated region fallthrough
CT: control target
= control target key end

     0   :  { %s1492_s12 = smov 0   ;;  %s1751_s0 = inlined_call_operand.vmem [shape: f32[2,32,256], index: 0, kind: input, shape index: {}]   ;;  %s1752_s1 = inlined_call_operand.vmem [shape: bf16[9,32,32], index: 1, kind: input, shape index: {}]   ;;  %s1753_s2 = inlined_call_operand.vmem [shape: f32[32,1], index: 2, kind: input, shape index: {}]   ;;  %s1754_s3 = inlined_call_operand.vmem [shape: f32[2,32,256], index: 3, kind: output, shape index: {}]  }
   0x1 LB: > { %s1245_s13 = sadd.s32 4294967295, %s1461_s12   ;;  %p1249_p0 = scmp.ge.s32.totalorder %s1461_s12, 1  ;;  %s1461_s12 = sphi %s1492_s12, %s13_s12  }
   0x2   : > { %p137_p1 = scmp.lt.s32.totalorder %s1461_s12, 3 }
   0x4   : > { %p138_p2 = pnand %p1249_p0, %p137_p1 }
   0x5   : > { %p161_p3 = scmp.lt.s32.totalorder (!%p138_p2), %s1245_s13, 1  ;;  %v180_v0 = vlaneseq (!%p138_p2)  ;;  %v1463_v4 = vmov (!%p138_p2), 0   ;;  %s1464_s18 = smov (!%p138_p2), 16   ;;  %vm315_vm4 = vcmask (!%p138_p2), 261120   ;;  %v1437_v32 = vld [vmem:[%s1752_s1 + $0x40] sm:$0xff] (!%p138_p2)   ;;  %v1143_v48 = vld [vmem:[%s1753_s2 + $0x8] sm:$0xff] (!%p138_p2) }
   0x6   : > { %141 = sbr.rel (%p138_p2) target bundleno = 438 (0x1b6), region = 32  ;;  %705 = vmatprep.mubr.bf16.mxu0 (!%p138_p2), %v1463_v4  ;;  %354 = vmatprep.mubr.bf16.mxu1 (!%p138_p2), %v1463_v4  ;;  %s1465_s21 = smov (!%p138_p2), 127   ;;  %v1142_v47 = vld [vmem:[%s1753_s2] sm:$0xff] (!%p138_p2)  ;;  %v1144_v49 = vld [vmem:[%s1753_s2 + $0x10] sm:$0xff] (!%p138_p2)  ;;  %v1145_v50 = vld [vmem:[%s1753_s2 + $0x18] sm:$0xff] (!%p138_p2)  ;;  %vm288_vm5 = vcmask (!%p138_p2), 130048  }
   0x7   : > { %v181_v1 = vand.u32 (!%p138_p2), 127, %v180_v0  ;;  %1435 = vset.pattern.permute.xlu0 (!%p138_p2), %v1463_v4  ;;  %1436 = vset.pattern.permute.xlu1 (!%p138_p2), %v1463_v4  ;;  %s1466_s22 = smov (!%p138_p2), 17   ;;  %s1467_s23 = smov (!%p138_p2), 113   ;;  %vm1260_vm6 = vmneg (!%p138_p2), %vm288_vm5  ;;  %vm742_vm7 = vcmask (!%p138_p2), 1039360   ;;  %vm259_vm8 = vcmask (!%p138_p2), 138240   ;;  %v1438_v60 = vld [vmem:[%s1752_s1 + $0x10] sm:$0xff] (!%p138_p2)  }
   0x8   : > { %s1468_s24 = smov (!%p138_p2), 15   ;;  %s1469_s25 = smov (!%p138_p2), 112   ;;  %vm1603_vm9 = vmneg (!%p138_p2), %vm259_vm8  ;;  %vm844_vm10 = vcmask (!%p138_p2), 924672   ;;  %vm456_vm11 = vcmask (!%p138_p2), 121856   ;;  %v1442_v16 = vld [vmem:[%s1752_s1] sm:$0xff] (!%p138_p2)   ;;  %vm946_vm13 = vcmask (!%p138_p2), 916480  }
   0x9   : > { %v182_v2 = vadd.s32 (!%p138_p2), 128, %v181_v1  ;;  %v187_v3 = vand.u32 (!%p138_p2), 15, %v181_v1  ;;  %s1470_s26 = smov (!%p138_p2), 1   ;;  %s1471_s27 = smov (!%p138_p2), 111   ;;  %vm1636_vm12 = vmneg (!%p138_p2), %vm456_vm11  ;;  %vm558_vm14 = vcmask (!%p138_p2), 7168  }
   0xa   : > { %vm1671_vm15 = vmneg (!%p138_p2), %vm558_vm14 }
   0xb   : > { %v194_v8 = vand.u32 (!%p138_p2), 15, %v182_v2  ;;  %vm1520_vm1 = vcmp.ne.s32.totalorder (!%p138_p2), %v187_v3, 0  ;;  %vm1543_vm3 = vcmp.ne.s32.totalorder (!%p138_p2), %v187_v3, 15 }
   0xd   : > { %s1770_s13 = smov (!%p161_p3, %s1245_s13), 1  ;;  %vm1516_vm0 = vcmp.ne.s32.totalorder %v194_v8, 0  ;;  %vm1538_vm2 = vcmp.ne.s32.totalorder %v194_v8, 15 }
   0xe   : > { %s1348_s14 = sshll.u32 %s1770_s13, 6 }
   0xf   : > { %s165_s17 = scalar_lea.vmem %s1751_s0, %s1348_s14 }
  0x10   : > { %v176_v5 = vld [vmem:[%s165_s17 + $0x20] sm:$0xff]  ;;  %v178_v6 = vld [vmem:[%s165_s17 + $0x30] sm:$0xff]  ;;  %v177_v11 = vld [vmem:[%s165_s17 + $0x28] sm:$0xff] }
  0x11   : > { %v172_v7 = vld [vmem:[%s165_s17] sm:$0xff]  ;;  %v1512_v9 = vpack.c.bf16 %v178_v6, %v176_v5  ;;  %v174_v10 = vld [vmem:[%s165_s17 + $0x10] sm:$0xff]  ;;  %v179_v12 = vld [vmem:[%s165_s17 + $0x38] sm:$0xff]  ;;  %v240_v33 = vsel %vm1516_vm0, %v177_v11, 0.0  ;;  %v239_v37 = vsel %vm1520_vm1, %v176_v5, 0.0  ;;  %v241_v38 = vsel %vm1520_vm1, %v178_v6, 0.0 }
  0x12   : > { %v1514_v13 = vpack.c.bf16 %v174_v10, %v172_v7  ;;  %v173_v14 = vld [vmem:[%s165_s17 + $0x8] sm:$0xff]  ;;  %v175_v15 = vld [vmem:[%s165_s17 + $0x18] sm:$0xff]  ;;  %v1525_v18 = vpack.c.bf16 %v179_v12, %v177_v11  ;;  %v235_v22 = vsel %vm1520_vm1, %v172_v7, 0.0  ;;  %v237_v23 = vsel %vm1520_vm1, %v174_v10, 0.0 }
  0x13   : > { %284 = vrot.lane.b32.xlu1 %v1512_v9, %s1464_s18  ;;  %v1527_v19 = vpack.c.bf16 %v175_v15, %v173_v14  ;;  %v236_v20 = vsel %vm1516_vm0, %v173_v14, 0.0  ;;  %v238_v21 = vsel %vm1516_vm0, %v175_v15, 0.0  ;;  %v243_v27 = vpack.c.bf16 %v237_v23, %v235_v22 }
  0x14   : > { %280 = vrot.lane.b32.xlu0 %v1514_v13, %s1464_s18  ;;  %v244_v26 = vpack.c.bf16 %v238_v21, %v236_v20  ;;  %v214_v28 = vsel %vm1538_vm2, %v173_v14, 0.0  ;;  %v216_v29 = vsel %vm1538_vm2, %v175_v15, 0.0  ;;  %v213_v30 = vsel %vm1543_vm3, %v172_v7, 0.0  ;;  %v1441_v15 = vld [vmem:[%s1752_s1 + $0x58] sm:$0xff]  }
  0x15   : > { %673 = vmatprep.subr.bf16.mxu0 %v1527_v19  ;;  %v215_v31 = vsel %vm1543_vm3, %v174_v10, 0.0  ;;  %v242_v34 = vsel %vm1516_vm0, %v179_v12, 0.0  ;;  %v222_v35 = vpack.c.bf16 %v216_v29, %v214_v28  ;;  %v245_v40 = vpack.c.bf16 %v241_v38, %v239_v37 }
  0x16   : > { %674 = vmatpush1.bf16.msra.mxu0 %v1514_v13  ;;  %v221_v36 = vpack.c.bf16 %v215_v31, %v213_v30  ;;  %v246_v39 = vpack.c.bf16 %v242_v34, %v240_v33  ;;  %v218_v41 = vsel %vm1538_vm2, %v177_v11, 0.0  ;;  %v220_v42 = vsel %vm1538_vm2, %v179_v12, 0.0  ;;  %v1445_v34 = vld [vmem:[%s1752_s1 + $0x68] sm:$0xff]  }
  0x17   : > { %286 = vrot.lane.b32.xlu1 %v1525_v18, %s1464_s18  ;;  %675 = vmatprep.subr.bf16.mxu0 %v1525_v18  ;;  %v217_v43 = vsel %vm1543_vm3, %v176_v5, 0.0  ;;  %v219_v44 = vsel %vm1543_vm3, %v178_v6, 0.0  ;;  %v224_v45 = vpack.c.bf16 %v220_v42, %v218_v41  ;;  %v1439_v5 = vld [vmem:[%s1752_s1 + $0x50] sm:$0xff]   ;;  %v1440_v6 = vld [vmem:[%s1752_s1 + $0x18] sm:$0xff]   ;;  %vm1048_vm0 = vcmask 908288  }
  0x18   : > { %282 = vrot.lane.b32.xlu0 %v1527_v19, %s1464_s18  ;;  %v223_v46 = vpack.c.bf16 %v219_v44, %v217_v43  ;;  %v1447_v43 = vld [vmem:[%s1752_s1 + $0x70] sm:$0xff]   ;;  %v1448_v44 = vld [vmem:[%s1752_s1 + $0x28] sm:$0xff]  }
  0x1a   : > { %676 = vmatpush1.bf16.msra.mxu0 %v1512_v9 }
  0x1b   : > { %736 = vrot.lane.b32.xlu1 %v244_v26, %s1465_s21 }
  0x1c   : > { %734 = vrot.lane.b32.xlu0 %v243_v27, %s1465_s21 }
  0x1d   : > { %1304 = vmatmul.mubr.msk.bf16.vlgmr.msra.gmra.mrb[0].mxu0 %vm315_vm4, %v1437_v32 }
  0x1e   : > { %807 = vmatprep.mubr.bf16.mxu0 %v1463_v4 }
  0x1f   : > { %253 = vrot.lane.b32.xlu1 %v222_v35, %s1466_s22 }
  0x20   : > { %251 = vrot.lane.b32.xlu0 %v221_v36, %s1466_s22 }
  0x23   : > { %740 = vrot.lane.b32.xlu1 %v246_v39, %s1465_s21 }
  0x24   : > { %738 = vrot.lane.b32.xlu0 %v245_v40, %s1465_s21 }
  0x27   : > { %257 = vrot.lane.b32.xlu1 %v224_v45, %s1466_s22 }
  0x28   : > { %255 = vrot.lane.b32.xlu0 %v223_v46, %s1466_s22 }
  0x2b   : > { %838 = vrot.lane.b32.xlu1 %v222_v35, %s1467_s23 }
  0x2c   : > { %836 = vrot.lane.b32.xlu0 %v221_v36, %s1467_s23 }
  0x2f   : > { %450 = vrot.lane.b32.xlu1 %v244_v26, %s1468_s24 }
  0x30   : > { %448 = vrot.lane.b32.xlu0 %v243_v27, %s1468_s24 }
  0x33   : > { %842 = vrot.lane.b32.xlu1 %v224_v45, %s1467_s23 }
  0x34   : > { %840 = vrot.lane.b32.xlu0 %v223_v46, %s1467_s23 }
  0x37   : > { %454 = vrot.lane.b32.xlu1 %v246_v39, %s1468_s24 }
  0x38   : > { %452 = vrot.lane.b32.xlu0 %v245_v40, %s1468_s24  ;;  %s1738_s24 = scalar_lea.vmem %s1754_s3, %s1348_s14 }
  0x3b   : > { %940 = vrot.lane.b32.xlu1 %v1527_v19, %s1469_s25 }
  0x3c   : > { %938 = vrot.lane.b32.xlu0 %v1514_v13, %s1469_s25 }
  0x3f   : > { %552 = vrot.lane.b32.xlu1 %v222_v35, %s1470_s26  ;;  %v1446_v35 = vld [vmem:[%s1752_s1 + $0x20] sm:$0xff]  }
  0x40   : > { %550 = vrot.lane.b32.xlu0 %v221_v36, %s1470_s26 }
  0x43   : > { %944 = vrot.lane.b32.xlu1 %v1525_v18, %s1469_s25 }
  0x44   : > { %942 = vrot.lane.b32.xlu0 %v1512_v9, %s1469_s25 }
  0x47   : > { %556 = vrot.lane.b32.xlu1 %v224_v45, %s1470_s26 }
  0x48   : > { %554 = vrot.lane.b32.xlu0 %v223_v46, %s1470_s26 }
  0x4b   : > { %1042 = vrot.lane.b32.xlu1 %v244_v26, %s1471_s27  ;;  %v1443_v26 = vld [vmem:[%s1752_s1 + $0x60] sm:$0xff]  }
  0x4c   : > { %1040 = vrot.lane.b32.xlu0 %v243_v27, %s1471_s27  ;;  %v1444_v27 = vld [vmem:[%s1752_s1 + $0x8] sm:$0xff]  }
  0x4f   : > { %1046 = vrot.lane.b32.xlu1 %v246_v39, %s1471_s27 }
  0x50   : > { %1044 = vrot.lane.b32.xlu0 %v245_v40, %s1471_s27 }
  0x53   : > { %1153 = vperm.xlu1 %1436, %v1143_v48  }
  0x54   : > { %1148 = vperm.xlu0 %1435, %v1142_v47  }
  0x57   : > { %1158 = vperm.xlu1 %1436, %v1144_v49  }
  0x58   : > { %1163 = vperm.xlu0 %1435, %v1145_v50  }
  0x85   : > { %v285_v51 = vpop.permute.xlu1 %284 }
  0x86   : > { %v281_v52 = vpop.permute.xlu0 %280 }
  0x89   : > { %v287_v53 = vpop.permute.xlu1 %286 }
  0x8a   : > { %v283_v54 = vpop.permute.xlu0 %282  ;;  %v290_v57 = vsel %vm288_vm5, %v285_v51, %v287_v53 }
  0x8b   : > { %v289_v55 = vsel %vm288_vm5, %v281_v52, %v283_v54 }
  0x8c   : > { %322 = vmatprep.subr.bf16.mxu1 %v289_v55 }
  0x8d   : > { %1261 = vmatpush1.bf16.msk.msra.mxu1 %vm1260_vm6, %v281_v52  ;;  %v737_v56 = vpop.permute.xlu1 %736  ;;  %v1450_v52 = vld [vmem:[%s1752_s1 + $0x30] sm:$0xff]  }
  0x8e   : > { %324 = vmatprep.subr.bf16.mxu1 %v290_v57  ;;  %v735_v58 = vpop.permute.xlu0 %734  ;;  %1312 = vmatprep.subr.msk.bf16.mxu0 %vm742_vm7, %v737_v56 }
  0x8f   : > { %v743_v59 = vsel %vm742_vm7, %v735_v58, %v737_v56  ;;  %v1452_v56 = vld [vmem:[%s1752_s1 + $0x38] sm:$0xff]  }
  0x90   : > { %776 = vmatpush1.bf16.msra.mxu0 %v743_v59 }
  0x91   : > { %1263 = vmatpush1.bf16.msk.msra.mxu1 %vm1260_vm6, %v285_v51  ;;  %v254_v61 = vpop.permute.xlu1 %253  ;;  %v1449_v51 = vld [vmem:[%s1752_s1 + $0x78] sm:$0xff]  }
  0x92   : > { %v252_v62 = vpop.permute.xlu0 %251 }
  0x93   : > { %v260_v0 = vsel %vm259_vm8, %v252_v62, %v254_v61 }
  0x94   : > { %1264 = vmatmul.mubr.msk.bf16.vlgmr.msra.gmra.mrb[0].mxu1 %vm315_vm4, %v1438_v60  ;;  %391 = vmatprep.subr.bf16.mxu1 %v260_v0 }
  0x95   : > { %1269 = vmatpush1.bf16.msk.msra.mxu1 %vm1603_vm9, %v252_v62  ;;  %v741_v1 = vpop.permute.xlu1 %740  ;;  %364 = vmatprep.mubr.bf16.mxu1 %v1463_v4 }
  0x96   : > { %v739_v2 = vpop.permute.xlu0 %738  ;;  %1313 = vmatprep.subr.msk.bf16.mxu0 %vm742_vm7, %v741_v1 }
  0x97   : > { %v744_v3 = vsel %vm742_vm7, %v739_v2, %v741_v1 }
  0x98   : > { %778 = vmatpush1.bf16.msra.mxu0 %v744_v3 }
  0x99   : > { %v258_v7 = vpop.permute.xlu1 %257 }
  0x9a   : > { %v256_v8 = vpop.permute.xlu0 %255 }
  0x9b   : > { %1314 = vmatmul.mubr.msk.bf16.vlgmr.msra.gmra.mrb[0].mxu0 %vm315_vm4, %v1439_v5  ;;  %v261_v10 = vsel %vm259_vm8, %v256_v8, %v258_v7 }
  0x9c   : > { %1265 = vmatmul.mubr.msk.bf16.gmra.mrb[4].mxu1 %vm315_vm4, %v1440_v6  ;;  %393 = vmatprep.subr.bf16.mxu1 %v261_v10 }
  0x9d   : > { %1271 = vmatpush1.bf16.msk.msra.mxu1 %vm1603_vm9, %v256_v8  ;;  %v839_v11 = vpop.permute.xlu1 %838  ;;  %817 = vmatprep.mubr.bf16.mxu0 %v1463_v4 }
  0x9e   : > { %v837_v12 = vpop.permute.xlu0 %836  ;;  %1322 = vmatprep.subr.msk.bf16.mxu0 %vm844_vm10, %v839_v11  ;;  %423 = vmatprep.mubr.bf16.mxu1 %v1463_v4 }
  0x9f   : > { %v845_v14 = vsel %vm844_vm10, %v837_v12, %v839_v11 }
  0xa0   : > { %878 = vmatpush1.bf16.msra.mxu0 %v845_v14 }
  0xa1   : > { %v451_v17 = vpop.permute.xlu1 %450 }
  0xa2   : > { %v449_v20 = vpop.permute.xlu0 %448 }
  0xa3   : > { %1315 = vmatmul.mubr.msk.bf16.gmra.mrb[4].mxu0 %vm315_vm4, %v1441_v15  ;;  %v457_v22 = vsel %vm456_vm11, %v449_v20, %v451_v17 }
  0xa4   : > { %1272 = vmatmul.mubr.msk.bf16.vlgmr.msra.gmra.mrb[0].mxu1 %vm315_vm4, %v1442_v16  ;;  %489 = vmatprep.subr.bf16.mxu1 %v457_v22 }
  0xa5   : > { %1281 = vmatpush1.bf16.msk.msra.mxu1 %vm1636_vm12, %v449_v20  ;;  %v843_v23 = vpop.permute.xlu1 %842  ;;  %909 = vmatprep.mubr.bf16.mxu0 %v1463_v4 }
  0xa6   : > { %v841_v24 = vpop.permute.xlu0 %840  ;;  %1323 = vmatprep.subr.msk.bf16.mxu0 %vm844_vm10, %v843_v23  ;;  %433 = vmatprep.mubr.bf16.mxu1 %v1463_v4 }
  0xa7   : > { %v846_v25 = vsel %vm844_vm10, %v841_v24, %v843_v23 }
  0xa8   : > { %880 = vmatpush1.bf16.msra.mxu0 %v846_v25 }
  0xa9   : > { %v455_v28 = vpop.permute.xlu1 %454 }
  0xaa   : > { %v453_v29 = vpop.permute.xlu0 %452 }
  0xab   : > { %1324 = vmatmul.mubr.msk.bf16.vlgmr.msra.gmra.mrb[0].mxu0 %vm315_vm4, %v1443_v26  ;;  %v458_v30 = vsel %vm456_vm11, %v453_v29, %v455_v28 }
  0xac   : > { %1273 = vmatmul.mubr.msk.bf16.gmra.mrb[4].mxu1 %vm315_vm4, %v1444_v27  ;;  %491 = vmatprep.subr.bf16.mxu1 %v458_v30 }
  0xad   : > { %1283 = vmatpush1.bf16.msk.msra.mxu1 %vm1636_vm12, %v453_v29  ;;  %v941_v31 = vpop.permute.xlu1 %940  ;;  %919 = vmatprep.mubr.bf16.mxu0 %v1463_v4 }
  0xae   : > { %v939_v32 = vpop.permute.xlu0 %938  ;;  %1332 = vmatprep.subr.msk.bf16.mxu0 %vm946_vm13, %v941_v31  ;;  %521 = vmatprep.mubr.bf16.mxu1 %v1463_v4 }
  0xaf   : > { %v947_v33 = vsel %vm946_vm13, %v939_v32, %v941_v31 }
  0xb0   : > { %980 = vmatpush1.bf16.msra.mxu0 %v947_v33 }
  0xb1   : > { %v553_v36 = vpop.permute.xlu1 %552 }
  0xb2   : > { %v551_v37 = vpop.permute.xlu0 %550 }
  0xb3   : > { %1325 = vmatmul.mubr.msk.bf16.gmra.mrb[4].mxu0 %vm315_vm4, %v1445_v34  ;;  %v559_v39 = vsel %vm558_vm14, %v551_v37, %v553_v36 }
  0xb4   : > { %1284 = vmatmul.mubr.msk.bf16.vlgmr.msra.gmra.mrb[0].mxu1 %vm315_vm4, %v1446_v35  ;;  %591 = vmatprep.subr.bf16.mxu1 %v559_v39 }
  0xb5   : > { %1293 = vmatpush1.bf16.msk.msra.mxu1 %vm1671_vm15, %v551_v37  ;;  %v945_v40 = vpop.permute.xlu1 %944  ;;  %1011 = vmatprep.mubr.bf16.mxu0 %v1463_v4 }
  0xb6   : > { %v943_v41 = vpop.permute.xlu0 %942  ;;  %1333 = vmatprep.subr.msk.bf16.mxu0 %vm946_vm13, %v945_v40  ;;  %531 = vmatprep.mubr.bf16.mxu1 %v1463_v4 }
  0xb7   : > { %v948_v42 = vsel %vm946_vm13, %v943_v41, %v945_v40 }
  0xb8   : > { %982 = vmatpush1.bf16.msra.mxu0 %v948_v42 }
  0xb9   : > { %v557_v45 = vpop.permute.xlu1 %556 }
  0xba   : > { %v555_v46 = vpop.permute.xlu0 %554 }
  0xbb   : > { %1334 = vmatmul.mubr.msk.bf16.vlgmr.msra.gmra.mrb[0].mxu0 %vm315_vm4, %v1447_v43  ;;  %v560_v47 = vsel %vm558_vm14, %v555_v46, %v557_v45 }
  0xbc   : > { %1285 = vmatmul.mubr.msk.bf16.gmra.mrb[4].mxu1 %vm315_vm4, %v1448_v44  ;;  %593 = vmatprep.subr.bf16.mxu1 %v560_v47 }
  0xbd   : > { %1295 = vmatpush1.bf16.msk.msra.mxu1 %vm1671_vm15, %v555_v46  ;;  %v1043_v48 = vpop.permute.xlu1 %1042  ;;  %1021 = vmatprep.mubr.bf16.mxu0 %v1463_v4 }
  0xbe   : > { %v1041_v49 = vpop.permute.xlu0 %1040  ;;  %1342 = vmatprep.subr.msk.bf16.mxu0 %vm1048_vm0, %v1043_v48  ;;  %623 = vmatprep.mubr.bf16.mxu1 %v1463_v4 }
  0xbf   : > { %v1049_v50 = vsel %vm1048_vm0, %v1041_v49, %v1043_v48  ;;  %1350 = vmatprep.subr.bf16.mxu1 %v1527_v19  ;;  %v1451_v19 = vld [vmem:[%s1752_s1 + $0x80] sm:$0xff]  }
  0xc0   : > { %1082 = vmatpush1.bf16.msra.mxu0 %v1049_v50 }
  0xc1   : > { %v1047_v53 = vpop.permute.xlu1 %1046 }
  0xc2   : > { %v1045_v54 = vpop.permute.xlu0 %1044  ;;  %1343 = vmatprep.subr.msk.bf16.mxu0 %vm1048_vm0, %v1047_v53 }
  0xc3   : > { %1335 = vmatmul.mubr.msk.bf16.gmra.mrb[4].mxu0 %vm315_vm4, %v1449_v51  ;;  %v1050_v55 = vsel %vm1048_vm0, %v1045_v54, %v1047_v53 }
  0xc4   : > { %1296 = vmatmul.mubr.msk.bf16.vlgmr.msra.gmra.mrb[0].mxu1 %vm315_vm4, %v1450_v52  ;;  %1084 = vmatpush1.bf16.msra.mxu0 %v1050_v55 }
  0xc5   : > { %1352 = vmatpush1.bf16.msra.mxu1 %v1514_v13  ;;  %1113 = vmatprep.mubr.bf16.mxu0 %v1463_v4  ;;  %v1453_v13 = vld [vmem:[%s1752_s1 + $0x88] sm:$0xff]  }
  0xc6   : > { %633 = vmatprep.mubr.bf16.mxu1 %v1463_v4  ;;  %1351 = vmatprep.subr.bf16.mxu1 %v1525_v18  ;;  %v1454_v18 = vld [vmem:[%s1752_s1 + $0x48] sm:$0xff]  }
  0xc9   : > { %1353 = vmatpush1.bf16.msra.mxu1 %v1512_v9 }
  0xcb   : > { %1344 = vmatmul.mubr.msk.bf16.vlgmr.msra.gmra.mrb[0].mxu0 %vm315_vm4, %v1451_v19 }
  0xcc   : > { %1297 = vmatmul.mubr.msk.bf16.gmra.mrb[4].mxu1 %vm315_vm4, %v1452_v56  ;;  %1123 = vmatprep.mubr.bf16.mxu0 %v1463_v4 }
  0xcd   : > { %715 = vmatprep.mubr.bf16.mxu1 %v1463_v4 }
  0xd2   : > { %v1154_v1 = vpop.permute.xlu1 %1153 }
  0xd3   : > { %1345 = vmatmul.mubr.msk.bf16.gmra.mrb[4].mxu0 %vm315_vm4, %v1453_v13  ;;  %v1149_v61 = vpop.permute.xlu0 %1148 }
  0xd6   : > { %v1159_v23 = vpop.permute.xlu1 %1158 }
  0xd7   : > { %v1164_v32 = vpop.permute.xlu0 %1163 }
  0xd8   : > { %1305 = vmatmul.mubr.msk.bf16.vlgmr.msra.gmra.mrb[4].mxu1 %vm315_vm4, %v1454_v18 }
 0x197   : > { %v625_v9 = vpop.f32.mrb[0].mxu1 }
 0x198   : > { %v627_v57 = vpop.f32.mrb[1].mxu1 }
 0x199   : > { %v629_v58 = vpop.f32.mrb[2].mxu1 }
 0x19a   : > { %v631_v59 = vpop.f32.mrb[3].mxu1 }
 0x19e   : > { %v1115_v60 = vpop.f32.mrb[0].mxu0 }
 0x19f   : > { %v1354_v4 = vadd.f32 %v1115_v60, %v625_v9  ;;  %v1117_v62 = vpop.f32.mrb[1].mxu0 }
 0x1a0   : > { %v1355_v63 = vadd.f32 %v1117_v62, %v627_v57  ;;  %v1119_v0 = vpop.f32.mrb[2].mxu0 }
 0x1a1   : > { %v1356_v2 = vadd.f32 %v1119_v0, %v629_v58  ;;  %v1166_v3 = vadd.f32 %v1354_v4, %v1149_v61  ;;  %v1121_v5 = vpop.f32.mrb[3].mxu0 }
 0x1a2   : > { %v1167_v6 = vadd.f32 %v1355_v63, %v1149_v61  ;;  %v1357_v7 = vadd.f32 %v1121_v5, %v631_v59 }
 0x1a3   : > { %v1174_v8 = vmax.f32 %v1166_v3, 0.0  ;;  %v1168_v10 = vadd.f32 %v1356_v2, %v1154_v1 }
 0x1a4   : > { %v1175_v11 = vmax.f32 %v1167_v6, 0.0  ;;  %v1169_v12 = vadd.f32 %v1357_v7, %v1154_v1 }
 0x1a5   : > { %1182 = vst [vmem:[%s1738_s24] sm:$0xff] %v1174_v8  ;;  %v1176_v14 = vmax.f32 %v1168_v10, 0.0 }
 0x1a6   : > { %1183 = vst [vmem:[%s1738_s24 + $0x8] sm:$0xff] %v1175_v11  ;;  %v1177_v15 = vmax.f32 %v1169_v12, 0.0  ;;  %v1125_v16 = vpop.f32.mrb[4].mxu0 }
 0x1a7   : > { %1184 = vst [vmem:[%s1738_s24 + $0x10] sm:$0xff] %v1176_v14  ;;  %v1127_v17 = vpop.f32.mrb[5].mxu0 }
 0x1a8   : > { %1185 = vst [vmem:[%s1738_s24 + $0x18] sm:$0xff] %v1177_v15  ;;  %v1129_v20 = vpop.f32.mrb[6].mxu0 }
 0x1a9   : > { %v1131_v21 = vpop.f32.mrb[7].mxu0 }
 0x1ab   : > { %v717_v22 = vpop.f32.mrb[4].mxu1 }
 0x1ac   : > { %v1358_v24 = vadd.f32 %v1125_v16, %v717_v22  ;;  %v719_v25 = vpop.f32.mrb[5].mxu1 }
 0x1ad   : > { %v1359_v26 = vadd.f32 %v1127_v17, %v719_v25  ;;  %v721_v27 = vpop.f32.mrb[6].mxu1 }
 0x1ae   : > { %v1170_v28 = vadd.f32 %v1358_v24, %v1159_v23  ;;  %v1360_v29 = vadd.f32 %v1129_v20, %v721_v27  ;;  %v723_v30 = vpop.f32.mrb[7].mxu1 }
 0x1af   : > { %v1171_v31 = vadd.f32 %v1359_v26, %v1159_v23  ;;  %v1361_v33 = vadd.f32 %v1131_v21, %v723_v30 }
 0x1b0   : > { %v1178_v34 = vmax.f32 %v1170_v28, 0.0  ;;  %v1172_v35 = vadd.f32 %v1360_v29, %v1164_v32 }
 0x1b1   : > { %v1179_v36 = vmax.f32 %v1171_v31, 0.0  ;;  %v1173_v37 = vadd.f32 %v1361_v33, %v1164_v32 }
 0x1b2   : > { %1186 = vst [vmem:[%s1738_s24 + $0x20] sm:$0xff] %v1178_v34  ;;  %v1180_v38 = vmax.f32 %v1172_v35, 0.0 }
 0x1b3   : > { %1187 = vst [vmem:[%s1738_s24 + $0x28] sm:$0xff] %v1179_v36  ;;  %v1181_v39 = vmax.f32 %v1173_v37, 0.0 }
 0x1b4   : > { %1188 = vst [vmem:[%s1738_s24 + $0x30] sm:$0xff] %v1180_v38 }
 0x1b5   : > { %1189 = vst [vmem:[%s1738_s24 + $0x38] sm:$0xff] %v1181_v39 }
 0x1b6 PF: > { %s13_s12 = sadd.s32 1, %s1461_s12  }
 0x1b7   : > { %p10_p4 = scmp.ge.s32.totalorder %s13_s12, 4  }
 0x1b9   :  { %12 = sbr.rel (!%p10_p4) target bundleno = 1 (0x1), region = 70 }

// kernel: tirg_spade_forward.16
= control target key start
LH: loop header
LB: loop body
LE: loop exit
PB: predicated region body
PF: predicated region fallthrough
CT: control target
= control target key end

     0   :  { %s1022_s12 = smov 0   ;;  %s1201_s0 = inlined_call_operand.vmem [shape: f32[2,32,256], index: 0, kind: input, shape index: {}]   ;;  %s1202_s1 = inlined_call_operand.vmem [shape: bf16[9,8,32], index: 1, kind: input, shape index: {}]   ;;  %s1203_s2 = inlined_call_operand.vmem [shape: f32[8,1], index: 2, kind: input, shape index: {}]   ;;  %s1204_s3 = inlined_call_operand.vmem [shape: f32[2,8,256], index: 3, kind: output, shape index: {}]  }
   0x1 LB: > { %s913_s13 = sadd.s32 4294967295, %s991_s12   ;;  %p917_p0 = scmp.ge.s32.totalorder %s991_s12, 1  ;;  %s991_s12 = sphi %s1022_s12, %s13_s12  }
   0x2   : > { %p137_p1 = scmp.lt.s32.totalorder %s991_s12, 3 }
   0x4   : > { %p138_p2 = pnand %p917_p0, %p137_p1 }
   0x5   : > { %p161_p3 = scmp.lt.s32.totalorder (!%p138_p2), %s913_s13, 1  ;;  %v180_v0 = vlaneseq (!%p138_p2)  ;;  %s993_s18 = smov (!%p138_p2), 16   ;;  %v994_v31 = vmov (!%p138_p2), 0   ;;  %v848_v46 = vld [vmem:[%s1203_s2] sm:$0xff] (!%p138_p2)  ;;  %vm285_vm4 = vcmask (!%p138_p2), 130048   ;;  %vm259_vm6 = vcmask (!%p138_p2), 138240  }
   0x6   : > { %141 = sbr.rel (%p138_p2) target bundleno = 417 (0x1a1), region = 32  ;;  %335 = vmatprep.mubr.bf16.mxu0 (!%p138_p2), %v994_v31  ;;  %379 = vmatprep.mubr.bf16.mxu1 (!%p138_p2), %v994_v31  ;;  %s995_s19 = smov (!%p138_p2), 17   ;;  %vm923_vm5 = vmneg (!%p138_p2), %vm285_vm4  ;;  %vm400_vm8 = vcmask (!%p138_p2), 121856   ;;  %v922_v58 = vld [vmem:[%s1202_s1 + $0x4] sm:$0xf] (!%p138_p2)  ;;  %vm299_vm9 = vcmask (!%p138_p2), 261120  }
   0x7   : > { %v181_v1 = vand.u32 (!%p138_p2), 127, %v180_v0  ;;  %984 = vset.pattern.permute.xlu0 (!%p138_p2), %v994_v31  ;;  %s996_s20 = smov (!%p138_p2), 15   ;;  %s997_s21 = smov (!%p138_p2), 1   ;;  %vm1107_vm7 = vmneg (!%p138_p2), %vm259_vm6  ;;  %vm468_vm11 = vcmask (!%p138_p2), 7168   ;;  %vm584_vm13 = vcmask (!%p138_p2), 1039360   ;;  %vm652_vm14 = vcmask (!%p138_p2), 924672  }
   0x8   : > { %s998_s22 = smov (!%p138_p2), 127   ;;  %s999_s23 = smov (!%p138_p2), 113   ;;  %vm1118_vm10 = vmneg (!%p138_p2), %vm400_vm8  ;;  %v939_v15 = vld [vmem:[%s1202_s1 + $0xc] sm:$0xf] (!%p138_p2)  ;;  %v947_v23 = vld [vmem:[%s1202_s1 + $0x14] sm:$0xf] (!%p138_p2) }
   0x9   : > { %v182_v2 = vadd.s32 (!%p138_p2), 128, %v181_v1  ;;  %v187_v3 = vand.u32 (!%p138_p2), 15, %v181_v1  ;;  %s1000_s24 = smov (!%p138_p2), 112   ;;  %s1001_s25 = smov (!%p138_p2), 111   ;;  %vm940_vm12 = vmneg (!%p138_p2), %vm468_vm11  ;;  %vm720_vm15 = vcmask (!%p138_p2), 916480  }
   0xb   : > { %v194_v7 = vand.u32 (!%p138_p2), 15, %v182_v2  ;;  %vm1044_vm1 = vcmp.ne.s32.totalorder (!%p138_p2), %v187_v3, 15  ;;  %vm1066_vm3 = vcmp.ne.s32.totalorder (!%p138_p2), %v187_v3, 0  ;;  %v272_v2 = vld [vmem:[%s1202_s1] sm:$0xf] (!%p138_p2) }
   0xd   : > { %s1218_s13 = smov (!%p161_p3, %s913_s13), 1  ;;  %vm1040_vm0 = vcmp.ne.s32.totalorder %v194_v7, 15  ;;  %vm1062_vm2 = vcmp.ne.s32.totalorder %v194_v7, 0 }
   0xe   : > { %s965_s14 = sshll.u32 %s1218_s13, 6 }
   0xf   : > { %s165_s17 = scalar_lea.vmem %s1201_s0, %s965_s14 }
  0x10   : > { %v176_v4 = vld [vmem:[%s165_s17 + $0x20] sm:$0xff]  ;;  %v178_v5 = vld [vmem:[%s165_s17 + $0x30] sm:$0xff]  ;;  %v177_v10 = vld [vmem:[%s165_s17 + $0x28] sm:$0xff] }
  0x11   : > { %v172_v6 = vld [vmem:[%s165_s17] sm:$0xff]  ;;  %v1036_v8 = vpack.c.bf16 %v178_v5, %v176_v4  ;;  %v174_v9 = vld [vmem:[%s165_s17 + $0x10] sm:$0xff]  ;;  %v179_v11 = vld [vmem:[%s165_s17 + $0x38] sm:$0xff]  ;;  %v218_v34 = vsel %vm1040_vm0, %v177_v10, 0.0  ;;  %v217_v36 = vsel %vm1044_vm1, %v176_v4, 0.0  ;;  %v219_v37 = vsel %vm1044_vm1, %v178_v5, 0.0 }
  0x12   : > { %v1038_v12 = vpack.c.bf16 %v174_v9, %v172_v6  ;;  %v173_v13 = vld [vmem:[%s165_s17 + $0x8] sm:$0xff]  ;;  %v175_v14 = vld [vmem:[%s165_s17 + $0x18] sm:$0xff]  ;;  %v1049_v17 = vpack.c.bf16 %v179_v11, %v177_v10  ;;  %v213_v21 = vsel %vm1044_vm1, %v172_v6, 0.0  ;;  %v215_v22 = vsel %vm1044_vm1, %v174_v9, 0.0 }
  0x13   : > { %281 = vrot.lane.b32.xlu1 %v1036_v8, %s993_s18  ;;  %v1052_v18 = vpack.c.bf16 %v175_v14, %v173_v13  ;;  %v214_v19 = vsel %vm1040_vm0, %v173_v13, 0.0  ;;  %v216_v20 = vsel %vm1040_vm0, %v175_v14, 0.0  ;;  %v221_v26 = vpack.c.bf16 %v215_v22, %v213_v21 }
  0x14   : > { %277 = vrot.lane.b32.xlu0 %v1038_v12, %s993_s18  ;;  %v222_v25 = vpack.c.bf16 %v216_v20, %v214_v19  ;;  %v236_v27 = vsel %vm1062_vm2, %v173_v13, 0.0  ;;  %v238_v28 = vsel %vm1062_vm2, %v175_v14, 0.0  ;;  %v235_v29 = vsel %vm1066_vm3, %v172_v6, 0.0  ;;  %v933_v6 = vld [vmem:[%s1202_s1 + $0x8] sm:$0xf] }
  0x15   : > { %v237_v30 = vsel %vm1066_vm3, %v174_v9, 0.0  ;;  %v244_v32 = vpack.c.bf16 %v238_v28, %v236_v27  ;;  %v220_v35 = vsel %vm1040_vm0, %v179_v11, 0.0  ;;  %v223_v39 = vpack.c.bf16 %v219_v37, %v217_v36  ;;  %v951_v27 = vld [vmem:[%s1202_s1 + $0x18] sm:$0xf] }
  0x16   : > { %v243_v33 = vpack.c.bf16 %v237_v30, %v235_v29  ;;  %v224_v38 = vpack.c.bf16 %v220_v35, %v218_v34  ;;  %v240_v40 = vsel %vm1062_vm2, %v177_v10, 0.0  ;;  %v242_v41 = vsel %vm1062_vm2, %v179_v11, 0.0 }
  0x17   : > { %283 = vrot.lane.b32.xlu1 %v1049_v17, %s993_s18  ;;  %v239_v42 = vsel %vm1066_vm3, %v176_v4, 0.0  ;;  %v241_v43 = vsel %vm1066_vm3, %v178_v5, 0.0  ;;  %v246_v44 = vpack.c.bf16 %v242_v41, %v240_v40  ;;  %vm788_vm0 = vcmask 908288   ;;  %v959_v41 = vld [vmem:[%s1202_s1 + $0x20] sm:$0xf] }
  0x18   : > { %279 = vrot.lane.b32.xlu0 %v1052_v18, %s993_s18  ;;  %v245_v45 = vpack.c.bf16 %v241_v43, %v239_v42 }
  0x1b   : > { %253 = vrot.lane.b32.xlu1 %v222_v25, %s995_s19 }
  0x1c   : > { %251 = vrot.lane.b32.xlu0 %v221_v26, %s995_s19 }
  0x1f   : > { %394 = vrot.lane.b32.xlu1 %v244_v32, %s996_s20 }
  0x20   : > { %392 = vrot.lane.b32.xlu0 %v243_v33, %s996_s20 }
  0x23   : > { %257 = vrot.lane.b32.xlu1 %v224_v38, %s995_s19 }
  0x24   : > { %255 = vrot.lane.b32.xlu0 %v223_v39, %s995_s19 }
  0x27   : > { %398 = vrot.lane.b32.xlu1 %v246_v44, %s996_s20 }
  0x28   : > { %396 = vrot.lane.b32.xlu0 %v245_v45, %s996_s20 }
  0x2b   : > { %462 = vrot.lane.b32.xlu1 %v222_v25, %s997_s21 }
  0x2c   : > { %460 = vrot.lane.b32.xlu0 %v221_v26, %s997_s21 }
  0x2f   : > { %466 = vrot.lane.b32.xlu1 %v224_v38, %s997_s21 }
  0x30   : > { %464 = vrot.lane.b32.xlu0 %v223_v39, %s997_s21  ;;  %s966_s21 = sshll.u32 %s1218_s13, 4 }
  0x33   : > { %578 = vrot.lane.b32.xlu1 %v244_v32, %s998_s22 }
  0x34   : > { %576 = vrot.lane.b32.xlu0 %v243_v33, %s998_s22 }
  0x37   : > { %646 = vrot.lane.b32.xlu1 %v222_v25, %s999_s23 }
  0x38   : > { %644 = vrot.lane.b32.xlu0 %v221_v26, %s999_s23 }
  0x3b   : > { %582 = vrot.lane.b32.xlu1 %v246_v44, %s998_s22 }
  0x3c   : > { %580 = vrot.lane.b32.xlu0 %v245_v45, %s998_s22 }
  0x3f   : > { %650 = vrot.lane.b32.xlu1 %v224_v38, %s999_s23  ;;  %v955_v38 = vld [vmem:[%s1202_s1 + $0x1c] sm:$0xf] }
  0x40   : > { %648 = vrot.lane.b32.xlu0 %v223_v39, %s999_s23 }
  0x43   : > { %714 = vrot.lane.b32.xlu1 %v1052_v18, %s1000_s24 }
  0x44   : > { %712 = vrot.lane.b32.xlu0 %v1038_v12, %s1000_s24 }
  0x47   : > { %782 = vrot.lane.b32.xlu1 %v244_v32, %s1001_s25 }
  0x48   : > { %780 = vrot.lane.b32.xlu0 %v243_v33, %s1001_s25 }
  0x4b   : > { %718 = vrot.lane.b32.xlu1 %v1049_v17, %s1000_s24 }
  0x4c   : > { %716 = vrot.lane.b32.xlu0 %v1036_v8, %s1000_s24  ;;  %s170_s24 = scalar_lea.vmem %s1204_s3, %s966_s21 }
  0x4f   : > { %786 = vrot.lane.b32.xlu1 %v246_v44, %s1001_s25 }
  0x50   : > { %784 = vrot.lane.b32.xlu0 %v245_v45, %s1001_s25 }
  0x54   : > { %851 = vperm.xlu0 %984, %v848_v46  }
  0x85   : > { %v282_v47 = vpop.permute.xlu1 %281 }
  0x86   : > { %v278_v48 = vpop.permute.xlu0 %277 }
  0x89   : > { %v284_v49 = vpop.permute.xlu1 %283 }
  0x8a   : > { %v280_v50 = vpop.permute.xlu0 %279  ;;  %v287_v53 = vsel %vm285_vm4, %v282_v47, %v284_v49 }
  0x8b   : > { %v286_v51 = vsel %vm285_vm4, %v278_v48, %v280_v50 }
  0x8c   : > { %303 = vmatprep.subr.bf16.mxu0 %v286_v51 }
  0x8d   : > { %924 = vmatpush1.bf16.msk.msra.mxu0 %vm923_vm5, %v278_v48  ;;  %v254_v52 = vpop.permute.xlu1 %253 }
  0x8e   : > { %305 = vmatprep.subr.bf16.mxu0 %v287_v53  ;;  %v252_v54 = vpop.permute.xlu0 %251 }
  0x8f   : > { %v260_v56 = vsel %vm259_vm6, %v252_v54, %v254_v52 }
  0x90   : > { %347 = vmatprep.subr.bf16.mxu1 %v260_v56 }
  0x91   : > { %926 = vmatpush1.bf16.msk.msra.mxu0 %vm923_vm5, %v282_v47  ;;  %929 = vmatpush1.bf16.msk.msra.mxu1 %vm1107_vm7, %v252_v54  ;;  %v395_v57 = vpop.permute.xlu1 %394 }
  0x92   : > { %v393_v59 = vpop.permute.xlu0 %392 }
  0x93   : > { %v401_v61 = vsel %vm400_vm8, %v393_v59, %v395_v57 }
  0x94   : > { %417 = vmatprep.subr.bf16.mxu0 %v401_v61  ;;  %927 = vmatmul.mubr.msk.bf16.vlgmr.msra.gmra.mrb[0].mxu0 %vm299_vm9, %v922_v58 }
  0x95   : > { %935 = vmatpush1.bf16.msk.msra.mxu0 %vm1118_vm10, %v393_v59  ;;  %v258_v62 = vpop.permute.xlu1 %257  ;;  %449 = vmatprep.mubr.bf16.mxu0 %v994_v31 }
  0x96   : > { %v256_v63 = vpop.permute.xlu0 %255 }
  0x97   : > { %v261_v0 = vsel %vm259_vm6, %v256_v63, %v258_v62 }
  0x98   : > { %349 = vmatprep.subr.bf16.mxu1 %v261_v0 }
  0x99   : > { %931 = vmatpush1.bf16.msk.msra.mxu1 %vm1107_vm7, %v256_v63  ;;  %v399_v1 = vpop.permute.xlu1 %398 }
  0x9a   : > { %v397_v3 = vpop.permute.xlu0 %396 }
  0x9b   : > { %v402_v4 = vsel %vm400_vm8, %v397_v3, %v399_v1 }
  0x9c   : > { %419 = vmatprep.subr.bf16.mxu0 %v402_v4  ;;  %932 = vmatmul.mubr.msk.bf16.vlgmr.msra.gmra.mrb[0].mxu1 %vm299_vm9, %v272_v2 }
  0x9d   : > { %937 = vmatpush1.bf16.msk.msra.mxu0 %vm1118_vm10, %v397_v3  ;;  %v463_v5 = vpop.permute.xlu1 %462  ;;  %517 = vmatprep.mubr.bf16.mxu1 %v994_v31 }
  0x9e   : > { %v461_v7 = vpop.permute.xlu0 %460  ;;  %533 = vmatprep.subr.bf16.mxu0 %v1052_v18 }
  0x9f   : > { %v469_v9 = vsel %vm468_vm11, %v461_v7, %v463_v5 }
  0xa0   : > { %485 = vmatprep.subr.bf16.mxu1 %v469_v9  ;;  %938 = vmatmul.mubr.msk.bf16.vlgmr.msra.gmra.mrb[4].mxu0 %vm299_vm9, %v933_v6 }
  0xa1   : > { %941 = vmatpush1.bf16.msk.msra.mxu1 %vm940_vm12, %v461_v7  ;;  %v467_v10 = vpop.permute.xlu1 %466  ;;  %534 = vmatpush1.bf16.msra.mxu0 %v1038_v12  ;;  %v945_v12 = vld [vmem:[%s1202_s1 + $0x10] sm:$0xf] }
  0xa2   : > { %v465_v11 = vpop.permute.xlu0 %464  ;;  %535 = vmatprep.subr.bf16.mxu0 %v1049_v17  ;;  %565 = vmatprep.mubr.bf16.mxu0 %v994_v31 }
  0xa3   : > { %v470_v13 = vsel %vm468_vm11, %v465_v11, %v467_v10 }
  0xa4   : > { %487 = vmatprep.subr.bf16.mxu1 %v470_v13 }
  0xa5   : > { %943 = vmatpush1.bf16.msk.msra.mxu1 %vm940_vm12, %v465_v11  ;;  %v579_v14 = vpop.permute.xlu1 %578  ;;  %536 = vmatpush1.bf16.msra.mxu0 %v1036_v8 }
  0xa6   : > { %v577_v16 = vpop.permute.xlu0 %576  ;;  %948 = vmatprep.subr.msk.bf16.mxu1 %vm584_vm13, %v579_v14 }
  0xa7   : > { %v585_v17 = vsel %vm584_vm13, %v577_v16, %v579_v14 }
  0xa8   : > { %944 = vmatmul.mubr.msk.bf16.vlgmr.msra.gmra.mrb[4].mxu1 %vm299_vm9, %v939_v15  ;;  %946 = vmatmul.mubr.msk.bf16.vlgmr.msra.gmra.mrb[8].mxu0 %vm299_vm9, %v945_v12 }
  0xa9   : > { %602 = vmatpush1.bf16.msra.mxu1 %v585_v17  ;;  %v647_v8 = vpop.permute.xlu1 %646  ;;  %633 = vmatprep.mubr.bf16.mxu1 %v994_v31 }
  0xaa   : > { %v645_v18 = vpop.permute.xlu0 %644  ;;  %952 = vmatprep.subr.msk.bf16.mxu0 %vm652_vm14, %v647_v8  ;;  %701 = vmatprep.mubr.bf16.mxu0 %v994_v31 }
  0xab   : > { %v653_v19 = vsel %vm652_vm14, %v645_v18, %v647_v8 }
  0xac   : > { %670 = vmatpush1.bf16.msra.mxu0 %v653_v19 }
  0xad   : > { %v583_v20 = vpop.permute.xlu1 %582 }
  0xae   : > { %v581_v21 = vpop.permute.xlu0 %580  ;;  %949 = vmatprep.subr.msk.bf16.mxu1 %vm584_vm13, %v583_v20 }
  0xaf   : > { %v586_v22 = vsel %vm584_vm13, %v581_v21, %v583_v20 }
  0xb0   : > { %604 = vmatpush1.bf16.msra.mxu1 %v586_v22 }
  0xb1   : > { %v651_v24 = vpop.permute.xlu1 %650 }
  0xb2   : > { %v649_v25 = vpop.permute.xlu0 %648  ;;  %953 = vmatprep.subr.msk.bf16.mxu0 %vm652_vm14, %v651_v24 }
  0xb3   : > { %v654_v26 = vsel %vm652_vm14, %v649_v25, %v651_v24  ;;  %950 = vmatmul.mubr.msk.bf16.vlgmr.msra.gmra.mrb[8].mxu1 %vm299_vm9, %v947_v23 }
  0xb4   : > { %672 = vmatpush1.bf16.msra.mxu0 %v654_v26  ;;  %769 = vmatprep.mubr.bf16.mxu1 %v994_v31 }
  0xb5   : > { %v715_v28 = vpop.permute.xlu1 %714 }
  0xb6   : > { %v713_v29 = vpop.permute.xlu0 %712  ;;  %956 = vmatprep.subr.msk.bf16.mxu1 %vm720_vm15, %v715_v28 }
  0xb7   : > { %v721_v30 = vsel %vm720_vm15, %v713_v29, %v715_v28  ;;  %954 = vmatmul.mubr.msk.bf16.vlgmr.msra.gmra.mrb[12].mxu0 %vm299_vm9, %v951_v27 }
  0xb8   : > { %738 = vmatpush1.bf16.msra.mxu1 %v721_v30  ;;  %837 = vmatprep.mubr.bf16.mxu0 %v994_v31 }
  0xb9   : > { %v783_v32 = vpop.permute.xlu1 %782 }
  0xba   : > { %v781_v33 = vpop.permute.xlu0 %780  ;;  %960 = vmatprep.subr.msk.bf16.mxu0 %vm788_vm0, %v783_v32 }
  0xbb   : > { %v789_v34 = vsel %vm788_vm0, %v781_v33, %v783_v32 }
  0xbc   : > { %806 = vmatpush1.bf16.msra.mxu0 %v789_v34 }
  0xbd   : > { %v719_v35 = vpop.permute.xlu1 %718 }
  0xbe   : > { %v717_v36 = vpop.permute.xlu0 %716  ;;  %957 = vmatprep.subr.msk.bf16.mxu1 %vm720_vm15, %v719_v35 }
  0xbf   : > { %v722_v37 = vsel %vm720_vm15, %v717_v36, %v719_v35 }
  0xc0   : > { %740 = vmatpush1.bf16.msra.mxu1 %v722_v37 }
  0xc1   : > { %v787_v39 = vpop.permute.xlu1 %786 }
  0xc2   : > { %v785_v31 = vpop.permute.xlu0 %784  ;;  %961 = vmatprep.subr.msk.bf16.mxu0 %vm788_vm0, %v787_v39 }
  0xc3   : > { %v790_v40 = vsel %vm788_vm0, %v785_v31, %v787_v39  ;;  %958 = vmatmul.mubr.msk.bf16.vlgmr.msra.gmra.mrb[12].mxu1 %vm299_vm9, %v955_v38 }
  0xc4   : > { %808 = vmatpush1.bf16.msra.mxu0 %v790_v40 }
  0xc7   : > { %962 = vmatmul.mubr.msk.bf16.vlgmr.msra.gmra.mrb[16].mxu0 %vm299_vm9, %v959_v41 }
  0xd3   : > { %v852_v25 = vpop.permute.xlu0 %851 }
 0x167   : > { %v337_v42 = vpop.f32.mrb[0].mxu0 }
 0x168   : > { %v339_v43 = vpop.f32.mrb[1].mxu0 }
 0x169   : > { %v341_v44 = vpop.f32.mrb[2].mxu0 }
 0x16a   : > { %v342_v45 = vpop.f32.mrb[3].mxu0 }
 0x16f   : > { %v381_v46 = vpop.f32.mrb[0].mxu1 }
 0x170   : > { %v382_v47 = vadd.f32 %v381_v46, %v337_v42  ;;  %v383_v48 = vpop.f32.mrb[1].mxu1 }
 0x171   : > { %v384_v49 = vadd.f32 %v383_v48, %v339_v43  ;;  %v385_v50 = vpop.f32.mrb[2].mxu1 }
 0x172   : > { %v386_v51 = vpop.f32.mrb[3].mxu1 }
 0x173   : > { %v451_v52 = vpop.f32.mrb[4].mxu0 }
 0x174   : > { %v458_v53 = vadd.f32 %v451_v52, %v382_v47  ;;  %v453_v54 = vpop.f32.mrb[5].mxu0 }
 0x175   : > { %v459_v55 = vadd.f32 %v453_v54, %v384_v49  ;;  %v455_v56 = vpop.f32.mrb[6].mxu0 }
 0x176   : > { %v456_v57 = vpop.f32.mrb[7].mxu0 }
 0x17b   : > { %v519_v58 = vpop.f32.mrb[4].mxu1  ;;  %v567_v59 = vpop.f32.mrb[8].mxu0 }
 0x17c   : > { %v526_v60 = vadd.f32 %v519_v58, %v458_v53  ;;  %v521_v61 = vpop.f32.mrb[5].mxu1  ;;  %v569_v62 = vpop.f32.mrb[9].mxu0 }
 0x17d   : > { %v527_v63 = vadd.f32 %v521_v61, %v459_v55  ;;  %v523_v0 = vpop.f32.mrb[6].mxu1  ;;  %v571_v1 = vpop.f32.mrb[10].mxu0 }
 0x17e   : > { %v574_v2 = vadd.f32 %v567_v59, %v526_v60  ;;  %v524_v3 = vpop.f32.mrb[7].mxu1  ;;  %v572_v4 = vpop.f32.mrb[11].mxu0 }
 0x17f   : > { %v575_v5 = vadd.f32 %v569_v62, %v527_v63 }
 0x186   : > { %v635_v6 = vpop.f32.mrb[8].mxu1 }
 0x187   : > { %v642_v7 = vadd.f32 %v635_v6, %v574_v2  ;;  %v637_v9 = vpop.f32.mrb[9].mxu1 }
 0x188   : > { %v643_v10 = vadd.f32 %v637_v9, %v575_v5  ;;  %v639_v11 = vpop.f32.mrb[10].mxu1 }
 0x189   : > { %v640_v13 = vpop.f32.mrb[11].mxu1 }
 0x18a   : > { %v703_v14 = vpop.f32.mrb[12].mxu0 }
 0x18b   : > { %v710_v15 = vadd.f32 %v703_v14, %v642_v7  ;;  %v705_v12 = vpop.f32.mrb[13].mxu0 }
 0x18c   : > { %v711_v16 = vadd.f32 %v705_v12, %v643_v10  ;;  %v707_v17 = vpop.f32.mrb[14].mxu0 }
 0x18d   : > { %v708_v8 = vpop.f32.mrb[15].mxu0 }
 0x196   : > { %v771_v18 = vpop.f32.mrb[12].mxu1 }
 0x197   : > { %v778_v19 = vadd.f32 %v771_v18, %v710_v15  ;;  %v773_v20 = vpop.f32.mrb[13].mxu1 }
 0x198   : > { %v779_v21 = vadd.f32 %v773_v20, %v711_v16  ;;  %v775_v22 = vpop.f32.mrb[14].mxu1 }
 0x199   : > { %v776_v23 = vpop.f32.mrb[15].mxu1 }
 0x19a   : > { %v839_v24 = vpop.f32.mrb[16].mxu0 }
 0x19b   : > { %v846_v26 = vadd.f32 %v839_v24, %v778_v19  ;;  %v841_v27 = vpop.f32.mrb[17].mxu0 }
 0x19c   : > { %v847_v28 = vadd.f32 %v841_v27, %v779_v21  ;;  %v843_v29 = vpop.f32.mrb[18].mxu0 }
 0x19d   : > { %v854_v30 = vadd.f32 %v852_v25, %v846_v26  ;;  %v844_v32 = vpop.f32.mrb[19].mxu0 }
 0x19e   : > { %v855_v33 = vadd.f32 %v852_v25, %v847_v28 }
 0x19f   : > { %856 = vst [vmem:[%s170_s24] sm:$0xff] %v854_v30 }
 0x1a0   : > { %857 = vst [vmem:[%s170_s24 + $0x8] sm:$0xff] %v855_v33 }
 0x1a1 PF: > { %s13_s12 = sadd.s32 1, %s991_s12  }
 0x1a2   : > { %p10_p4 = scmp.ge.s32.totalorder %s13_s12, 4  }
 0x1a4   :  { %12 = sbr.rel (!%p10_p4) target bundleno = 1 (0x1), region = 70 }

// kernel: tirg_spade_forward.17
= control target key start
LH: loop header
LB: loop body
LE: loop exit
PB: predicated region body
PF: predicated region fallthrough
CT: control target
= control target key end

     0   :  { %s1180_s24 = smov 0   ;;  %s1295_s0 = inlined_call_operand.vmem [shape: f32[4,1], index: 0, kind: input, shape index: {}]   ;;  %s1296_s1 = inlined_call_operand.vmem [shape: f32[4,1], index: 1, kind: input, shape index: {}]   ;;  %s1297_s2 = inlined_call_operand.vmem [shape: f32[2,8,256], index: 2, kind: input, shape index: {}]   ;;  %s1298_s3 = inlined_call_operand.vmem [shape: f32[2,4,256], index: 3, kind: input, shape index: {}]   ;;  %s1299_s4 = inlined_call_operand.vmem [shape: bf16[9,4,4], index: 4, kind: input, shape index: {}]   ;;  %s1300_s5 = inlined_call_operand.vmem [shape: f32[4,1], index: 5, kind: input, shape index: {}]   ;;  %s1301_s6 = inlined_call_operand.vmem [shape: f32[2,4,256], index: 6, kind: output, shape index: {0}]   ;;  %s1302_s7 = inlined_call_operand.vmem [shape: f32[4,1], index: 7, kind: output, shape index: {1}]  }
   0x1 LB: > { %s1186_s25 = sadd.s32 4294967295, %s1127_s24   ;;  %p1060_p0 = scmp.ge.s32.totalorder %s1127_s24, 1  ;;  %s1127_s24 = sphi %s1180_s24, %s18_s24  }
   0x2   : > { %p245_p1 = scmp.lt.s32.totalorder %s1127_s24, 3 }
   0x4   : > { %p246_p2 = pnand %p1060_p0, %p245_p1 }
   0x5   : > { %v299_v0 = vld [vmem:[%s1295_s0] sm:$0xf] (!%p246_p2)  ;;  %p282_p3 = scmp.lt.s32.totalorder (!%p246_p2), %s1186_s25, 1  ;;  %v1129_v1 = vmov (!%p246_p2), 0   ;;  %v1130_v3 = vmov (!%p246_p2), 839922192   ;;  %v307_v5 = vlaneseq (!%p246_p2) }
   0x6   : > { %249 = sbr.rel (%p246_p2) target bundleno = 683 (0x2ab), region = 44  ;;  %1119 = vset.pattern.permute.xlu0 (!%p246_p2), %v1129_v1  ;;  %462 = vmatprep.mubr.bf16.mxu0 (!%p246_p2), %v1129_v1  ;;  %v313_v2 = vld [vmem:[%s1296_s1] sm:$0xf] (!%p246_p2)  ;;  %v305_v4 = vunpack.c.l.s4 (!%p246_p2), %v1130_v3  ;;  %s1131_s19 = smov (!%p246_p2), 16   ;;  %vm413_vm4 = vcmask (!%p246_p2), 130048   ;;  %vm400_vm5 = vcmask (!%p246_p2), 138240  }
   0x7   : > { %302 = vperm.xlu0 (!%p246_p2), %1119, %v299_v0   ;;  %511 = vmatprep.mubr.bf16.mxu1 (!%p246_p2), %v1129_v1  ;;  %v308_v7 = vshrl.u32 (!%p246_p2), %v307_v5, 7  ;;  %v343_v16 = vand.u32 (!%p246_p2), 127, %v307_v5  ;;  %s1132_s20 = smov (!%p246_p2), 17   ;;  %s1133_s21 = smov (!%p246_p2), 15   ;;  %v948_v40 = vld [vmem:[%s1300_s5] sm:$0xf] (!%p246_p2) }
   0x8   : > { %v306_v6 = vunpack.c.0.s8 (!%p246_p2), %v305_v4  ;;  %s1134_s22 = smov (!%p246_p2), 1   ;;  %s1135_s23 = smov (!%p246_p2), 127   ;;  %vm424_vm6 = vcmask (!%p246_p2), 1041408   ;;  %v1067_v48 = vld [vmem:[%s1299_s4 + $0x2] sm:$0x3] (!%p246_p2)  ;;  %vm420_vm7 = vcmask (!%p246_p2), 31744  }
   0x9   : > { %v349_v23 = vand.u32 (!%p246_p2), 15, %v343_v16  ;;  %v344_v25 = vadd.s32 (!%p246_p2), 128, %v343_v16  ;;  %s1136_s26 = smov (!%p246_p2), 113   ;;  %s1137_s27 = smov (!%p246_p2), 112   ;;  %vm526_vm8 = vcmask (!%p246_p2), 121856   ;;  %vm588_vm9 = vcmask (!%p246_p2), 7168  }
   0xa   : > { %v309_v8 = vsub.s32 (!%p246_p2), %v306_v6, %v308_v7  ;;  %v406_v55 = vld [vmem:[%s1299_s4] sm:$0x3] (!%p246_p2)  ;;  %v1072_v61 = vld [vmem:[%s1299_s4 + $0x4] sm:$0x3] (!%p246_p2)  ;;  %vm704_vm10 = vcmask (!%p246_p2), 1039360   ;;  %vm766_vm11 = vcmask (!%p246_p2), 924672  }
   0xb   : > { %316 = vperm.xlu0 (!%p246_p2), %1119, %v313_v2   ;;  %vm369_vm0 = vcmp.ne.s32.totalorder (!%p246_p2), %v349_v23, 15  ;;  %v356_v28 = vand.u32 (!%p246_p2), 15, %v344_v25  ;;  %vm384_vm1 = vcmp.ne.s32.totalorder (!%p246_p2), %v349_v23, 0  ;;  %v1075_v3 = vld [vmem:[%s1299_s4 + $0x6] sm:$0x3] (!%p246_p2)  ;;  %vm828_vm12 = vcmask (!%p246_p2), 916480  }
   0xc   : > { %vm890_vm13 = vcmask (!%p246_p2), 908288   ;;  %p1093_p4 = scmp.ne.s32.totalorder (!%p246_p2), %s1186_s25, 0 }
   0xd   : > { %s283_s28 = scalar_select %p282_p3, %s1186_s25, 1  ;;  %vm370_vm2 = vcmp.ne.s32.totalorder %v356_v28, 15  ;;  %vm385_vm3 = vcmp.ne.s32.totalorder %v356_v28, 0 }
   0xe   : > { %vm960_vm14 = vcmask (!%p1093_p4), 3072  }
   0xf   : > { %s1098_s8 = sshll.u32 %s283_s28, 3  ;;  %s1097_s12 = sshll.u32 %s283_s28, 4 }
  0x10   : > { %s1204_s11 = scalar_lea.vmem %s1301_s6, %s1098_s8  ;;  %s286_s15 = scalar_lea.vmem %s1297_s2, %s1097_s12 }
  0x11   : > { %v327_v9 = vld [vmem:[%s286_s15] sm:$0xff]  ;;  %v328_v10 = vld [vmem:[%s286_s15 + $0x8] sm:$0xff]  ;;  %s291_s18 = scalar_lea.vmem %s1298_s3, %s1098_s8  ;;  %s1138_s28 = smov 111  }
  0x12   : > { %v329_v13 = vadd.f32 1.0, %v327_v9  ;;  %v330_v14 = vadd.f32 1.0, %v328_v10  ;;  %v298_v15 = vld [vmem:[%s291_s18] sm:$0xff]  ;;  %v338_v22 = vcombine.high %v327_v9, %v328_v10  ;;  %v1078_v9 = vld [vmem:[%s1299_s4 + $0x8] sm:$0x3] }
  0x14   : > { %v333_v20 = vcombine.low %v329_v13, %v330_v14 }
  0x86   : > { %v303_v11 = vpop.permute.xlu0 %302 }
  0x87   : > { %v310_v12 = vrot.slane %v303_v11, %v309_v8 }
  0x89   : > { %v312_v18 = vmul.f32 %v310_v12, %v298_v15  ;;  %v1081_v15 = vld [vmem:[%s1299_s4 + $0xa] sm:$0x3] }
  0x8a   : > { %v317_v17 = vpop.permute.xlu0 %316 }
  0x8b   : > { %v324_v19 = vrot.slane %v317_v17, %v309_v8 }
  0x8d   : > { %v326_v21 = vadd.f32 %v324_v19, %v312_v18 }
  0x8f   : > { %v335_v24 = vmul.f32 %v333_v20, %v326_v21  ;;  %v1084_v20 = vld [vmem:[%s1299_s4 + $0xc] sm:$0x3] }
  0x91   : > { %v340_v26 = vadd.f32 %v338_v22, %v335_v24 }
  0x93   : > { %v341_v27 = vmax.f32 %v340_v26, 0.0  ;;  %v1087_v26 = vld [vmem:[%s1299_s4 + $0xe] sm:$0x3] }
  0x95   : > { %v1212_v29 = vpack.c.bf16 %v341_v27, %v341_v27  ;;  %v378_v30 = vsel %vm369_vm0, %v341_v27, 0.0  ;;  %v376_v31 = vcombine.high %v341_v27, %v341_v27  ;;  %v390_v33 = vsel %vm384_vm1, %v341_v27, 0.0  ;;  %v1090_v27 = vld [vmem:[%s1299_s4 + $0x10] sm:$0x3] }
  0x96   : > { %v380_v32 = vpack.c.bf16 %v378_v30, %v378_v30  ;;  %v392_v35 = vpack.c.bf16 %v390_v33, %v390_v33 }
  0x97   : > { %409 = vrot.lane.b32.xlu1 %v1212_v29, %s1131_s19  ;;  %v1215_v34 = vpack.c.bf16 %v376_v31, %v376_v31  ;;  %v379_v36 = vsel %vm370_vm2, %v376_v31, 0.0  ;;  %v391_v38 = vsel %vm385_vm3, %v376_v31, 0.0  ;;  %v652_v2 = vsel %vm424_vm6, %v1212_v29, 0 }
  0x98   : > { %396 = vrot.lane.b32.xlu0 %v380_v32, %s1132_s20  ;;  %v381_v37 = vpack.c.bf16 %v379_v36, %v379_v36  ;;  %v393_v39 = vpack.c.bf16 %v391_v38, %v391_v38 }
  0x9b   : > { %411 = vrot.lane.b32.xlu1 %v1215_v34, %s1131_s19 }
  0x9c   : > { %522 = vrot.lane.b32.xlu0 %v392_v35, %s1133_s21 }
  0x9f   : > { %398 = vrot.lane.b32.xlu1 %v381_v37, %s1132_s20 }
  0xa0   : > { %584 = vrot.lane.b32.xlu0 %v380_v32, %s1134_s22 }
  0xa3   : > { %524 = vrot.lane.b32.xlu1 %v393_v39, %s1133_s21 }
  0xa4   : > { %700 = vrot.lane.b32.xlu0 %v392_v35, %s1135_s23 }
  0xa7   : > { %586 = vrot.lane.b32.xlu1 %v381_v37, %s1134_s22 }
  0xa8   : > { %762 = vrot.lane.b32.xlu0 %v380_v32, %s1136_s26 }
  0xab   : > { %702 = vrot.lane.b32.xlu1 %v393_v39, %s1135_s23 }
  0xac   : > { %824 = vrot.lane.b32.xlu0 %v1212_v29, %s1137_s27 }
  0xaf   : > { %764 = vrot.lane.b32.xlu1 %v381_v37, %s1136_s26 }
  0xb0   : > { %886 = vrot.lane.b32.xlu0 %v392_v35, %s1138_s28 }
  0xb3   : > { %826 = vrot.lane.b32.xlu1 %v1215_v34, %s1137_s27 }
  0xb4   : > { %951 = vperm.xlu0 %1119, %v948_v40  }
  0xb7   : > { %888 = vrot.lane.b32.xlu1 %v393_v39, %s1138_s28 }
 0x109   : > { %v410_v41 = vpop.permute.xlu1 %409 }
 0x10a   : > { %v397_v42 = vpop.permute.xlu0 %396  ;;  %v417_v43 = vsel %vm413_vm4, 0, %v410_v41 }
 0x10b   : > { %v425_v47 = vsel %vm424_vm6, %v417_v43, 0  ;;  %v405_v49 = vsel %vm400_vm5, 0, %v397_v42 }
 0x10c   : > { %v474_v53 = vsel %vm424_vm6, %v405_v49, 0 }
 0x10d   : > { %v412_v44 = vpop.permute.xlu1 %411 }
 0x10e   : > { %v523_v45 = vpop.permute.xlu0 %522  ;;  %v414_v46 = vsel %vm413_vm4, %v410_v41, %v412_v44 }
 0x10f   : > { %1068 = vmatprep.subr.msk.bf16.mxu0 %vm424_vm6, %v414_v46  ;;  %v530_v54 = vsel %vm526_vm8, 0, %v523_v45 }
 0x110   : > { %431 = vmatpush1.bf16.msra.mxu0 %v425_v47  ;;  %v536_v58 = vsel %vm424_vm6, %v530_v54, 0 }
 0x111   : > { %v399_v50 = vpop.permute.xlu1 %398 }
 0x112   : > { %v585_v51 = vpop.permute.xlu0 %584  ;;  %v401_v52 = vsel %vm400_vm5, %v397_v42, %v399_v50 }
 0x113   : > { %1069 = vmatmul.mubr.msk.bf16.vlgmr.msra.gmra.mrb[0].mxu0 %vm420_vm7, %v1067_v48  ;;  %1070 = vmatprep.subr.msk.bf16.mxu1 %vm424_vm6, %v401_v52  ;;  %v592_v60 = vsel %vm588_vm9, 0, %v585_v51 }
 0x114   : > { %480 = vmatpush1.bf16.msra.mxu1 %v474_v53  ;;  %573 = vmatprep.mubr.bf16.mxu0 %v1129_v1  ;;  %v598_v0 = vsel %vm424_vm6, %v592_v60, 0 }
 0x115   : > { %v525_v56 = vpop.permute.xlu1 %524 }
 0x116   : > { %v527_v57 = vsel %vm526_vm8, %v523_v45, %v525_v56  ;;  %v701_v59 = vpop.permute.xlu0 %700 }
 0x117   : > { %1071 = vmatmul.mubr.msk.bf16.vlgmr.msra.gmra.mrb[0].mxu1 %vm420_vm7, %v406_v55  ;;  %1073 = vmatprep.subr.msk.bf16.mxu0 %vm424_vm6, %v527_v57 }
 0x118   : > { %542 = vmatpush1.bf16.msra.mxu0 %v536_v58  ;;  %635 = vmatprep.mubr.bf16.mxu1 %v1129_v1 }
 0x119   : > { %1079 = vmatprep.subr.msk.bf16.mxu0 %vm424_vm6, %v1215_v34  ;;  %v587_v62 = vpop.permute.xlu1 %586 }
 0x11a   : > { %v589_v63 = vsel %vm588_vm9, %v585_v51, %v587_v62  ;;  %v763_v4 = vpop.permute.xlu0 %762 }
 0x11b   : > { %1074 = vmatmul.mubr.msk.bf16.vlgmr.msra.gmra.mrb[4].mxu0 %vm420_vm7, %v1072_v61  ;;  %1076 = vmatprep.subr.msk.bf16.mxu1 %vm424_vm6, %v589_v63 }
 0x11c   : > { %604 = vmatpush1.bf16.msra.mxu1 %v598_v0  ;;  %658 = vmatpush1.bf16.msra.mxu0 %v652_v2 }
 0x11d   : > { %v703_v5 = vpop.permute.xlu1 %702  ;;  %689 = vmatprep.mubr.bf16.mxu0 %v1129_v1 }
 0x11e   : > { %v705_v6 = vsel %vm704_vm10, %v701_v59, %v703_v5  ;;  %v708_v7 = vsel %vm704_vm10, %v703_v5, 0  ;;  %v825_v13 = vpop.permute.xlu0 %824 }
 0x11f   : > { %v715_v8 = vsel %vm424_vm6, %v705_v6, 0  ;;  %1077 = vmatmul.mubr.msk.bf16.vlgmr.msra.gmra.mrb[4].mxu1 %vm420_vm7, %v1075_v3  ;;  %1082 = vmatprep.subr.msk.bf16.mxu1 %vm424_vm6, %v708_v7 }
 0x120   : > { %720 = vmatpush1.bf16.msra.mxu1 %v715_v8  ;;  %751 = vmatprep.mubr.bf16.mxu1 %v1129_v1 }
 0x121   : > { %v765_v10 = vpop.permute.xlu1 %764 }
 0x122   : > { %v767_v11 = vsel %vm766_vm11, %v763_v4, %v765_v10  ;;  %v770_v12 = vsel %vm766_vm11, %v765_v10, 0  ;;  %v887_v21 = vpop.permute.xlu0 %886 }
 0x123   : > { %v777_v14 = vsel %vm424_vm6, %v767_v11, 0  ;;  %1080 = vmatmul.mubr.msk.bf16.vlgmr.msra.gmra.mrb[8].mxu0 %vm420_vm7, %v1078_v9  ;;  %1085 = vmatprep.subr.msk.bf16.mxu0 %vm424_vm6, %v770_v12 }
 0x124   : > { %782 = vmatpush1.bf16.msra.mxu0 %v777_v14  ;;  %813 = vmatprep.mubr.bf16.mxu0 %v1129_v1 }
 0x125   : > { %v827_v16 = vpop.permute.xlu1 %826 }
 0x126   : > { %v829_v17 = vsel %vm828_vm12, %v825_v13, %v827_v16  ;;  %v832_v18 = vsel %vm828_vm12, %v827_v16, 0 }
 0x127   : > { %v839_v19 = vsel %vm424_vm6, %v829_v17, 0  ;;  %1083 = vmatmul.mubr.msk.bf16.vlgmr.msra.gmra.mrb[8].mxu1 %vm420_vm7, %v1081_v15  ;;  %1088 = vmatprep.subr.msk.bf16.mxu1 %vm424_vm6, %v832_v18 }
 0x128   : > { %844 = vmatpush1.bf16.msra.mxu1 %v839_v19  ;;  %875 = vmatprep.mubr.bf16.mxu1 %v1129_v1  ;;  %v1139_v19 = vmov (!%p1093_p4), 0.0  }
 0x129   : > { %v889_v22 = vpop.permute.xlu1 %888  ;;  %961 = vst.msk [vmem:[#allocation2] sm:$0xf] (!%p1093_p4), %vm960_vm14, %v1139_v19 }
 0x12a   : > { %v891_v23 = vsel %vm890_vm13, %v887_v21, %v889_v22  ;;  %v894_v24 = vsel %vm890_vm13, %v889_v22, 0 }
 0x12b   : > { %v901_v25 = vsel %vm424_vm6, %v891_v23, 0  ;;  %1086 = vmatmul.mubr.msk.bf16.vlgmr.msra.gmra.mrb[12].mxu0 %vm420_vm7, %v1084_v20  ;;  %1091 = vmatprep.subr.msk.bf16.mxu0 %vm424_vm6, %v894_v24 }
 0x12c   : > { %906 = vmatpush1.bf16.msra.mxu0 %v901_v25  ;;  %937 = vmatprep.mubr.bf16.mxu0 %v1129_v1 }
 0x12f   : > { %1089 = vmatmul.mubr.msk.bf16.vlgmr.msra.gmra.mrb[12].mxu1 %vm420_vm7, %v1087_v26 }
 0x133   : > { %1092 = vmatmul.mubr.msk.bf16.vlgmr.msra.gmra.mrb[16].mxu0 %vm420_vm7, %v1090_v27  ;;  %v952_v13 = vpop.permute.xlu0 %951 }
 0x1e6   : > { %v464_v28 = vpop.f32.mrb[0].mxu0 }
 0x1e7   : > { %v466_v29 = vpop.f32.mrb[1].mxu0 }
 0x1e8   : > { %v468_v30 = vpop.f32.mrb[2].mxu0 }
 0x1e9   : > { %v469_v31 = vpop.f32.mrb[3].mxu0 }
 0x1ea   : > { %v513_v32 = vpop.f32.mrb[0].mxu1 }
 0x1eb   : > { %v514_v33 = vadd.f32 %v513_v32, %v464_v28  ;;  %v515_v34 = vpop.f32.mrb[1].mxu1 }
 0x1ec   : > { %v516_v35 = vadd.f32 %v515_v34, %v466_v29  ;;  %v517_v36 = vpop.f32.mrb[2].mxu1 }
 0x1ed   : > { %v518_v37 = vpop.f32.mrb[3].mxu1 }
 0x1ee   : > { %v575_v38 = vpop.f32.mrb[4].mxu0 }
 0x1ef   : > { %v582_v1 = vadd.f32 %v575_v38, %v514_v33  ;;  %v577_v39 = vpop.f32.mrb[5].mxu0 }
 0x1f0   : > { %v583_v40 = vadd.f32 %v577_v39, %v516_v35  ;;  %v579_v41 = vpop.f32.mrb[6].mxu0 }
 0x1f1   : > { %v580_v42 = vpop.f32.mrb[7].mxu0 }
 0x1f2   : > { %v637_v43 = vpop.f32.mrb[4].mxu1 }
 0x1f3   : > { %v644_v44 = vadd.f32 %v637_v43, %v582_v1  ;;  %v639_v45 = vpop.f32.mrb[5].mxu1 }
 0x1f4   : > { %v645_v46 = vadd.f32 %v639_v45, %v583_v40  ;;  %v641_v47 = vpop.f32.mrb[6].mxu1 }
 0x1f5   : > { %v642_v48 = vpop.f32.mrb[7].mxu1 }
 0x1f6   : > { %v691_v49 = vpop.f32.mrb[8].mxu0 }
 0x1f7   : > { %v698_v50 = vadd.f32 %v691_v49, %v644_v44  ;;  %v693_v51 = vpop.f32.mrb[9].mxu0 }
 0x1f8   : > { %v699_v52 = vadd.f32 %v693_v51, %v645_v46  ;;  %v695_v53 = vpop.f32.mrb[10].mxu0 }
 0x1f9   : > { %v696_v54 = vpop.f32.mrb[11].mxu0 }
 0x1fa   : > { %v753_v55 = vpop.f32.mrb[8].mxu1 }
 0x1fb   : > { %v760_v56 = vadd.f32 %v753_v55, %v698_v50  ;;  %v755_v57 = vpop.f32.mrb[9].mxu1 }
 0x1fc   : > { %v761_v58 = vadd.f32 %v755_v57, %v699_v52  ;;  %v757_v59 = vpop.f32.mrb[10].mxu1 }
 0x1fd   : > { %v758_v60 = vpop.f32.mrb[11].mxu1 }
 0x1fe   : > { %v815_v61 = vpop.f32.mrb[12].mxu0 }
 0x1ff   : > { %v822_v62 = vadd.f32 %v815_v61, %v760_v56  ;;  %v817_v63 = vpop.f32.mrb[13].mxu0 }
 0x200   : > { %v823_v0 = vadd.f32 %v817_v63, %v761_v58  ;;  %v819_v2 = vpop.f32.mrb[14].mxu0 }
 0x201   : > { %v820_v3 = vpop.f32.mrb[15].mxu0 }
 0x202   : > { %v877_v4 = vpop.f32.mrb[12].mxu1 }
 0x203   : > { %v884_v5 = vadd.f32 %v877_v4, %v822_v62  ;;  %v879_v6 = vpop.f32.mrb[13].mxu1 }
 0x204   : > { %v885_v7 = vadd.f32 %v879_v6, %v823_v0  ;;  %v881_v8 = vpop.f32.mrb[14].mxu1  ;;  %959 = sbr.rel (%p1093_p4) target bundleno = 523 (0x20b), region = 48 }
 0x205   : > { %v882_v9 = vpop.f32.mrb[15].mxu1 }
 0x206   : > { %v939_v10 = vpop.f32.mrb[16].mxu0 }
 0x207   : > { %v946_v11 = vadd.f32 %v939_v10, %v884_v5  ;;  %v941_v12 = vpop.f32.mrb[17].mxu0 }
 0x208   : > { %v947_v14 = vadd.f32 %v941_v12, %v885_v7  ;;  %v943_v15 = vpop.f32.mrb[18].mxu0 }
 0x209   : > { %v954_v16 = vadd.f32 %v952_v13, %v946_v11  ;;  %v944_v17 = vpop.f32.mrb[19].mxu0 }
 0x20a   : > { %v955_v18 = vadd.f32 %v952_v13, %v947_v14 }
 0x20b PF: > { %vm963_vm15 = vcmask 1043456   ;;  %v962_v23 = vld [vmem:[#allocation2] sm:$0xf]  ;;  %vm970_vm0 = vcmask 3072   ;;  %p1094_p5 = scmp.ne.s32.totalorder %s1186_s25, 1 }
 0x20c   : > { %v964_v20 = vsel %vm963_vm15, %v954_v16, 0.0  ;;  %v965_v21 = vsel %vm963_vm15, %v955_v18, 0.0 }
 0x20d   : > { %v966_v22 = vadd.f32 %v965_v21, %v964_v20 }
 0x20f   : > { %967 = vadd.xlane.f32.xlu0 %v966_v22 }
 0x299   : > { %975 = sbr.rel (%p1094_p5) target bundleno = 680 (0x2a8), region = 52 }
 0x29c   : > { %v968_v24 = vpop.xlane.xlu0 %967 }
 0x29d   : > { %v969_v25 = vadd.f32 %v968_v24, %v962_v23 }
 0x29f   : > { %971 = vst.msk [vmem:[#allocation2] sm:$0xf] %vm970_vm0, %v969_v25 }
 0x2a6   : > { %v976_v26 = vld [vmem:[#allocation2] sm:$0xf] }
 0x2a7   : > { %977 = vst.msk [vmem:[%s1302_s7] sm:$0xf] %vm970_vm0, %v976_v26 }
 0x2a8 PF: > { %v980_v27 = vcombine.low %v954_v16, %v955_v18 }
 0x2aa   : > { %982 = vst [vmem:[%s1204_s11] sm:$0xff] %v980_v27 }
 0x2ab PF: > { %s18_s24 = sadd.s32 1, %s1127_s24  }
 0x2ac   : > { %p15_p6 = scmp.ge.s32.totalorder %s18_s24, 4  }
 0x2ae   :  { %17 = sbr.rel (!%p15_p6) target bundleno = 1 (0x1), region = 101 }

// kernel: tirg_spade_forward.21
= control target key start
LH: loop header
LB: loop body
LE: loop exit
PB: predicated region body
PF: predicated region fallthrough
CT: control target
= control target key end

     0   :  { %14 = vsyncpa [#allocation3], 0  ;;  %s1368_s30 = smov 0   ;;  %s1521_s0 = inlined_call_operand.vmem [shape: f32[4,1], index: 0, kind: input, shape index: {}]   ;;  %s1522_s1 = inlined_call_operand.vmem [shape: f32[4,1], index: 1, kind: input, shape index: {}]   ;;  %s1523_s2 = inlined_call_operand.vmem [shape: f32[2,8,256], index: 2, kind: input, shape index: {}]   ;;  %s1524_s3 = inlined_call_operand.vmem [shape: f32[2,4,256], index: 3, kind: input, shape index: {}]   ;;  %s1525_s4 = inlined_call_operand.vmem [shape: bf16[9,4,4], index: 4, kind: input, shape index: {}]   ;;  %s1526_s5 = inlined_call_operand.vmem [shape: f32[4,1], index: 5, kind: input, shape index: {}]   ;;  %s1527_s6 = inlined_call_operand.vmem [shape: f32[2], index: 6, kind: input, shape index: {}]   ;;  %s1528_s7 = inlined_call_operand.vmem [shape: f32[2,1,256], index: 7, kind: input, shape index: {}]   ;;  %s1529_s8 = inlined_call_operand.vmem [shape: f32[2,4,256], index: 8, kind: input, shape index: {}]   ;;  %s1530_s9 = inlined_call_operand.vmem [shape: f32[2,4,256], index: 9, kind: output, shape index: {}]  }
   0x1 LB: > { %s1374_s10 = sadd.s32 4294967295, %s1305_s30   ;;  %p1201_p0 = scmp.ge.s32.totalorder %s1305_s30, 1  ;;  %s1305_s30 = sphi %s1368_s30, %s20_s30  }
   0x2   : > { %p260_p1 = scmp.lt.s32.totalorder %s1305_s30, 3  ;;  %s285_s13 = sshll.u32 %s1527_s6, 4  ;;  %s286_s13 = int_to_ptr.vmem [resolvable:$true] %s285_s13 }
   0x3   : > { %p1256_p3 = scmp.eq.s32.totalorder %s1374_s10, 0  ;;  %s1280_s15 = scalar_lea.vmem %s286_s13, 16 }
   0x4   : > { %p1381_p2 = pnand %p1201_p0, %p260_p1  ;;  %p1281_p6 = scmp.ne.s32.totalorder %s286_s13, %s1280_s15 }
   0x5   : > { %p1288_p10 = scmp.lt.s32.totalorder %s286_s13, %s286_s13  ;;  %p1289_p11 = scmp.lt.s32.totalorder %s1280_s15, %s1280_s15 }
   0x6   : > { %p1252_p4 = pneg %p1381_p2 }
   0x7   : > { %p1290_p12 = por %p1289_p11, %p1288_p10 }
   0x8   : > { %p1253_p5 = pnand %p1256_p3, %p1252_p4 }
   0xa   : > { %p1282_p7 = pneg %p1253_p5 }
   0xc   : > { %p1283_p8 = pnand %p1282_p7, %p1281_p6 }
   0xe   : > { %p1284_p9 = pneg %p1283_p8 }
  0x10   : > { %p1291_p13 = pnand %p1290_p12, %p1284_p9 }
  0x12   : > { %1294 = shalt.err (!%p1291_p13)
}
  0x13   : > { %s1307_s16 = smov [#allocation2]   ;;  %329 = sbr.rel (%p1381_p2) target bundleno = 555 (0x22b), region = 56 }
  0x14   : > { %1255 = dma.vmem_to_smem (!%p1253_p5), %s286_s13, 16, %s1307_s16, [#allocation3]  }
  0x1a   : > { %1300 = dma.done.wait (%p1256_p3), [#allocation3], 16  }
  0x1b   : > { %1302 = vsyncadd (%p1256_p3), [#allocation3], 4294967280 }
  0x1c   : > { %335 = sfence }
  0x1d   : > { %v406_v0 = vld [vmem:[%s1521_s0] sm:$0xf]  ;;  %v414_v1 = vlaneseq  ;;  %p380_p0 = scmp.lt.s32.totalorder %s1374_s10, 1  ;;  %v1308_v2 = vmov 0   ;;  %v1309_v10 = vmov 839922192  }
  0x1e   : > { %1277 = vset.pattern.permute.xlu0 %v1308_v2  ;;  %569 = vmatprep.mubr.bf16.mxu0 %v1308_v2  ;;  %v420_v4 = vld [vmem:[%s1522_s1] sm:$0xf]  ;;  %v412_v11 = vunpack.c.l.s4 %v1309_v10  ;;  %s1311_s17 = smov 17   ;;  %s1312_s18 = smov 15   ;;  %vm520_vm4 = vcmask 130048   ;;  %vm507_vm5 = vcmask 138240  }
  0x1f   : > { %409 = vperm.xlu0 %1277, %v406_v0   ;;  %v1402_v3 = vshrl.u32 %v414_v1, 7  ;;  %s1533_s10 = smov (!%p380_p0, %s1374_s10), 1  ;;  %618 = vmatprep.mubr.bf16.mxu1 %v1308_v2  ;;  %v450_v22 = vand.u32 127, %v414_v1  ;;  %s1313_s19 = smov 1   ;;  %v1055_v45 = vld [vmem:[%s1526_s5] sm:$0xf] }
  0x20   : > { %s1210_s21 = sshll.u32 %s1533_s10, 1  ;;  %s1410_s22 = sshll.u32 %s1533_s10, 3  ;;  %v413_v12 = vunpack.c.0.s8 %v412_v11  ;;  %vm531_vm6 = vcmask 1041408   ;;  %v1215_v53 = vld [vmem:[%s1525_s4 + $0x2] sm:$0x3]  ;;  %vm527_vm7 = vcmask 31744  }
  0x21   : > { %v1069_v5 = vsub.s32 0, %v1402_v3  ;;  %s393_s25 = scalar_lea.vmem %s1528_s7, %s1210_s21  ;;  %s398_s28 = scalar_lea.vmem %s1529_s8, %s1410_s22  ;;  %v456_v28 = vand.u32 15, %v450_v22  ;;  %v451_v30 = vadd.s32 128, %v450_v22  ;;  %vm633_vm8 = vcmask 121856   ;;  %v513_v60 = vld [vmem:[%s1525_s4] sm:$0x3] }
  0x22   : > { %v1419_v6 = vld [vmem:[%s393_s25] sm:$0x3]  ;;  %s1244_s29 = sshll.u32 %s1533_s10, 4  ;;  %v416_v13 = vsub.s32 %v413_v12, %v1402_v3  ;;  %s389_s16 = scalar_lea.vmem %s1524_s3, %s1410_s22  ;;  %vm695_vm9 = vcmask 7168   ;;  %vm811_vm10 = vcmask 1039360   ;;  %vm873_vm11 = vcmask 924672  }
  0x23   : > { %423 = vperm.xlu0 %1277, %v420_v4   ;;  %v1421_v7 = vld [vmem:[%s398_s28] sm:$0xff]  ;;  %v1070_v8 = vrot.slane %v1419_v6, %v1069_v5  ;;  %s384_s13 = scalar_lea.vmem %s1523_s2, %s1244_s29  ;;  %vm476_vm0 = vcmp.ne.s32.totalorder %v456_v28, 15  ;;  %v463_v33 = vand.u32 15, %v451_v30  ;;  %vm491_vm1 = vcmp.ne.s32.totalorder %v456_v28, 0  ;;  %s1310_s10 = smov 16  }
  0x24   : > { %v434_v14 = vld [vmem:[%s384_s13] sm:$0xff]  ;;  %v435_v15 = vld [vmem:[%s384_s13 + $0x8] sm:$0xff]  ;;  %s1314_s20 = smov 127   ;;  %s1315_s21 = smov 113   ;;  %vm935_vm12 = vcmask 916480   ;;  %vm997_vm13 = vcmask 908288  }
  0x25   : > { %v1425_v9 = vmul.f32 %v1070_v8, %v1421_v7  ;;  %v436_v18 = vadd.f32 1.0, %v434_v14  ;;  %v437_v19 = vadd.f32 1.0, %v435_v15  ;;  %v405_v20 = vld [vmem:[%s389_s16] sm:$0xff]  ;;  %v445_v27 = vcombine.high %v434_v14, %v435_v15  ;;  %s1316_s23 = smov 112   ;;  %s1317_s24 = smov 111  }
  0x26   : > { %vm477_vm2 = vcmp.ne.s32.totalorder %v463_v33, 15  ;;  %vm492_vm3 = vcmp.ne.s32.totalorder %v463_v33, 0  ;;  %v1220_v4 = vld [vmem:[%s1525_s4 + $0x4] sm:$0x3]  ;;  %v1223_v12 = vld [vmem:[%s1525_s4 + $0x6] sm:$0x3]  ;;  %s403_s11 = scalar_lea.vmem %s1530_s9, %s1410_s22 }
  0x27   : > { %v440_v25 = vcombine.low %v436_v18, %v437_v19  ;;  %v1226_v18 = vld [vmem:[%s1525_s4 + $0x8] sm:$0x3]  ;;  %s1063_s26 = sld [smem:[#allocation2]]  ;;  %s1241_s27 = sld [smem:[#allocation2 + $0x1]] }
  0x9e   : > { %v410_v16 = vpop.permute.xlu0 %409 }
  0x9f   : > { %v417_v17 = vrot.slane %v410_v16, %v416_v13 }
  0xa1   : > { %v419_v23 = vmul.f32 %v417_v17, %v405_v20 }
  0xa2   : > { %v424_v21 = vpop.permute.xlu0 %423 }
  0xa3   : > { %v431_v24 = vrot.slane %v424_v21, %v416_v13 }
  0xa5   : > { %v433_v26 = vadd.f32 %v431_v24, %v419_v23  ;;  %v1229_v24 = vld [vmem:[%s1525_s4 + $0xa] sm:$0x3] }
  0xa7   : > { %v442_v29 = vmul.f32 %v440_v25, %v433_v26 }
  0xa9   : > { %v447_v31 = vadd.f32 %v445_v27, %v442_v29  ;;  %v1232_v29 = vld [vmem:[%s1525_s4 + $0xc] sm:$0x3] }
  0xab   : > { %v448_v32 = vmax.f32 %v447_v31, 0.0 }
  0xad   : > { %v1435_v34 = vpack.c.bf16 %v448_v32, %v448_v32  ;;  %v485_v35 = vsel %vm476_vm0, %v448_v32, 0.0  ;;  %v483_v36 = vcombine.high %v448_v32, %v448_v32  ;;  %v497_v38 = vsel %vm491_vm1, %v448_v32, 0.0 }
  0xae   : > { %v487_v37 = vpack.c.bf16 %v485_v35, %v485_v35  ;;  %v499_v40 = vpack.c.bf16 %v497_v38, %v497_v38  ;;  %v1235_v35 = vld [vmem:[%s1525_s4 + $0xe] sm:$0x3]  ;;  %v1078_v38 = vcombine.high %v1421_v7, %v1421_v7 }
  0xaf   : > { %516 = vrot.lane.b32.xlu1 %v1435_v34, %s1310_s10  ;;  %v1438_v39 = vpack.c.bf16 %v483_v36, %v483_v36  ;;  %v486_v41 = vsel %vm477_vm2, %v483_v36, 0.0  ;;  %v498_v43 = vsel %vm492_vm3, %v483_v36, 0.0  ;;  %v759_v11 = vsel %vm531_vm6, %v1435_v34, 0  ;;  %v1238_v36 = vld [vmem:[%s1525_s4 + $0x10] sm:$0x3] }
  0xb0   : > { %503 = vrot.lane.b32.xlu0 %v487_v37, %s1311_s17  ;;  %v488_v42 = vpack.c.bf16 %v486_v41, %v486_v41  ;;  %v500_v44 = vpack.c.bf16 %v498_v43, %v498_v43 }
  0xb3   : > { %518 = vrot.lane.b32.xlu1 %v1438_v39, %s1310_s10 }
  0xb4   : > { %629 = vrot.lane.b32.xlu0 %v499_v40, %s1312_s18 }
  0xb7   : > { %505 = vrot.lane.b32.xlu1 %v488_v42, %s1311_s17 }
  0xb8   : > { %691 = vrot.lane.b32.xlu0 %v487_v37, %s1313_s19 }
  0xbb   : > { %631 = vrot.lane.b32.xlu1 %v500_v44, %s1312_s18 }
  0xbc   : > { %807 = vrot.lane.b32.xlu0 %v499_v40, %s1314_s20 }
  0xbf   : > { %693 = vrot.lane.b32.xlu1 %v488_v42, %s1313_s19 }
  0xc0   : > { %869 = vrot.lane.b32.xlu0 %v487_v37, %s1315_s21  ;;  %v1073_v37 = vsub.s32 1, %v1402_v3 }
  0xc3   : > { %809 = vrot.lane.b32.xlu1 %v500_v44, %s1314_s20 }
  0xc4   : > { %931 = vrot.lane.b32.xlu0 %v1435_v34, %s1316_s23 }
  0xc7   : > { %871 = vrot.lane.b32.xlu1 %v488_v42, %s1315_s21 }
  0xc8   : > { %993 = vrot.lane.b32.xlu0 %v499_v40, %s1317_s24 }
  0xcb   : > { %933 = vrot.lane.b32.xlu1 %v1438_v39, %s1316_s23 }
  0xcc   : > { %1058 = vperm.xlu0 %1277, %v1055_v45  }
  0xcf   : > { %995 = vrot.lane.b32.xlu1 %v500_v44, %s1317_s24 }
 0x121   : > { %v517_v46 = vpop.permute.xlu1 %516 }
 0x122   : > { %v504_v47 = vpop.permute.xlu0 %503  ;;  %v524_v48 = vsel %vm520_vm4, 0, %v517_v46 }
 0x123   : > { %v532_v52 = vsel %vm531_vm6, %v524_v48, 0  ;;  %v512_v54 = vsel %vm507_vm5, 0, %v504_v47 }
 0x124   : > { %v581_v58 = vsel %vm531_vm6, %v512_v54, 0 }
 0x125   : > { %v519_v49 = vpop.permute.xlu1 %518 }
 0x126   : > { %v630_v50 = vpop.permute.xlu0 %629  ;;  %v521_v51 = vsel %vm520_vm4, %v517_v46, %v519_v49 }
 0x127   : > { %1216 = vmatprep.subr.msk.bf16.mxu0 %vm531_vm6, %v521_v51  ;;  %v637_v59 = vsel %vm633_vm8, 0, %v630_v50 }
 0x128   : > { %538 = vmatpush1.bf16.msra.mxu0 %v532_v52  ;;  %v643_v63 = vsel %vm531_vm6, %v637_v59, 0 }
 0x129   : > { %v506_v55 = vpop.permute.xlu1 %505 }
 0x12a   : > { %v692_v56 = vpop.permute.xlu0 %691  ;;  %v508_v57 = vsel %vm507_vm5, %v504_v47, %v506_v55 }
 0x12b   : > { %1217 = vmatmul.mubr.msk.bf16.vlgmr.msra.gmra.mrb[0].mxu0 %vm527_vm7, %v1215_v53  ;;  %1218 = vmatprep.subr.msk.bf16.mxu1 %vm531_vm6, %v508_v57  ;;  %v699_v1 = vsel %vm695_vm9, 0, %v692_v56 }
 0x12c   : > { %587 = vmatpush1.bf16.msra.mxu1 %v581_v58  ;;  %680 = vmatprep.mubr.bf16.mxu0 %v1308_v2  ;;  %v705_v10 = vsel %vm531_vm6, %v699_v1, 0 }
 0x12d   : > { %v632_v61 = vpop.permute.xlu1 %631 }
 0x12e   : > { %v634_v62 = vsel %vm633_vm8, %v630_v50, %v632_v61  ;;  %v808_v0 = vpop.permute.xlu0 %807 }
 0x12f   : > { %1219 = vmatmul.mubr.msk.bf16.vlgmr.msra.gmra.mrb[0].mxu1 %vm527_vm7, %v513_v60  ;;  %1221 = vmatprep.subr.msk.bf16.mxu0 %vm531_vm6, %v634_v62 }
 0x130   : > { %649 = vmatpush1.bf16.msra.mxu0 %v643_v63  ;;  %742 = vmatprep.mubr.bf16.mxu1 %v1308_v2 }
 0x131   : > { %1227 = vmatprep.subr.msk.bf16.mxu0 %vm531_vm6, %v1438_v39  ;;  %v694_v5 = vpop.permute.xlu1 %693  ;;  %v1074_v39 = vrot.slane %v1419_v6, %v1073_v37 }
 0x132   : > { %v696_v8 = vsel %vm695_vm9, %v692_v56, %v694_v5  ;;  %v870_v13 = vpop.permute.xlu0 %869 }
 0x133   : > { %1222 = vmatmul.mubr.msk.bf16.vlgmr.msra.gmra.mrb[4].mxu0 %vm527_vm7, %v1220_v4  ;;  %1224 = vmatprep.subr.msk.bf16.mxu1 %vm531_vm6, %v696_v8  ;;  %v1081_v40 = vmul.f32 %v1078_v38, %v1074_v39 }
 0x134   : > { %711 = vmatpush1.bf16.msra.mxu1 %v705_v10  ;;  %765 = vmatpush1.bf16.msra.mxu0 %v759_v11 }
 0x135   : > { %v810_v14 = vpop.permute.xlu1 %809  ;;  %796 = vmatprep.mubr.bf16.mxu0 %v1308_v2 }
 0x136   : > { %v812_v15 = vsel %vm811_vm10, %v808_v0, %v810_v14  ;;  %v815_v16 = vsel %vm811_vm10, %v810_v14, 0  ;;  %v932_v22 = vpop.permute.xlu0 %931 }
 0x137   : > { %v822_v17 = vsel %vm531_vm6, %v812_v15, 0  ;;  %1225 = vmatmul.mubr.msk.bf16.vlgmr.msra.gmra.mrb[4].mxu1 %vm527_vm7, %v1223_v12  ;;  %1230 = vmatprep.subr.msk.bf16.mxu1 %vm531_vm6, %v815_v16 }
 0x138   : > { %827 = vmatpush1.bf16.msra.mxu1 %v822_v17  ;;  %858 = vmatprep.mubr.bf16.mxu1 %v1308_v2 }
 0x139   : > { %v872_v19 = vpop.permute.xlu1 %871 }
 0x13a   : > { %v874_v20 = vsel %vm873_vm11, %v870_v13, %v872_v19  ;;  %v877_v21 = vsel %vm873_vm11, %v872_v19, 0  ;;  %v994_v30 = vpop.permute.xlu0 %993 }
 0x13b   : > { %v884_v23 = vsel %vm531_vm6, %v874_v20, 0  ;;  %1228 = vmatmul.mubr.msk.bf16.vlgmr.msra.gmra.mrb[8].mxu0 %vm527_vm7, %v1226_v18  ;;  %1233 = vmatprep.subr.msk.bf16.mxu0 %vm531_vm6, %v877_v21 }
 0x13c   : > { %889 = vmatpush1.bf16.msra.mxu0 %v884_v23  ;;  %920 = vmatprep.mubr.bf16.mxu0 %v1308_v2 }
 0x13d   : > { %v934_v25 = vpop.permute.xlu1 %933 }
 0x13e   : > { %v936_v26 = vsel %vm935_vm12, %v932_v22, %v934_v25  ;;  %v939_v27 = vsel %vm935_vm12, %v934_v25, 0  ;;  %v1082_v25 = vstv %s1063_s26 }
 0x13f   : > { %v946_v28 = vsel %vm531_vm6, %v936_v26, 0  ;;  %1231 = vmatmul.mubr.msk.bf16.vlgmr.msra.gmra.mrb[8].mxu1 %vm527_vm7, %v1229_v24  ;;  %1236 = vmatprep.subr.msk.bf16.mxu1 %vm531_vm6, %v939_v27 }
 0x140   : > { %951 = vmatpush1.bf16.msra.mxu1 %v946_v28  ;;  %982 = vmatprep.mubr.bf16.mxu1 %v1308_v2 }
 0x141   : > { %v996_v31 = vpop.permute.xlu1 %995 }
 0x142   : > { %v998_v32 = vsel %vm997_vm13, %v994_v30, %v996_v31  ;;  %v1001_v33 = vsel %vm997_vm13, %v996_v31, 0 }
 0x143   : > { %v1008_v34 = vsel %vm531_vm6, %v998_v32, 0  ;;  %1234 = vmatmul.mubr.msk.bf16.vlgmr.msra.gmra.mrb[12].mxu0 %vm527_vm7, %v1232_v29  ;;  %1239 = vmatprep.subr.msk.bf16.mxu0 %vm531_vm6, %v1001_v33  ;;  %v1086_v29 = vstv %s1241_s27  ;;  %v1083_v33 = vmul.f32 %v1082_v25, %v1425_v9 }
 0x144   : > { %1013 = vmatpush1.bf16.msra.mxu0 %v1008_v34  ;;  %1044 = vmatprep.mubr.bf16.mxu0 %v1308_v2 }
 0x147   : > { %1237 = vmatmul.mubr.msk.bf16.vlgmr.msra.gmra.mrb[12].mxu1 %vm527_vm7, %v1235_v35 }
 0x14b   : > { %1240 = vmatmul.mubr.msk.bf16.vlgmr.msra.gmra.mrb[16].mxu0 %vm527_vm7, %v1238_v36  ;;  %v1059_v28 = vpop.permute.xlu0 %1058  ;;  %v1084_v36 = vmul.f32 %v1082_v25, %v1081_v40 }
 0x1fe   : > { %v571_v41 = vpop.f32.mrb[0].mxu0 }
 0x1ff   : > { %v573_v42 = vpop.f32.mrb[1].mxu0 }
 0x200   : > { %v575_v43 = vpop.f32.mrb[2].mxu0 }
 0x201   : > { %v576_v2 = vpop.f32.mrb[3].mxu0 }
 0x202   : > { %v620_v44 = vpop.f32.mrb[0].mxu1 }
 0x203   : > { %v621_v45 = vadd.f32 %v620_v44, %v571_v41  ;;  %v622_v46 = vpop.f32.mrb[1].mxu1 }
 0x204   : > { %v623_v47 = vadd.f32 %v622_v46, %v573_v42  ;;  %v624_v48 = vpop.f32.mrb[2].mxu1 }
 0x205   : > { %v625_v49 = vpop.f32.mrb[3].mxu1 }
 0x206   : > { %v682_v50 = vpop.f32.mrb[4].mxu0 }
 0x207   : > { %v689_v51 = vadd.f32 %v682_v50, %v621_v45  ;;  %v684_v52 = vpop.f32.mrb[5].mxu0 }
 0x208   : > { %v690_v3 = vadd.f32 %v684_v52, %v623_v47  ;;  %v686_v53 = vpop.f32.mrb[6].mxu0 }
 0x209   : > { %v687_v54 = vpop.f32.mrb[7].mxu0 }
 0x20a   : > { %v744_v7 = vpop.f32.mrb[4].mxu1 }
 0x20b   : > { %v751_v55 = vadd.f32 %v744_v7, %v689_v51  ;;  %v746_v6 = vpop.f32.mrb[5].mxu1 }
 0x20c   : > { %v752_v56 = vadd.f32 %v746_v6, %v690_v3  ;;  %v748_v57 = vpop.f32.mrb[6].mxu1 }
 0x20d   : > { %v749_v58 = vpop.f32.mrb[7].mxu1 }
 0x20e   : > { %v798_v59 = vpop.f32.mrb[8].mxu0 }
 0x20f   : > { %v805_v60 = vadd.f32 %v798_v59, %v751_v55  ;;  %v800_v61 = vpop.f32.mrb[9].mxu0 }
 0x210   : > { %v806_v62 = vadd.f32 %v800_v61, %v752_v56  ;;  %v802_v63 = vpop.f32.mrb[10].mxu0 }
 0x211   : > { %v803_v0 = vpop.f32.mrb[11].mxu0 }
 0x212   : > { %v860_v1 = vpop.f32.mrb[8].mxu1 }
 0x213   : > { %v867_v4 = vadd.f32 %v860_v1, %v805_v60  ;;  %v862_v5 = vpop.f32.mrb[9].mxu1 }
 0x214   : > { %v868_v8 = vadd.f32 %v862_v5, %v806_v62  ;;  %v864_v10 = vpop.f32.mrb[10].mxu1 }
 0x215   : > { %v865_v11 = vpop.f32.mrb[11].mxu1 }
 0x216   : > { %v922_v12 = vpop.f32.mrb[12].mxu0 }
 0x217   : > { %v929_v13 = vadd.f32 %v922_v12, %v867_v4  ;;  %v924_v14 = vpop.f32.mrb[13].mxu0 }
 0x218   : > { %v930_v15 = vadd.f32 %v924_v14, %v868_v8  ;;  %v926_v16 = vpop.f32.mrb[14].mxu0 }
 0x219   : > { %v927_v17 = vpop.f32.mrb[15].mxu0 }
 0x21a   : > { %v984_v18 = vpop.f32.mrb[12].mxu1 }
 0x21b   : > { %v991_v19 = vadd.f32 %v984_v18, %v929_v13  ;;  %v986_v20 = vpop.f32.mrb[13].mxu1 }
 0x21c   : > { %v992_v21 = vadd.f32 %v986_v20, %v930_v15  ;;  %v988_v22 = vpop.f32.mrb[14].mxu1 }
 0x21d   : > { %v989_v23 = vpop.f32.mrb[15].mxu1 }
 0x21e   : > { %v1046_v24 = vpop.f32.mrb[16].mxu0 }
 0x21f   : > { %v1053_v26 = vadd.f32 %v1046_v24, %v991_v19  ;;  %v1048_v27 = vpop.f32.mrb[17].mxu0 }
 0x220   : > { %v1054_v30 = vadd.f32 %v1048_v27, %v992_v21  ;;  %v1050_v31 = vpop.f32.mrb[18].mxu0 }
 0x221   : > { %v1061_v32 = vadd.f32 %v1059_v28, %v1053_v26  ;;  %v1051_v34 = vpop.f32.mrb[19].mxu0 }
 0x222   : > { %v1062_v35 = vadd.f32 %v1059_v28, %v1054_v30 }
 0x223   : > { %v1087_v37 = vmul.f32 %v1086_v29, %v1061_v32 }
 0x224   : > { %v1088_v38 = vmul.f32 %v1086_v29, %v1062_v35 }
 0x225   : > { %v1089_v39 = vadd.f32 %v1087_v37, %v1083_v33 }
 0x226   : > { %v1090_v41 = vadd.f32 %v1088_v38, %v1084_v36 }
 0x228   : > { %v1093_v42 = vcombine.low %v1089_v39, %v1090_v41 }
 0x22a   : > { %1095 = vst [vmem:[%s403_s11] sm:$0xff] %v1093_v42 }
 0x22b PF: > { %s20_s30 = sadd.s32 1, %s1305_s30  }
 0x22c   : > { %p17_p1 = scmp.ge.s32.totalorder %s20_s30, 4  }
 0x22e   :  { %19 = sbr.rel (!%p17_p1) target bundleno = 1 (0x1), region = 108 }
 0x235   :  { %1117 = vsyncpa [#allocation3], 1 }
 0x236   :  { %1119 = vsyncpa [#allocation3 + $0x1], 1 }

</bundles_post_ra>
